<compile_context>
chip_gen: v6e
topology: v6e:2x2x1
jax: 0.10.0
libtpu: 0.0.40
codegen_flags: <defaults>
</compile_context>

<pallas_src>
import functools

import jax
import jax.numpy as jnp
from jax.experimental import pallas as pl
from jax.experimental.pallas import tpu as pltpu

EPS = 1e-5  # PyTorch BatchNorm default eps

# Architecture-fixed spatial sizes.
H1, W1 = 7, 9     # conv1 / bn1 spatial (3x3, pad 1 keeps size)
W1P = 16          # W1 rounded up to a multiple of 8 (sublane tile)
WIN = 24          # in-kernel padded image width (9 -> 11 -> 24 sublanes)
H2, W2 = 6, 8     # after complex 2x2 / stride-1 max pool
H3, W3 = 4, 6     # after 3x3 / stride-1 max pool
W3P = 8           # W3 rounded up to 8

# Row offsets of the packed weight matrix `wbig` (all multiples of 8).
O1 = 0            # conv1 block-real weights      (18, 24)
O2 = 24           # conv2 im2col weights          (108, 24)
O3 = 136          # conv3 1x1 weights             (24, 12)
O4 = 160          # conv4 1x1 weights             (12, 4)
O5 = 176          # conv5 packed weights          (128, 4), row = k*32 + h*8 + w
WBIG_ROWS = O5 + 128   # 304


def _bn_rows(y, gamma, beta, inv_count):
    """Batch-statistics BatchNorm over the rows of a (rows, C) tensor whose
    padding rows (if any) are exactly zero.  The mean uses the true element
    count; the variance uses the shifted-product form sum((y-mean)*y)/count,
    which is exact for zero pad rows and avoids most of the E[y^2]-mean^2
    cancellation flagged in review."""
    mean = jnp.sum(y, axis=0, keepdims=True) * inv_count
    var = jnp.sum((y - mean) * y, axis=0, keepdims=True) * inv_count
    return (y - mean) * jax.lax.rsqrt(var + EPS) * gamma + beta


def _fused_kernel(img_ref, w_ref, p_ref, out_ref,
                  y1_ref, x2p_ref, y2_ref, m_ref, *, n):
    f32 = jnp.float32

    # ---- conv1: ComplexConv2d 3x3 pad 1 as ONE block-real matmul -------------
    # Patch columns are ordered (tap, {re, im}); taps are static shifted slices
    # of the padded image (no separate im2col launch any more).
    taps1 = []
    for dh in range(3):
        for dw in range(3):
            taps1.append(
                img_ref[:, dh:dh + H1, dw:dw + W1P, :].reshape(n * H1 * W1P, 2))
    patches = jnp.concatenate(taps1, axis=-1)                          # (n*112, 18)
    y1 = jnp.dot(patches, w_ref[O1:O1 + 18, :], preferred_element_type=f32)

    # Rows with padded W index >= 9 are not all-zero (the dw=0 tap still reads
    # image column 8), so zero them before the batch-stat BN.
    row1 = jax.lax.broadcasted_iota(jnp.int32, (n * H1 * W1P, 1), 0)
    y1 = jnp.where((row1 & (W1P - 1)) < W1, y1, 0.0)

    inv1 = 1.0 / float(n * H1 * W1)
    y1 = _bn_rows(y1, p_ref[0:1, :], p_ref[1:2, :], inv1)              # bn1 (re|im)
    y1 = jnp.maximum(y1, 0.0)                                          # complex relu
    y1_ref[...] = y1.reshape(n, H1, W1P, 24)   # lanes 0..11 real, 12..23 imag

    # ---- complex_max_pool2d 2x2 stride 1  +  |z| * sign(imag) -----------------
    # Strict '>' keeps the first window element on exact modulus ties, matching
    # torch.max_pool2d(return_indices=True) tie-breaking.
    best_sq = None
    best_im = None
    for dh in range(2):
        for dw in range(2):
            win = y1_ref[:, dh:dh + H2, dw:dw + W2, :]                 # (n,6,8,24)
            r, im = win[..., 0:12], win[..., 12:24]
            sq = r * r + im * im              # compare squared moduli, sqrt once
            if best_sq is None:
                best_sq, best_im = sq, im
            else:
                take = sq > best_sq
                best_im = jnp.where(take, im, best_im)
                best_sq = jnp.where(take, sq, best_sq)
    # imag == 0 -> +1 matches the x_igm_copy[x_igm_copy == 0] = 1 fixup.
    x2 = jnp.sqrt(best_sq) * jnp.where(best_im >= 0.0, 1.0, -1.0)      # (n,6,8,12)

    # ---- conv2 3x3 pad 1 as ONE im2col matmul (K = 108) -----------------------
    # Padded column j (0..9) lives at sublane j+7 so the interior store is
    # 8-aligned; only the halo is zero-filled (interior written once) and the
    # zero fills themselves stay 8-aligned.  Sublanes 17..23 are never read.
    z_row = jnp.zeros((n, 1, 24, 12), f32)
    x2p_ref[:, 0:1, :, :] = z_row                                      # top halo
    x2p_ref[:, H2 + 1:H2 + 2, :, :] = z_row                            # bottom halo
    z_blk = jnp.zeros((n, H2, 8, 12), f32)
    x2p_ref[:, 1:1 + H2, 0:8, :] = z_blk                               # left halo
    x2p_ref[:, 1:1 + H2, 16:24, :] = z_blk                             # right halo
    x2p_ref[:, 1:1 + H2, 8:8 + W2, :] = x2                             # interior

    taps2 = []
    for dh in range(3):
        for dw in range(3):
            taps2.append(
                x2p_ref[:, dh:dh + H2, 7 + dw:7 + dw + W2, :].reshape(n * H2 * W2, 12))
    xs2 = jnp.concatenate(taps2, axis=-1)                              # (n*48, 108)
    y2 = jnp.dot(xs2, w_ref[O2:O2 + 108, :], preferred_element_type=f32)
    inv2 = 1.0 / float(n * H2 * W2)
    y2 = _bn_rows(y2, p_ref[2:3, :], p_ref[3:4, :], inv2)
    y2_ref[...] = jnp.maximum(y2, 0.0).reshape(n, H2, W2, 24)

    # ---- max_pool2d 3x3 stride 1 ----------------------------------------------
    best = None
    for dh in range(3):
        for dw in range(3):
            win = y2_ref[:, dh:dh + H3, dw:dw + W3, :]
            best = win if best is None else jnp.maximum(best, win)
    m_ref[:, :, 0:W3, :] = best                                        # valid cols
    m_ref[:, :, W3:W3P, :] = jnp.zeros((n, H3, W3P - W3, 24), f32)     # pad cols

    # ---- conv3 1x1 + bn3 + relu (pad cols 6,7 are zero rows) ------------------
    x3 = m_ref[...].reshape(n * H3 * W3P, 24)
    inv34 = 1.0 / float(n * H3 * W3)
    y3 = jnp.dot(x3, w_ref[O3:O3 + 24, 0:12], preferred_element_type=f32)
    y3 = jnp.maximum(_bn_rows(y3, p_ref[4:5, 0:12], p_ref[5:6, 0:12], inv34), 0.0)
    row3 = jax.lax.broadcasted_iota(jnp.int32, (n * H3 * W3P, 1), 0)
    y3 = jnp.where((row3 & (W3P - 1)) < W3, y3, 0.0)    # re-zero pad rows for bn4

    # ---- conv4 1x1 + bn4 + relu ------------------------------------------------
    y4 = jnp.dot(y3, w_ref[O4:O4 + 12, 0:4], preferred_element_type=f32)
    y4 = jnp.maximum(_bn_rows(y4, p_ref[6:7, 0:4], p_ref[7:8, 0:4], inv34), 0.0)

    # ---- conv5: dense layer over the flattened (C,H,W) features ---------------
    # Contract the 4-channel dim on the VPU (one lane-sum per output channel),
    # then do the per-sample sum over the 32 (h, w_pad) positions as ONE matmul
    # against a {0,1} segment matrix.  w5 rows for the padded W positions are
    # zero, so post-bn4 garbage in those rows is harmless.
    cols = []
    for k in range(4):
        w5k = w_ref[O5 + 32 * k:O5 + 32 * (k + 1), 0:4]                # (32, 4)
        w5k_full = jnp.concatenate([w5k] * n, axis=0) if n > 1 else w5k
        cols.append(jnp.sum(y4 * w5k_full, axis=1, keepdims=True))     # (n*32, 1)
    pmat = jnp.concatenate(cols, axis=-1)                              # (n*32, 4)

    srow = jax.lax.broadcasted_iota(jnp.int32, (n, n * H3 * W3P), 0)
    scol = jax.lax.broadcasted_iota(jnp.int32, (n, n * H3 * W3P), 1)
    lo = srow * (H3 * W3P)
    seg = ((scol >= lo) & (scol < lo + H3 * W3P)).astype(f32)          # (n, n*32)
    out_ref[...] = (jnp.dot(seg, pmat, preferred_element_type=f32)
                    + p_ref[8:9, 0:4])


# -----------------------------------------------------------------------------
# Wrapper: minimal input prep (pad/stack only) + the single pallas_call
# -----------------------------------------------------------------------------
def complex_net_forward(x_real, x_imag, params):
    n = x_real.shape[0]
    # Only remaining host-side prep: zero-pad the raw complex image into the
    # kernel's (n, 9, 24, 2) buffer (H 7->9 for the 3x3 halo, W 9->11, then to
    # 24 sublanes; last dim = {real, imag}).  The 3x3 taps are sliced from this
    # buffer inside the kernel.
    img = jnp.stack([x_real[:, 0], x_imag[:, 0]], axis=-1)             # (n,7,9,2)
    img = jnp.pad(img, ((0, 0), (1, 1), (1, WIN - W1 - 1), (0, 0)))    # (n,9,24,2)

    vmem = lambda: pl.BlockSpec(memory_space=pltpu.MemorySpace.VMEM)
    return pl.pallas_call(
        functools.partial(_fused_kernel, n=n),
        out_shape=jax.ShapeDtypeStruct((n, 4), jnp.float32),
        in_specs=[vmem(), vmem(), vmem()],
        out_specs=vmem(),
        scratch_shapes=[
            pltpu.VMEM((n, H1, W1P, 24), jnp.float32),      # conv1 out (re | im)
            pltpu.VMEM((n, H2 + 2, 24, 12), jnp.float32),   # conv2 padded input
            pltpu.VMEM((n, H2, W2, 24), jnp.float32),       # conv2 out (spatial)
            pltpu.VMEM((n, H3, W3P, 24), jnp.float32),      # 3x3 pool out (padded)
        ],
    )(img, params['wbig'], params['bnp'])


# -----------------------------------------------------------------------------
# Deterministic synthetic parameters, packed into two kernel-ready arrays.
# -----------------------------------------------------------------------------
def init_params(key):
    ks = jax.random.split(key, 7)

    def rnd(k, shape, fan_in):
        return jax.random.normal(k, shape, jnp.float32) / jnp.sqrt(fan_in)

    # conv1 (complex, Cin=1): per-tap real / imag weights, tap t = kh*3 + kw.
    w1r = rnd(ks[0], (9, 12), 9.0)
    w1i = rnd(ks[1], (9, 12), 9.0)
    # Block-real RHS (18, 24): patch column order (tap, {re, im});
    # output columns 0..11 = real part, 12..23 = imag part.
    w1 = jnp.zeros((18, 24), jnp.float32)
    w1 = w1.at[0::2, 0:12].set(w1r).at[1::2, 0:12].set(-w1i)
    w1 = w1.at[0::2, 12:24].set(w1i).at[1::2, 12:24].set(w1r)

    # conv2: torch (24, 12, 3, 3) -> im2col rows ordered (tap, cin) -> (108, 24).
    w2 = rnd(ks[2], (9, 12, 24), 108.0).reshape(108, 24)
    # conv3 / conv4 (1x1): (Cin, Cout).
    w3 = rnd(ks[3], (24, 12), 24.0)
    w4 = rnd(ks[4], (12, 4), 12.0)
    # conv5: torch (4, 96, 1, 1); torch flatten index j = c*24 + h*6 + w (NCHW).
    # Repack to rows k*32 + h*8 + w (zero rows at padded w = 6, 7), cols = c.
    w5_t = rnd(ks[5], (96, 4), 96.0)                       # (j, k)
    w5_chwk = w5_t.reshape(4, H3, W3, 4)                   # (c, h, w, k)
    w5p = jnp.zeros((4, H3, W3P, 4), jnp.float32)          # (k, h, w_pad, c)
    w5p = w5p.at[:, :, 0:W3, :].set(jnp.transpose(w5_chwk, (3, 1, 2, 0)))
    b5 = rnd(ks[6], (1, 4), 96.0)

    wbig = jnp.zeros((WBIG_ROWS, 24), jnp.float32)
    wbig = wbig.at[O1:O1 + 18, :].set(w1)
    wbig = wbig.at[O2:O2 + 108, :].set(w2)
    wbig = wbig.at[O3:O3 + 24, 0:12].set(w3)
    wbig = wbig.at[O4:O4 + 12, 0:4].set(w4)
    wbig = wbig.at[O5:O5 + 128, 0:4].set(w5p.reshape(128, 4))

    bnp = jnp.zeros((16, 24), jnp.float32)
    # BatchNorm affine params (PyTorch default init: weight=1, bias=0).
    bnp = bnp.at[0, :].set(1.0)            # bn1 gamma (real | imag)
    bnp = bnp.at[2, :].set(1.0)            # bn2 gamma
    bnp = bnp.at[4, 0:12].set(1.0)         # bn3 gamma
    bnp = bnp.at[6, 0:4].set(1.0)          # bn4 gamma
    bnp = bnp.at[8, 0:4].set(b5[0])        # conv5 bias
    # betas (rows 1, 3, 5, 7) stay zero.
    return {'wbig': wbig, 'bnp': bnp}


if __name__ == "__main__":
    key = jax.random.PRNGKey(0)
    kx, kp = jax.random.split(key)
    k1, k2 = jax.random.split(kx)

    # PyTorch input: complex NCHW tensor (N=2, C=1, H=7, W=9) as real/imag parts.
    x_real = jax.random.normal(k1, (2, 1, H1, W1), jnp.float32)
    x_imag = jax.random.normal(k2, (2, 1, H1, W1), jnp.float32)

    params = init_params(kp)

    fwd = jax.jit(complex_net_forward)
    out = jax.block_until_ready(fwd(x_real, x_imag, params))
    assert out.shape == (2, 4) and out.dtype == jnp.float32
    print("KERNEL_OK")
</pallas_src>

<mosaic_0001>
module attributes {stable_mosaic.version = 11 : i64} {
  func.func @_fused_kernel(%arg0: memref<2x9x24x2xf32, #tpu.memory_space<vmem>>, %arg1: memref<304x24xf32, #tpu.memory_space<vmem>>, %arg2: memref<16x24xf32, #tpu.memory_space<vmem>>, %arg3: memref<2x4xf32, #tpu.memory_space<vmem>>, %arg4: memref<2x7x16x24xf32, #tpu.memory_space<vmem>>, %arg5: memref<2x8x24x12xf32, #tpu.memory_space<vmem>>, %arg6: memref<2x6x8x24xf32, #tpu.memory_space<vmem>>, %arg7: memref<2x4x8x24xf32, #tpu.memory_space<vmem>>) attributes {dimension_semantics = [], scalar_prefetch = 0 : i64, scratch_operands = 4 : i64, tpu.core_type = #tpu.core_type<tc>} {
    %c0 = arith.constant 0 : index
    %c0_0 = arith.constant 0 : index
    %c0_1 = arith.constant 0 : index
    %c0_2 = arith.constant 0 : index
    %0 = vector.load %arg0[%c0, %c0_0, %c0_1, %c0_2] : memref<2x9x24x2xf32, #tpu.memory_space<vmem>>, vector<2x7x16x2xf32>
    %1 = vector.shape_cast %0 : vector<2x7x16x2xf32> to vector<224x2xf32>
    %c0_3 = arith.constant 0 : index
    %c0_4 = arith.constant 0 : index
    %c1 = arith.constant 1 : index
    %c0_5 = arith.constant 0 : index
    %2 = vector.load %arg0[%c0_3, %c0_4, %c1, %c0_5] : memref<2x9x24x2xf32, #tpu.memory_space<vmem>>, vector<2x7x16x2xf32>
    %3 = vector.shape_cast %2 : vector<2x7x16x2xf32> to vector<224x2xf32>
    %c0_6 = arith.constant 0 : index
    %c0_7 = arith.constant 0 : index
    %c2 = arith.constant 2 : index
    %c0_8 = arith.constant 0 : index
    %4 = vector.load %arg0[%c0_6, %c0_7, %c2, %c0_8] : memref<2x9x24x2xf32, #tpu.memory_space<vmem>>, vector<2x7x16x2xf32>
    %5 = vector.shape_cast %4 : vector<2x7x16x2xf32> to vector<224x2xf32>
    %c0_9 = arith.constant 0 : index
    %c1_10 = arith.constant 1 : index
    %c0_11 = arith.constant 0 : index
    %c0_12 = arith.constant 0 : index
    %6 = vector.load %arg0[%c0_9, %c1_10, %c0_11, %c0_12] : memref<2x9x24x2xf32, #tpu.memory_space<vmem>>, vector<2x7x16x2xf32>
    %7 = vector.shape_cast %6 : vector<2x7x16x2xf32> to vector<224x2xf32>
    %c0_13 = arith.constant 0 : index
    %c1_14 = arith.constant 1 : index
    %c1_15 = arith.constant 1 : index
    %c0_16 = arith.constant 0 : index
    %8 = vector.load %arg0[%c0_13, %c1_14, %c1_15, %c0_16] : memref<2x9x24x2xf32, #tpu.memory_space<vmem>>, vector<2x7x16x2xf32>
    %9 = vector.shape_cast %8 : vector<2x7x16x2xf32> to vector<224x2xf32>
    %c0_17 = arith.constant 0 : index
    %c1_18 = arith.constant 1 : index
    %c2_19 = arith.constant 2 : index
    %c0_20 = arith.constant 0 : index
    %10 = vector.load %arg0[%c0_17, %c1_18, %c2_19, %c0_20] : memref<2x9x24x2xf32, #tpu.memory_space<vmem>>, vector<2x7x16x2xf32>
    %11 = vector.shape_cast %10 : vector<2x7x16x2xf32> to vector<224x2xf32>
    %c0_21 = arith.constant 0 : index
    %c2_22 = arith.constant 2 : index
    %c0_23 = arith.constant 0 : index
    %c0_24 = arith.constant 0 : index
    %12 = vector.load %arg0[%c0_21, %c2_22, %c0_23, %c0_24] : memref<2x9x24x2xf32, #tpu.memory_space<vmem>>, vector<2x7x16x2xf32>
    %13 = vector.shape_cast %12 : vector<2x7x16x2xf32> to vector<224x2xf32>
    %c0_25 = arith.constant 0 : index
    %c2_26 = arith.constant 2 : index
    %c1_27 = arith.constant 1 : index
    %c0_28 = arith.constant 0 : index
    %14 = vector.load %arg0[%c0_25, %c2_26, %c1_27, %c0_28] : memref<2x9x24x2xf32, #tpu.memory_space<vmem>>, vector<2x7x16x2xf32>
    %15 = vector.shape_cast %14 : vector<2x7x16x2xf32> to vector<224x2xf32>
    %c0_29 = arith.constant 0 : index
    %c2_30 = arith.constant 2 : index
    %c2_31 = arith.constant 2 : index
    %c0_32 = arith.constant 0 : index
    %16 = vector.load %arg0[%c0_29, %c2_30, %c2_31, %c0_32] : memref<2x9x24x2xf32, #tpu.memory_space<vmem>>, vector<2x7x16x2xf32>
    %17 = vector.shape_cast %16 : vector<2x7x16x2xf32> to vector<224x2xf32>
    %18 = tpu.concatenate %1, %3, %5, %7, %9, %11, %13, %15, %17 in 1 : vector<224x2xf32>, vector<224x2xf32>, vector<224x2xf32>, vector<224x2xf32>, vector<224x2xf32>, vector<224x2xf32>, vector<224x2xf32>, vector<224x2xf32>, vector<224x2xf32> -> vector<224x18xf32>
    %c0_33 = arith.constant 0 : index
    %c0_34 = arith.constant 0 : index
    %19 = vector.load %arg1[%c0_33, %c0_34] : memref<304x24xf32, #tpu.memory_space<vmem>>, vector<18x24xf32>
    %cst = arith.constant dense<0.000000e+00> : vector<224x24xf32>
    %20 = tpu.matmul %18, %19, %cst {dimension_numbers = #tpu.dot_dimension_numbers<[1], [0], [0], [1], [0, 0, 1, 1], [], []>} : vector<224x18xf32>, vector<18x24xf32>, vector<224x24xf32> -> vector<224x24xf32>
    %21 = tpu.iota {dimensions = array<i32: 0>} : vector<224x1xi32>
    %c15_i32 = arith.constant 15 : i32
    %22 = vector.broadcast %c15_i32 : i32 to vector<224x1xi32>
    %23 = arith.andi %21, %22 : vector<224x1xi32>
    %c9_i32 = arith.constant 9 : i32
    %24 = vector.broadcast %c9_i32 : i32 to vector<224x1xi32>
    %25 = arith.cmpi slt, %23, %24 : vector<224x1xi32>
    %cst_35 = arith.constant 0.000000e+00 : f32
    %26 = vector.shape_cast %25 : vector<224x1xi1> to vector<224x1xi1>
    %27 = vector.broadcast %26 : vector<224x1xi1> to vector<224x24xi1>
    %28 = vector.broadcast %cst_35 : f32 to vector<224x24xf32>
    %29 = arith.select %27, %20, %28 : vector<224x24xi1>, vector<224x24xf32>
    %c0_36 = arith.constant 0 : index
    %c0_37 = arith.constant 0 : index
    %30 = vector.load %arg2[%c0_36, %c0_37] : memref<16x24xf32, #tpu.memory_space<vmem>>, vector<1x24xf32>
    %c1_38 = arith.constant 1 : index
    %c0_39 = arith.constant 0 : index
    %31 = vector.load %arg2[%c1_38, %c0_39] : memref<16x24xf32, #tpu.memory_space<vmem>>, vector<1x24xf32>
    %cst_40 = arith.constant dense<0.000000e+00> : vector<24xf32>
    %32 = vector.multi_reduction <add>, %29, %cst_40 [0] : vector<224x24xf32> to vector<24xf32>
    %33 = vector.shape_cast %32 : vector<24xf32> to vector<1x24xf32>
    %cst_41 = arith.constant 0.00793650839 : f32
    %34 = vector.broadcast %cst_41 : f32 to vector<1x24xf32>
    %35 = arith.mulf %33, %34 : vector<1x24xf32>
    %36 = vector.broadcast %35 : vector<1x24xf32> to vector<224x24xf32>
    %37 = arith.subf %29, %36 : vector<224x24xf32>
    %38 = arith.mulf %37, %29 : vector<224x24xf32>
    %cst_42 = arith.constant dense<0.000000e+00> : vector<24xf32>
    %39 = vector.multi_reduction <add>, %38, %cst_42 [0] : vector<224x24xf32> to vector<24xf32>
    %40 = vector.shape_cast %39 : vector<24xf32> to vector<1x24xf32>
    %cst_43 = arith.constant 0.00793650839 : f32
    %41 = vector.broadcast %cst_43 : f32 to vector<1x24xf32>
    %42 = arith.mulf %40, %41 : vector<1x24xf32>
    %43 = vector.broadcast %35 : vector<1x24xf32> to vector<224x24xf32>
    %44 = arith.subf %29, %43 : vector<224x24xf32>
    %cst_44 = arith.constant 9.99999974E-6 : f32
    %45 = vector.broadcast %cst_44 : f32 to vector<1x24xf32>
    %46 = arith.addf %42, %45 : vector<1x24xf32>
    %47 = math.rsqrt %46 : vector<1x24xf32>
    %48 = vector.broadcast %47 : vector<1x24xf32> to vector<224x24xf32>
    %49 = arith.mulf %44, %48 : vector<224x24xf32>
    %50 = vector.broadcast %30 : vector<1x24xf32> to vector<224x24xf32>
    %51 = arith.mulf %49, %50 : vector<224x24xf32>
    %52 = vector.broadcast %31 : vector<1x24xf32> to vector<224x24xf32>
    %53 = arith.addf %51, %52 : vector<224x24xf32>
    %cst_45 = arith.constant 0.000000e+00 : f32
    %54 = vector.broadcast %cst_45 : f32 to vector<224x24xf32>
    %55 = arith.maximumf %53, %54 : vector<224x24xf32>
    %56 = vector.shape_cast %55 : vector<224x24xf32> to vector<2x7x16x24xf32>
    %c0_46 = arith.constant 0 : index
    %c0_47 = arith.constant 0 : index
    %c0_48 = arith.constant 0 : index
    %c0_49 = arith.constant 0 : index
    %57 = vector.load %arg4[%c0_46, %c0_47, %c0_48, %c0_49] : memref<2x7x16x24xf32, #tpu.memory_space<vmem>>, vector<2x7x16x24xf32>
    tpu.vector_store %arg4[%c0_46, %c0_47, %c0_48, %c0_49], %56 {strides = array<i32>} : memref<2x7x16x24xf32, #tpu.memory_space<vmem>>, vector<2x7x16x24xf32>,
    %c0_50 = arith.constant 0 : index
    %c0_51 = arith.constant 0 : index
    %c0_52 = arith.constant 0 : index
    %c0_53 = arith.constant 0 : index
    %58 = vector.load %arg4[%c0_50, %c0_51, %c0_52, %c0_53] : memref<2x7x16x24xf32, #tpu.memory_space<vmem>>, vector<2x6x8x24xf32>
    %59 = vector.extract_strided_slice %58 {offsets = [0, 0, 0, 0], sizes = [2, 6, 8, 12], strides = [1, 1, 1, 1]} : vector<2x6x8x24xf32> to vector<2x6x8x12xf32>
    %60 = vector.extract_strided_slice %58 {offsets = [0, 0, 0, 12], sizes = [2, 6, 8, 12], strides = [1, 1, 1, 1]} : vector<2x6x8x24xf32> to vector<2x6x8x12xf32>
    %61 = arith.mulf %59, %59 : vector<2x6x8x12xf32>
    %62 = arith.mulf %60, %60 : vector<2x6x8x12xf32>
    %63 = arith.addf %61, %62 : vector<2x6x8x12xf32>
    %c0_54 = arith.constant 0 : index
    %c0_55 = arith.constant 0 : index
    %c1_56 = arith.constant 1 : index
    %c0_57 = arith.constant 0 : index
    %64 = vector.load %arg4[%c0_54, %c0_55, %c1_56, %c0_57] : memref<2x7x16x24xf32, #tpu.memory_space<vmem>>, vector<2x6x8x24xf32>
    %65 = vector.extract_strided_slice %64 {offsets = [0, 0, 0, 0], sizes = [2, 6, 8, 12], strides = [1, 1, 1, 1]} : vector<2x6x8x24xf32> to vector<2x6x8x12xf32>
    %66 = vector.extract_strided_slice %64 {offsets = [0, 0, 0, 12], sizes = [2, 6, 8, 12], strides = [1, 1, 1, 1]} : vector<2x6x8x24xf32> to vector<2x6x8x12xf32>
    %67 = arith.mulf %65, %65 : vector<2x6x8x12xf32>
    %68 = arith.mulf %66, %66 : vector<2x6x8x12xf32>
    %69 = arith.addf %67, %68 : vector<2x6x8x12xf32>
    %70 = arith.cmpf ogt, %69, %63 : vector<2x6x8x12xf32>
    %71 = arith.select %70, %66, %60 : vector<2x6x8x12xi1>, vector<2x6x8x12xf32>
    %72 = arith.select %70, %69, %63 : vector<2x6x8x12xi1>, vector<2x6x8x12xf32>
    %c0_58 = arith.constant 0 : index
    %c1_59 = arith.constant 1 : index
    %c0_60 = arith.constant 0 : index
    %c0_61 = arith.constant 0 : index
    %73 = vector.load %arg4[%c0_58, %c1_59, %c0_60, %c0_61] : memref<2x7x16x24xf32, #tpu.memory_space<vmem>>, vector<2x6x8x24xf32>
    %74 = vector.extract_strided_slice %73 {offsets = [0, 0, 0, 0], sizes = [2, 6, 8, 12], strides = [1, 1, 1, 1]} : vector<2x6x8x24xf32> to vector<2x6x8x12xf32>
    %75 = vector.extract_strided_slice %73 {offsets = [0, 0, 0, 12], sizes = [2, 6, 8, 12], strides = [1, 1, 1, 1]} : vector<2x6x8x24xf32> to vector<2x6x8x12xf32>
    %76 = arith.mulf %74, %74 : vector<2x6x8x12xf32>
    %77 = arith.mulf %75, %75 : vector<2x6x8x12xf32>
    %78 = arith.addf %76, %77 : vector<2x6x8x12xf32>
    %79 = arith.cmpf ogt, %78, %72 : vector<2x6x8x12xf32>
    %80 = arith.select %79, %75, %71 : vector<2x6x8x12xi1>, vector<2x6x8x12xf32>
    %81 = arith.select %79, %78, %72 : vector<2x6x8x12xi1>, vector<2x6x8x12xf32>
    %c0_62 = arith.constant 0 : index
    %c1_63 = arith.constant 1 : index
    %c1_64 = arith.constant 1 : index
    %c0_65 = arith.constant 0 : index
    %82 = vector.load %arg4[%c0_62, %c1_63, %c1_64, %c0_65] : memref<2x7x16x24xf32, #tpu.memory_space<vmem>>, vector<2x6x8x24xf32>
    %83 = vector.extract_strided_slice %82 {offsets = [0, 0, 0, 0], sizes = [2, 6, 8, 12], strides = [1, 1, 1, 1]} : vector<2x6x8x24xf32> to vector<2x6x8x12xf32>
    %84 = vector.extract_strided_slice %82 {offsets = [0, 0, 0, 12], sizes = [2, 6, 8, 12], strides = [1, 1, 1, 1]} : vector<2x6x8x24xf32> to vector<2x6x8x12xf32>
    %85 = arith.mulf %83, %83 : vector<2x6x8x12xf32>
    %86 = arith.mulf %84, %84 : vector<2x6x8x12xf32>
    %87 = arith.addf %85, %86 : vector<2x6x8x12xf32>
    %88 = arith.cmpf ogt, %87, %81 : vector<2x6x8x12xf32>
    %89 = arith.select %88, %84, %80 : vector<2x6x8x12xi1>, vector<2x6x8x12xf32>
    %90 = arith.select %88, %87, %81 : vector<2x6x8x12xi1>, vector<2x6x8x12xf32>
    %91 = math.sqrt %90 : vector<2x6x8x12xf32>
    %cst_66 = arith.constant 0.000000e+00 : f32
    %92 = vector.broadcast %cst_66 : f32 to vector<2x6x8x12xf32>
    %93 = arith.cmpf oge, %89, %92 : vector<2x6x8x12xf32>
    %cst_67 = arith.constant 1.000000e+00 : f32
    %cst_68 = arith.constant -1.000000e+00 : f32
    %94 = vector.broadcast %cst_67 : f32 to vector<2x6x8x12xf32>
    %95 = vector.broadcast %cst_68 : f32 to vector<2x6x8x12xf32>
    %96 = arith.select %93, %94, %95 : vector<2x6x8x12xi1>, vector<2x6x8x12xf32>
    %97 = arith.mulf %91, %96 : vector<2x6x8x12xf32>
    %cst_69 = arith.constant 0.000000e+00 : f32
    %98 = vector.broadcast %cst_69 : f32 to vector<2x1x24x12xf32>
    %c0_70 = arith.constant 0 : index
    %c0_71 = arith.constant 0 : index
    %c0_72 = arith.constant 0 : index
    %c0_73 = arith.constant 0 : index
    %99 = vector.load %arg5[%c0_70, %c0_71, %c0_72, %c0_73] : memref<2x8x24x12xf32, #tpu.memory_space<vmem>>, vector<2x1x24x12xf32>
    tpu.vector_store %arg5[%c0_70, %c0_71, %c0_72, %c0_73], %98 {strides = array<i32>} : memref<2x8x24x12xf32, #tpu.memory_space<vmem>>, vector<2x1x24x12xf32>,
    %c0_74 = arith.constant 0 : index
    %c7 = arith.constant 7 : index
    %c0_75 = arith.constant 0 : index
    %c0_76 = arith.constant 0 : index
    %100 = vector.load %arg5[%c0_74, %c7, %c0_75, %c0_76] : memref<2x8x24x12xf32, #tpu.memory_space<vmem>>, vector<2x1x24x12xf32>
    tpu.vector_store %arg5[%c0_74, %c7, %c0_75, %c0_76], %98 {strides = array<i32>} : memref<2x8x24x12xf32, #tpu.memory_space<vmem>>, vector<2x1x24x12xf32>,
    %cst_77 = arith.constant 0.000000e+00 : f32
    %101 = vector.broadcast %cst_77 : f32 to vector<2x6x8x12xf32>
    %c0_78 = arith.constant 0 : index
    %c1_79 = arith.constant 1 : index
    %c0_80 = arith.constant 0 : index
    %c0_81 = arith.constant 0 : index
    %102 = vector.load %arg5[%c0_78, %c1_79, %c0_80, %c0_81] : memref<2x8x24x12xf32, #tpu.memory_space<vmem>>, vector<2x6x8x12xf32>
    tpu.vector_store %arg5[%c0_78, %c1_79, %c0_80, %c0_81], %101 {strides = array<i32>} : memref<2x8x24x12xf32, #tpu.memory_space<vmem>>, vector<2x6x8x12xf32>,
    %c0_82 = arith.constant 0 : index
    %c1_83 = arith.constant 1 : index
    %c16 = arith.constant 16 : index
    %c0_84 = arith.constant 0 : index
    %103 = vector.load %arg5[%c0_82, %c1_83, %c16, %c0_84] : memref<2x8x24x12xf32, #tpu.memory_space<vmem>>, vector<2x6x8x12xf32>
    tpu.vector_store %arg5[%c0_82, %c1_83, %c16, %c0_84], %101 {strides = array<i32>} : memref<2x8x24x12xf32, #tpu.memory_space<vmem>>, vector<2x6x8x12xf32>,
    %c0_85 = arith.constant 0 : index
    %c1_86 = arith.constant 1 : index
    %c8 = arith.constant 8 : index
    %c0_87 = arith.constant 0 : index
    %104 = vector.load %arg5[%c0_85, %c1_86, %c8, %c0_87] : memref<2x8x24x12xf32, #tpu.memory_space<vmem>>, vector<2x6x8x12xf32>
    tpu.vector_store %arg5[%c0_85, %c1_86, %c8, %c0_87], %97 {strides = array<i32>} : memref<2x8x24x12xf32, #tpu.memory_space<vmem>>, vector<2x6x8x12xf32>,
    %c0_88 = arith.constant 0 : index
    %c0_89 = arith.constant 0 : index
    %c7_90 = arith.constant 7 : index
    %c0_91 = arith.constant 0 : index
    %105 = vector.load %arg5[%c0_88, %c0_89, %c7_90, %c0_91] : memref<2x8x24x12xf32, #tpu.memory_space<vmem>>, vector<2x6x8x12xf32>
    %106 = vector.shape_cast %105 : vector<2x6x8x12xf32> to vector<96x12xf32>
    %c0_92 = arith.constant 0 : index
    %c0_93 = arith.constant 0 : index
    %c8_94 = arith.constant 8 : index
    %c0_95 = arith.constant 0 : index
    %107 = vector.load %arg5[%c0_92, %c0_93, %c8_94, %c0_95] : memref<2x8x24x12xf32, #tpu.memory_space<vmem>>, vector<2x6x8x12xf32>
    %108 = vector.shape_cast %107 : vector<2x6x8x12xf32> to vector<96x12xf32>
    %c0_96 = arith.constant 0 : index
    %c0_97 = arith.constant 0 : index
    %c9 = arith.constant 9 : index
    %c0_98 = arith.constant 0 : index
    %109 = vector.load %arg5[%c0_96, %c0_97, %c9, %c0_98] : memref<2x8x24x12xf32, #tpu.memory_space<vmem>>, vector<2x6x8x12xf32>
    %110 = vector.shape_cast %109 : vector<2x6x8x12xf32> to vector<96x12xf32>
    %c0_99 = arith.constant 0 : index
    %c1_100 = arith.constant 1 : index
    %c7_101 = arith.constant 7 : index
    %c0_102 = arith.constant 0 : index
    %111 = vector.load %arg5[%c0_99, %c1_100, %c7_101, %c0_102] : memref<2x8x24x12xf32, #tpu.memory_space<vmem>>, vector<2x6x8x12xf32>
    %112 = vector.shape_cast %111 : vector<2x6x8x12xf32> to vector<96x12xf32>
    %c0_103 = arith.constant 0 : index
    %c1_104 = arith.constant 1 : index
    %c8_105 = arith.constant 8 : index
    %c0_106 = arith.constant 0 : index
    %113 = vector.load %arg5[%c0_103, %c1_104, %c8_105, %c0_106] : memref<2x8x24x12xf32, #tpu.memory_space<vmem>>, vector<2x6x8x12xf32>
    %114 = vector.shape_cast %113 : vector<2x6x8x12xf32> to vector<96x12xf32>
    %c0_107 = arith.constant 0 : index
    %c1_108 = arith.constant 1 : index
    %c9_109 = arith.constant 9 : index
    %c0_110 = arith.constant 0 : index
    %115 = vector.load %arg5[%c0_107, %c1_108, %c9_109, %c0_110] : memref<2x8x24x12xf32, #tpu.memory_space<vmem>>, vector<2x6x8x12xf32>
    %116 = vector.shape_cast %115 : vector<2x6x8x12xf32> to vector<96x12xf32>
    %c0_111 = arith.constant 0 : index
    %c2_112 = arith.constant 2 : index
    %c7_113 = arith.constant 7 : index
    %c0_114 = arith.constant 0 : index
    %117 = vector.load %arg5[%c0_111, %c2_112, %c7_113, %c0_114] : memref<2x8x24x12xf32, #tpu.memory_space<vmem>>, vector<2x6x8x12xf32>
    %118 = vector.shape_cast %117 : vector<2x6x8x12xf32> to vector<96x12xf32>
    %c0_115 = arith.constant 0 : index
    %c2_116 = arith.constant 2 : index
    %c8_117 = arith.constant 8 : index
    %c0_118 = arith.constant 0 : index
    %119 = vector.load %arg5[%c0_115, %c2_116, %c8_117, %c0_118] : memref<2x8x24x12xf32, #tpu.memory_space<vmem>>, vector<2x6x8x12xf32>
    %120 = vector.shape_cast %119 : vector<2x6x8x12xf32> to vector<96x12xf32>
    %c0_119 = arith.constant 0 : index
    %c2_120 = arith.constant 2 : index
    %c9_121 = arith.constant 9 : index
    %c0_122 = arith.constant 0 : index
    %121 = vector.load %arg5[%c0_119, %c2_120, %c9_121, %c0_122] : memref<2x8x24x12xf32, #tpu.memory_space<vmem>>, vector<2x6x8x12xf32>
    %122 = vector.shape_cast %121 : vector<2x6x8x12xf32> to vector<96x12xf32>
    %123 = tpu.concatenate %106, %108, %110, %112, %114, %116, %118, %120, %122 in 1 : vector<96x12xf32>, vector<96x12xf32>, vector<96x12xf32>, vector<96x12xf32>, vector<96x12xf32>, vector<96x12xf32>, vector<96x12xf32>, vector<96x12xf32>, vector<96x12xf32> -> vector<96x108xf32>
    %c24 = arith.constant 24 : index
    %c0_123 = arith.constant 0 : index
    %124 = vector.load %arg1[%c24, %c0_123] : memref<304x24xf32, #tpu.memory_space<vmem>>, vector<108x24xf32>
    %cst_124 = arith.constant dense<0.000000e+00> : vector<96x24xf32>
    %125 = tpu.matmul %123, %124, %cst_124 {dimension_numbers = #tpu.dot_dimension_numbers<[1], [0], [0], [1], [0, 0, 1, 1], [], []>} : vector<96x108xf32>, vector<108x24xf32>, vector<96x24xf32> -> vector<96x24xf32>
    %c2_125 = arith.constant 2 : index
    %c0_126 = arith.constant 0 : index
    %126 = vector.load %arg2[%c2_125, %c0_126] : memref<16x24xf32, #tpu.memory_space<vmem>>, vector<1x24xf32>
    %c3 = arith.constant 3 : index
    %c0_127 = arith.constant 0 : index
    %127 = vector.load %arg2[%c3, %c0_127] : memref<16x24xf32, #tpu.memory_space<vmem>>, vector<1x24xf32>
    %cst_128 = arith.constant dense<0.000000e+00> : vector<24xf32>
    %128 = vector.multi_reduction <add>, %125, %cst_128 [0] : vector<96x24xf32> to vector<24xf32>
    %129 = vector.shape_cast %128 : vector<24xf32> to vector<1x24xf32>
    %cst_129 = arith.constant 0.010416667 : f32
    %130 = vector.broadcast %cst_129 : f32 to vector<1x24xf32>
    %131 = arith.mulf %129, %130 : vector<1x24xf32>
    %132 = vector.broadcast %131 : vector<1x24xf32> to vector<96x24xf32>
    %133 = arith.subf %125, %132 : vector<96x24xf32>
    %134 = arith.mulf %133, %125 : vector<96x24xf32>
    %cst_130 = arith.constant dense<0.000000e+00> : vector<24xf32>
    %135 = vector.multi_reduction <add>, %134, %cst_130 [0] : vector<96x24xf32> to vector<24xf32>
    %136 = vector.shape_cast %135 : vector<24xf32> to vector<1x24xf32>
    %cst_131 = arith.constant 0.010416667 : f32
    %137 = vector.broadcast %cst_131 : f32 to vector<1x24xf32>
    %138 = arith.mulf %136, %137 : vector<1x24xf32>
    %139 = vector.broadcast %131 : vector<1x24xf32> to vector<96x24xf32>
    %140 = arith.subf %125, %139 : vector<96x24xf32>
    %cst_132 = arith.constant 9.99999974E-6 : f32
    %141 = vector.broadcast %cst_132 : f32 to vector<1x24xf32>
    %142 = arith.addf %138, %141 : vector<1x24xf32>
    %143 = math.rsqrt %142 : vector<1x24xf32>
    %144 = vector.broadcast %143 : vector<1x24xf32> to vector<96x24xf32>
    %145 = arith.mulf %140, %144 : vector<96x24xf32>
    %146 = vector.broadcast %126 : vector<1x24xf32> to vector<96x24xf32>
    %147 = arith.mulf %145, %146 : vector<96x24xf32>
    %148 = vector.broadcast %127 : vector<1x24xf32> to vector<96x24xf32>
    %149 = arith.addf %147, %148 : vector<96x24xf32>
    %cst_133 = arith.constant 0.000000e+00 : f32
    %150 = vector.broadcast %cst_133 : f32 to vector<96x24xf32>
    %151 = arith.maximumf %149, %150 : vector<96x24xf32>
    %152 = vector.shape_cast %151 : vector<96x24xf32> to vector<2x6x8x24xf32>
    %c0_134 = arith.constant 0 : index
    %c0_135 = arith.constant 0 : index
    %c0_136 = arith.constant 0 : index
    %c0_137 = arith.constant 0 : index
    %153 = vector.load %arg6[%c0_134, %c0_135, %c0_136, %c0_137] : memref<2x6x8x24xf32, #tpu.memory_space<vmem>>, vector<2x6x8x24xf32>
    tpu.vector_store %arg6[%c0_134, %c0_135, %c0_136, %c0_137], %152 {strides = array<i32>} : memref<2x6x8x24xf32, #tpu.memory_space<vmem>>, vector<2x6x8x24xf32>,
    %c0_138 = arith.constant 0 : index
    %c0_139 = arith.constant 0 : index
    %c0_140 = arith.constant 0 : index
    %c0_141 = arith.constant 0 : index
    %154 = vector.load %arg6[%c0_138, %c0_139, %c0_140, %c0_141] : memref<2x6x8x24xf32, #tpu.memory_space<vmem>>, vector<2x4x6x24xf32>
    %c0_142 = arith.constant 0 : index
    %c0_143 = arith.constant 0 : index
    %c1_144 = arith.constant 1 : index
    %c0_145 = arith.constant 0 : index
    %155 = vector.load %arg6[%c0_142, %c0_143, %c1_144, %c0_145] : memref<2x6x8x24xf32, #tpu.memory_space<vmem>>, vector<2x4x6x24xf32>
    %156 = arith.maximumf %154, %155 : vector<2x4x6x24xf32>
    %c0_146 = arith.constant 0 : index
    %c0_147 = arith.constant 0 : index
    %c2_148 = arith.constant 2 : index
    %c0_149 = arith.constant 0 : index
    %157 = vector.load %arg6[%c0_146, %c0_147, %c2_148, %c0_149] : memref<2x6x8x24xf32, #tpu.memory_space<vmem>>, vector<2x4x6x24xf32>
    %158 = arith.maximumf %156, %157 : vector<2x4x6x24xf32>
    %c0_150 = arith.constant 0 : index
    %c1_151 = arith.constant 1 : index
    %c0_152 = arith.constant 0 : index
    %c0_153 = arith.constant 0 : index
    %159 = vector.load %arg6[%c0_150, %c1_151, %c0_152, %c0_153] : memref<2x6x8x24xf32, #tpu.memory_space<vmem>>, vector<2x4x6x24xf32>
    %160 = arith.maximumf %158, %159 : vector<2x4x6x24xf32>
    %c0_154 = arith.constant 0 : index
    %c1_155 = arith.constant 1 : index
    %c1_156 = arith.constant 1 : index
    %c0_157 = arith.constant 0 : index
    %161 = vector.load %arg6[%c0_154, %c1_155, %c1_156, %c0_157] : memref<2x6x8x24xf32, #tpu.memory_space<vmem>>, vector<2x4x6x24xf32>
    %162 = arith.maximumf %160, %161 : vector<2x4x6x24xf32>
    %c0_158 = arith.constant 0 : index
    %c1_159 = arith.constant 1 : index
    %c2_160 = arith.constant 2 : index
    %c0_161 = arith.constant 0 : index
    %163 = vector.load %arg6[%c0_158, %c1_159, %c2_160, %c0_161] : memref<2x6x8x24xf32, #tpu.memory_space<vmem>>, vector<2x4x6x24xf32>
    %164 = arith.maximumf %162, %163 : vector<2x4x6x24xf32>
    %c0_162 = arith.constant 0 : index
    %c2_163 = arith.constant 2 : index
    %c0_164 = arith.constant 0 : index
    %c0_165 = arith.constant 0 : index
    %165 = vector.load %arg6[%c0_162, %c2_163, %c0_164, %c0_165] : memref<2x6x8x24xf32, #tpu.memory_space<vmem>>, vector<2x4x6x24xf32>
    %166 = arith.maximumf %164, %165 : vector<2x4x6x24xf32>
    %c0_166 = arith.constant 0 : index
    %c2_167 = arith.constant 2 : index
    %c1_168 = arith.constant 1 : index
    %c0_169 = arith.constant 0 : index
    %167 = vector.load %arg6[%c0_166, %c2_167, %c1_168, %c0_169] : memref<2x6x8x24xf32, #tpu.memory_space<vmem>>, vector<2x4x6x24xf32>
    %168 = arith.maximumf %166, %167 : vector<2x4x6x24xf32>
    %c0_170 = arith.constant 0 : index
    %c2_171 = arith.constant 2 : index
    %c2_172 = arith.constant 2 : index
    %c0_173 = arith.constant 0 : index
    %169 = vector.load %arg6[%c0_170, %c2_171, %c2_172, %c0_173] : memref<2x6x8x24xf32, #tpu.memory_space<vmem>>, vector<2x4x6x24xf32>
    %170 = arith.maximumf %168, %169 : vector<2x4x6x24xf32>
    %c0_174 = arith.constant 0 : index
    %c0_175 = arith.constant 0 : index
    %c0_176 = arith.constant 0 : index
    %c0_177 = arith.constant 0 : index
    %171 = vector.load %arg7[%c0_174, %c0_175, %c0_176, %c0_177] : memref<2x4x8x24xf32, #tpu.memory_space<vmem>>, vector<2x4x6x24xf32>
    tpu.vector_store %arg7[%c0_174, %c0_175, %c0_176, %c0_177], %170 {strides = array<i32>} : memref<2x4x8x24xf32, #tpu.memory_space<vmem>>, vector<2x4x6x24xf32>,
    %cst_178 = arith.constant 0.000000e+00 : f32
    %172 = vector.broadcast %cst_178 : f32 to vector<2x4x2x24xf32>
    %c0_179 = arith.constant 0 : index
    %c0_180 = arith.constant 0 : index
    %c6 = arith.constant 6 : index
    %c0_181 = arith.constant 0 : index
    %173 = vector.load %arg7[%c0_179, %c0_180, %c6, %c0_181] : memref<2x4x8x24xf32, #tpu.memory_space<vmem>>, vector<2x4x2x24xf32>
    tpu.vector_store %arg7[%c0_179, %c0_180, %c6, %c0_181], %172 {strides = array<i32>} : memref<2x4x8x24xf32, #tpu.memory_space<vmem>>, vector<2x4x2x24xf32>,
    %c0_182 = arith.constant 0 : index
    %c0_183 = arith.constant 0 : index
    %c0_184 = arith.constant 0 : index
    %c0_185 = arith.constant 0 : index
    %174 = vector.load %arg7[%c0_182, %c0_183, %c0_184, %c0_185] : memref<2x4x8x24xf32, #tpu.memory_space<vmem>>, vector<2x4x8x24xf32>
    %175 = vector.shape_cast %174 : vector<2x4x8x24xf32> to vector<64x24xf32>
    %c136 = arith.constant 136 : index
    %c0_186 = arith.constant 0 : index
    %176 = vector.load %arg1[%c136, %c0_186] : memref<304x24xf32, #tpu.memory_space<vmem>>, vector<24x12xf32>
    %cst_187 = arith.constant dense<0.000000e+00> : vector<64x12xf32>
    %177 = tpu.matmul %175, %176, %cst_187 {dimension_numbers = #tpu.dot_dimension_numbers<[1], [0], [0], [1], [0, 0, 1, 1], [], []>} : vector<64x24xf32>, vector<24x12xf32>, vector<64x12xf32> -> vector<64x12xf32>
    %c4 = arith.constant 4 : index
    %c0_188 = arith.constant 0 : index
    %178 = vector.load %arg2[%c4, %c0_188] : memref<16x24xf32, #tpu.memory_space<vmem>>, vector<1x12xf32>
    %c5 = arith.constant 5 : index
    %c0_189 = arith.constant 0 : index
    %179 = vector.load %arg2[%c5, %c0_189] : memref<16x24xf32, #tpu.memory_space<vmem>>, vector<1x12xf32>
    %cst_190 = arith.constant dense<0.000000e+00> : vector<12xf32>
    %180 = vector.multi_reduction <add>, %177, %cst_190 [0] : vector<64x12xf32> to vector<12xf32>
    %181 = vector.shape_cast %180 : vector<12xf32> to vector<1x12xf32>
    %cst_191 = arith.constant 0.020833334 : f32
    %182 = vector.broadcast %cst_191 : f32 to vector<1x12xf32>
    %183 = arith.mulf %181, %182 : vector<1x12xf32>
    %184 = vector.broadcast %183 : vector<1x12xf32> to vector<64x12xf32>
    %185 = arith.subf %177, %184 : vector<64x12xf32>
    %186 = arith.mulf %185, %177 : vector<64x12xf32>
    %cst_192 = arith.constant dense<0.000000e+00> : vector<12xf32>
    %187 = vector.multi_reduction <add>, %186, %cst_192 [0] : vector<64x12xf32> to vector<12xf32>
    %188 = vector.shape_cast %187 : vector<12xf32> to vector<1x12xf32>
    %cst_193 = arith.constant 0.020833334 : f32
    %189 = vector.broadcast %cst_193 : f32 to vector<1x12xf32>
    %190 = arith.mulf %188, %189 : vector<1x12xf32>
    %191 = vector.broadcast %183 : vector<1x12xf32> to vector<64x12xf32>
    %192 = arith.subf %177, %191 : vector<64x12xf32>
    %cst_194 = arith.constant 9.99999974E-6 : f32
    %193 = vector.broadcast %cst_194 : f32 to vector<1x12xf32>
    %194 = arith.addf %190, %193 : vector<1x12xf32>
    %195 = math.rsqrt %194 : vector<1x12xf32>
    %196 = vector.broadcast %195 : vector<1x12xf32> to vector<64x12xf32>
    %197 = arith.mulf %192, %196 : vector<64x12xf32>
    %198 = vector.broadcast %178 : vector<1x12xf32> to vector<64x12xf32>
    %199 = arith.mulf %197, %198 : vector<64x12xf32>
    %200 = vector.broadcast %179 : vector<1x12xf32> to vector<64x12xf32>
    %201 = arith.addf %199, %200 : vector<64x12xf32>
    %cst_195 = arith.constant 0.000000e+00 : f32
    %202 = vector.broadcast %cst_195 : f32 to vector<64x12xf32>
    %203 = arith.maximumf %201, %202 : vector<64x12xf32>
    %204 = tpu.iota {dimensions = array<i32: 0>} : vector<64x1xi32>
    %c7_i32 = arith.constant 7 : i32
    %205 = vector.broadcast %c7_i32 : i32 to vector<64x1xi32>
    %206 = arith.andi %204, %205 : vector<64x1xi32>
    %c6_i32 = arith.constant 6 : i32
    %207 = vector.broadcast %c6_i32 : i32 to vector<64x1xi32>
    %208 = arith.cmpi slt, %206, %207 : vector<64x1xi32>
    %cst_196 = arith.constant 0.000000e+00 : f32
    %209 = vector.shape_cast %208 : vector<64x1xi1> to vector<64x1xi1>
    %210 = vector.broadcast %209 : vector<64x1xi1> to vector<64x12xi1>
    %211 = vector.broadcast %cst_196 : f32 to vector<64x12xf32>
    %212 = arith.select %210, %203, %211 : vector<64x12xi1>, vector<64x12xf32>
    %c160 = arith.constant 160 : index
    %c0_197 = arith.constant 0 : index
    %213 = vector.load %arg1[%c160, %c0_197] : memref<304x24xf32, #tpu.memory_space<vmem>>, vector<12x4xf32>
    %cst_198 = arith.constant dense<0.000000e+00> : vector<64x4xf32>
    %214 = tpu.matmul %212, %213, %cst_198 {dimension_numbers = #tpu.dot_dimension_numbers<[1], [0], [0], [1], [0, 0, 1, 1], [], []>} : vector<64x12xf32>, vector<12x4xf32>, vector<64x4xf32> -> vector<64x4xf32>
    %c6_199 = arith.constant 6 : index
    %c0_200 = arith.constant 0 : index
    %215 = vector.load %arg2[%c6_199, %c0_200] : memref<16x24xf32, #tpu.memory_space<vmem>>, vector<1x4xf32>
    %c7_201 = arith.constant 7 : index
    %c0_202 = arith.constant 0 : index
    %216 = vector.load %arg2[%c7_201, %c0_202] : memref<16x24xf32, #tpu.memory_space<vmem>>, vector<1x4xf32>
    %cst_203 = arith.constant dense<0.000000e+00> : vector<4xf32>
    %217 = vector.multi_reduction <add>, %214, %cst_203 [0] : vector<64x4xf32> to vector<4xf32>
    %218 = vector.shape_cast %217 : vector<4xf32> to vector<1x4xf32>
    %cst_204 = arith.constant 0.020833334 : f32
    %219 = vector.broadcast %cst_204 : f32 to vector<1x4xf32>
    %220 = arith.mulf %218, %219 : vector<1x4xf32>
    %221 = vector.broadcast %220 : vector<1x4xf32> to vector<64x4xf32>
    %222 = arith.subf %214, %221 : vector<64x4xf32>
    %223 = arith.mulf %222, %214 : vector<64x4xf32>
    %cst_205 = arith.constant dense<0.000000e+00> : vector<4xf32>
    %224 = vector.multi_reduction <add>, %223, %cst_205 [0] : vector<64x4xf32> to vector<4xf32>
    %225 = vector.shape_cast %224 : vector<4xf32> to vector<1x4xf32>
    %cst_206 = arith.constant 0.020833334 : f32
    %226 = vector.broadcast %cst_206 : f32 to vector<1x4xf32>
    %227 = arith.mulf %225, %226 : vector<1x4xf32>
    %228 = vector.broadcast %220 : vector<1x4xf32> to vector<64x4xf32>
    %229 = arith.subf %214, %228 : vector<64x4xf32>
    %cst_207 = arith.constant 9.99999974E-6 : f32
    %230 = vector.broadcast %cst_207 : f32 to vector<1x4xf32>
    %231 = arith.addf %227, %230 : vector<1x4xf32>
    %232 = math.rsqrt %231 : vector<1x4xf32>
    %233 = vector.broadcast %232 : vector<1x4xf32> to vector<64x4xf32>
    %234 = arith.mulf %229, %233 : vector<64x4xf32>
    %235 = vector.broadcast %215 : vector<1x4xf32> to vector<64x4xf32>
    %236 = arith.mulf %234, %235 : vector<64x4xf32>
    %237 = vector.broadcast %216 : vector<1x4xf32> to vector<64x4xf32>
    %238 = arith.addf %236, %237 : vector<64x4xf32>
    %cst_208 = arith.constant 0.000000e+00 : f32
    %239 = vector.broadcast %cst_208 : f32 to vector<64x4xf32>
    %240 = arith.maximumf %238, %239 : vector<64x4xf32>
    %c176 = arith.constant 176 : index
    %c0_209 = arith.constant 0 : index
    %241 = vector.load %arg1[%c176, %c0_209] : memref<304x24xf32, #tpu.memory_space<vmem>>, vector<32x4xf32>
    %242 = tpu.concatenate %241, %241 in 0 : vector<32x4xf32>, vector<32x4xf32> -> vector<64x4xf32>
    %243 = arith.mulf %240, %242 : vector<64x4xf32>
    %cst_210 = arith.constant dense<0.000000e+00> : vector<64xf32>
    %244 = vector.multi_reduction <add>, %243, %cst_210 [1] : vector<64x4xf32> to vector<64xf32>
    %245 = vector.shape_cast %244 : vector<64xf32> to vector<64x1xf32>
    %c208 = arith.constant 208 : index
    %c0_211 = arith.constant 0 : index
    %246 = vector.load %arg1[%c208, %c0_211] : memref<304x24xf32, #tpu.memory_space<vmem>>, vector<32x4xf32>
    %247 = tpu.concatenate %246, %246 in 0 : vector<32x4xf32>, vector<32x4xf32> -> vector<64x4xf32>
    %248 = arith.mulf %240, %247 : vector<64x4xf32>
    %cst_212 = arith.constant dense<0.000000e+00> : vector<64xf32>
    %249 = vector.multi_reduction <add>, %248, %cst_212 [1] : vector<64x4xf32> to vector<64xf32>
    %250 = vector.shape_cast %249 : vector<64xf32> to vector<64x1xf32>
    %c240 = arith.constant 240 : index
    %c0_213 = arith.constant 0 : index
    %251 = vector.load %arg1[%c240, %c0_213] : memref<304x24xf32, #tpu.memory_space<vmem>>, vector<32x4xf32>
    %252 = tpu.concatenate %251, %251 in 0 : vector<32x4xf32>, vector<32x4xf32> -> vector<64x4xf32>
    %253 = arith.mulf %240, %252 : vector<64x4xf32>
    %cst_214 = arith.constant dense<0.000000e+00> : vector<64xf32>
    %254 = vector.multi_reduction <add>, %253, %cst_214 [1] : vector<64x4xf32> to vector<64xf32>
    %255 = vector.shape_cast %254 : vector<64xf32> to vector<64x1xf32>
    %c272 = arith.constant 272 : index
    %c0_215 = arith.constant 0 : index
    %256 = vector.load %arg1[%c272, %c0_215] : memref<304x24xf32, #tpu.memory_space<vmem>>, vector<32x4xf32>
    %257 = tpu.concatenate %256, %256 in 0 : vector<32x4xf32>, vector<32x4xf32> -> vector<64x4xf32>
    %258 = arith.mulf %240, %257 : vector<64x4xf32>
    %cst_216 = arith.constant dense<0.000000e+00> : vector<64xf32>
    %259 = vector.multi_reduction <add>, %258, %cst_216 [1] : vector<64x4xf32> to vector<64xf32>
    %260 = vector.shape_cast %259 : vector<64xf32> to vector<64x1xf32>
    %261 = tpu.concatenate %245, %250, %255, %260 in 1 : vector<64x1xf32>, vector<64x1xf32>, vector<64x1xf32>, vector<64x1xf32> -> vector<64x4xf32>
    %262 = tpu.iota {dimensions = array<i32: 0>} : vector<2x64xi32>
    %263 = tpu.iota {dimensions = array<i32: 1>} : vector<2x64xi32>
    %c32_i32 = arith.constant 32 : i32
    %264 = vector.broadcast %c32_i32 : i32 to vector<2x64xi32>
    %265 = arith.muli %262, %264 : vector<2x64xi32>
    %266 = arith.cmpi sge, %263, %265 : vector<2x64xi32>
    %c32_i32_217 = arith.constant 32 : i32
    %267 = vector.broadcast %c32_i32_217 : i32 to vector<2x64xi32>
    %268 = arith.addi %265, %267 : vector<2x64xi32>
    %269 = arith.cmpi slt, %263, %268 : vector<2x64xi32>
    %270 = arith.andi %266, %269 : vector<2x64xi1>
    %271 = arith.extui %270 : vector<2x64xi1> to vector<2x64xi32>
    %272 = arith.sitofp %271 : vector<2x64xi32> to vector<2x64xf32>
    %cst_218 = arith.constant dense<0.000000e+00> : vector<2x4xf32>
    %273 = tpu.matmul %272, %261, %cst_218 {dimension_numbers = #tpu.dot_dimension_numbers<[1], [0], [0], [1], [0, 0, 1, 1], [], []>} : vector<2x64xf32>, vector<64x4xf32>, vector<2x4xf32> -> vector<2x4xf32>
    %c8_219 = arith.constant 8 : index
    %c0_220 = arith.constant 0 : index
    %274 = vector.load %arg2[%c8_219, %c0_220] : memref<16x24xf32, #tpu.memory_space<vmem>>, vector<1x4xf32>
    %275 = vector.broadcast %274 : vector<1x4xf32> to vector<2x4xf32>
    %276 = arith.addf %273, %275 : vector<2x4xf32>
    %c0_221 = arith.constant 0 : index
    %c0_222 = arith.constant 0 : index
    %277 = vector.load %arg3[%c0_221, %c0_222] : memref<2x4xf32, #tpu.memory_space<vmem>>, vector<2x4xf32>
    tpu.vector_store %arg3[%c0_221, %c0_222], %276 {strides = array<i32>} : memref<2x4xf32, #tpu.memory_space<vmem>>, vector<2x4xf32>,
    return
  }
}

</mosaic_0001>

<bundles_post_ra>
// kernel: complex_net_forward.1
= control target key start
LH: loop header
LB: loop body
LE: loop exit
PB: predicated region body
PF: predicated region fallthrough
CT: control target
= control target key end

     0   :  { %s5432_s16 = smov 4   ;;  %s5433_s17 = smov 2   ;;  %s9108_s0 = inlined_call_operand.vmem [shape: f32[2,9,24,2], index: 0, kind: input, shape index: {}]   ;;  %s9109_s1 = inlined_call_operand.vmem [shape: f32[304,24], index: 1, kind: input, shape index: {}]   ;;  %s9110_s2 = inlined_call_operand.vmem [shape: f32[16,24], index: 2, kind: input, shape index: {}]   ;;  %s9111_s3 = inlined_call_operand.hbm [shape: f32[2,4], index: 3, kind: output, shape index: {}]  }
   0x1   :  { %v71_v0 = vld [vmem:[%s9108_s0 + $0x2] sm:$0xff]  ;;  %v72_v2 = vld [vmem:[%s9108_s0 + $0xa] sm:$0xff]  ;;  %v5496_v5 = vld [vmem:[%s9108_s0 + $0x18] sm:$0xff]  ;;  %s5434_s26 = smov 6  }
   0x2   :  { %v43_v1 = vld [vmem:[%s9108_s0 + $0x1] sm:$0xff]  ;;  %409 = vrot.lane.b32.xlu1 %v71_v0, %s5432_s16  ;;  %v44_v3 = vld [vmem:[%s9108_s0 + $0x9] sm:$0xff]  ;;  %v45_v6 = vld [vmem:[%s9108_s0 + $0x19] sm:$0xff] }
   0x3   :  { %297 = vrot.lane.b32.xlu0 %v43_v1, %s5433_s17  ;;  %v5491_v4 = vld [vmem:[%s9108_s0 + $0x20] sm:$0xff] }
   0x6   :  { %411 = vrot.lane.b32.xlu1 %v72_v2, %s5432_s16 }
   0x7   :  { %299 = vrot.lane.b32.xlu0 %v44_v3, %s5433_s17 }
   0xa   :  { %523 = vrot.lane.b32.xlu1 %v5491_v4, %s5434_s26 }
   0xb   :  { %521 = vrot.lane.b32.xlu0 %v5496_v5, %s5434_s26 }
   0xc   :  { %8 = vsyncpa [#allocation7], 0  ;;  %s5435_s29 = smov 8   ;;  %v4942_v7 = vld [vmem:[%s9108_s0 + $0x1a] sm:$0xff]  ;;  %s5436_s7 = smov 10   ;;  %v5520_v9 = vld [vmem:[%s9108_s0 + $0x30] sm:$0xff] }
   0xd   :  { %v4915_v8 = vld [vmem:[%s9108_s0 + $0x21] sm:$0xff]  ;;  %s5437_s12 = smov 12   ;;  %v4998_v11 = vld [vmem:[%s9108_s0 + $0x31] sm:$0xff]  ;;  %vm1485_vm0 = vcmask 1041408   ;;  %s5438_s23 = smov 14   ;;  %v4999_v17 = vld [vmem:[%s9108_s0 + $0x39] sm:$0xff] }
   0xe   :  { %301 = vrot.lane.b32.xlu1 %v45_v6, %s5433_s17  ;;  %v4943_v10 = vld [vmem:[%s9108_s0 + $0x22] sm:$0xff]  ;;  %v5537_v12 = vld [vmem:[%s9108_s0 + $0x38] sm:$0xff]  ;;  %v1399_v13 = vld [vmem:[%s9109_s1 + $0x10] sm:$0x3]  ;;  %s5439_s5 = smov 16   ;;  %vm9135_vm1 = vcmask 15360  }
   0xf   :  { %633 = vrot.lane.b32.xlu0 %v45_v6, %s5435_s29  ;;  %5211 = vmatprep.subr.msk.mxu0 %vm1485_vm0, %v1399_v13  ;;  %v1398_v14 = vld [vmem:[%s9109_s1 + $0x8] sm:$0xff]  ;;  %v1397_v15 = vld [vmem:[%s9109_s1] sm:$0xff]  ;;  %v5026_v16 = vld [vmem:[%s9108_s0 + $0x32] sm:$0xff]  ;;  %vm9136_vm2 = vcmask 31744   ;;  %vm1223_vm3 = vcmask 48128   ;;  %vm1252_vm4 = vcmask 64512  }
  0x10   :  { %5212 = vmatpush3.msk.msra.mxu0 %vm1485_vm0, %v1399_v13  ;;  %v5027_v18 = vld [vmem:[%s9108_s0 + $0x3a] sm:$0xff]  ;;  %v5574_v19 = vld [vmem:[%s9108_s0 + $0x48] sm:$0xff]  ;;  %v5588_v21 = vld [vmem:[%s9108_s0 + $0x50] sm:$0xff]  ;;  %vm1281_vm5 = vcmask 80896   ;;  %vm1310_vm6 = vcmask 97280   ;;  %vm1339_vm7 = vcmask 113664  }
  0x11   :  { %5213 = vmatprep.subr.mxu0 %v1398_v14  ;;  %v5000_v20 = vld [vmem:[%s9108_s0 + $0x49] sm:$0xff]  ;;  %v5001_v23 = vld [vmem:[%s9108_s0 + $0x51] sm:$0xff]  ;;  %v5616_v25 = vld [vmem:[%s9108_s0 + $0x60] sm:$0xff]  ;;  %vm1368_vm8 = vcmask 130048   ;;  %vm1400_vm9 = vcmask 146432   ;;  %vm9137_vm11 = vcmask 195584  }
  0x12   :  { %745 = vrot.lane.b32.xlu1 %v4942_v7, %s5436_s7  ;;  %5214 = vmatpush3.msra.mxu0 %v1398_v14  ;;  %v5028_v22 = vld [vmem:[%s9108_s0 + $0x4a] sm:$0xff]  ;;  %v5029_v24 = vld [vmem:[%s9108_s0 + $0x52] sm:$0xff]  ;;  %v5002_v26 = vld [vmem:[%s9108_s0 + $0x61] sm:$0xff]  ;;  %s5440_s21 = smov 116   ;;  %s5444_s22 = smov 36  }
  0x13   :  { %635 = vrot.lane.b32.xlu0 %v4915_v8, %s5435_s29  ;;  %5215 = vmatprep.subr.mxu0 %v1397_v15  ;;  %v5630_v27 = vld [vmem:[%s9108_s0 + $0x68] sm:$0xff]  ;;  %v5658_v33 = vld [vmem:[%s9108_s0 + $0x78] sm:$0xff]  ;;  %v5676_v39 = vld [vmem:[%s9108_s0 + $0x80] sm:$0xff]  ;;  %s5445_s24 = smov 48   ;;  %s5446_s8 = smov 60  }
  0x14   :  { %5216 = vmatpush3.msra.mxu0 %v1397_v15  ;;  %v5030_v28 = vld [vmem:[%s9108_s0 + $0x62] sm:$0xff]  ;;  %v5031_v30 = vld [vmem:[%s9108_s0 + $0x6a] sm:$0xff]  ;;  %v5004_v38 = vld [vmem:[%s9108_s0 + $0x79] sm:$0xff]  ;;  %s5447_s18 = smov 72   ;;  %s5448_s25 = smov 84  }
  0x15   :  { %v5003_v29 = vld [vmem:[%s9108_s0 + $0x69] sm:$0xff]  ;;  %v5032_v44 = vld [vmem:[%s9108_s0 + $0x7a] sm:$0xff]  ;;  %s5449_s6 = smov 96  }
  0x16   :  { %413 = vrot.lane.b32.xlu1 %v4942_v7, %s5432_s16  ;;  %v5005_v45 = vld [vmem:[%s9108_s0 + $0x81] sm:$0xff]  ;;  %v5719_v58 = vld [vmem:[%s9108_s0 + $0x90] sm:$0xff]  ;;  %v5750_v13 = vld [vmem:[%s9108_s0 + $0x98] sm:$0xff] }
  0x17   :  { %303 = vrot.lane.b32.xlu0 %v4915_v8, %s5433_s17  ;;  %v5033_v50 = vld [vmem:[%s9108_s0 + $0x82] sm:$0xff] }
  0x18   :  { %v15_v53 = vld [vmem:[%s9108_s0] sm:$0xff]  ;;  %v16_v62 = vld [vmem:[%s9108_s0 + $0x8] sm:$0xff] }
  0x1a   :  { %857 = vrot.lane.b32.xlu1 %v5520_v9, %s5437_s12 }
  0x1b   :  { %747 = vrot.lane.b32.xlu0 %v4943_v10, %s5436_s7 }
  0x1e   :  { %525 = vrot.lane.b32.xlu1 %v5520_v9, %s5434_s26 }
  0x1f   :  { %415 = vrot.lane.b32.xlu0 %v4943_v10, %s5432_s16 }
  0x22   :  { %969 = vrot.lane.b32.xlu1 %v4998_v11, %s5438_s23 }
  0x23   :  { %859 = vrot.lane.b32.xlu0 %v5537_v12, %s5437_s12 }
  0x26   :  { %637 = vrot.lane.b32.xlu1 %v4998_v11, %s5435_s29 }
  0x27   :  { %527 = vrot.lane.b32.xlu0 %v5537_v12, %s5434_s26 }
  0x2a   :  { %1081 = vrot.lane.b32.xlu1 %v5026_v16, %s5439_s5 }
  0x2b   :  { %971 = vrot.lane.b32.xlu0 %v4999_v17, %s5438_s23 }
  0x2e   :  { %639 = vrot.lane.b32.xlu1 %v4999_v17, %s5435_s29 }
  0x2f   :  { %305 = vrot.lane.b32.xlu0 %v4998_v11, %s5433_s17  ;;  %v5006_v11 = vld [vmem:[%s9108_s0 + $0x91] sm:$0xff] }
  0x32   :  { %1083 = vrot.lane.b32.xlu1 %v5027_v18, %s5439_s5 }
  0x33   :  { %749 = vrot.lane.b32.xlu0 %v5026_v16, %s5436_s7 }
  0x36   :  { %417 = vrot.lane.b32.xlu1 %v5026_v16, %s5432_s16 }
  0x37   :  { %307 = vrot.lane.b32.xlu0 %v4999_v17, %s5433_s17 }
  0x3a   :  { %861 = vrot.lane.b32.xlu1 %v5574_v19, %s5437_s12 }
  0x3b   :  { %751 = vrot.lane.b32.xlu0 %v5027_v18, %s5436_s7 }
  0x3e   :  { %529 = vrot.lane.b32.xlu1 %v5574_v19, %s5434_s26 }
  0x3f   :  { %419 = vrot.lane.b32.xlu0 %v5027_v18, %s5432_s16 }
  0x42   :  { %973 = vrot.lane.b32.xlu1 %v5000_v20, %s5438_s23 }
  0x43   :  { %863 = vrot.lane.b32.xlu0 %v5588_v21, %s5437_s12 }
  0x46   :  { %641 = vrot.lane.b32.xlu1 %v5000_v20, %s5435_s29 }
  0x47   :  { %531 = vrot.lane.b32.xlu0 %v5588_v21, %s5434_s26 }
  0x4a   :  { %1085 = vrot.lane.b32.xlu1 %v5028_v22, %s5439_s5 }
  0x4b   :  { %975 = vrot.lane.b32.xlu0 %v5001_v23, %s5438_s23 }
  0x4e   :  { %643 = vrot.lane.b32.xlu1 %v5001_v23, %s5435_s29 }
  0x4f   :  { %309 = vrot.lane.b32.xlu0 %v5000_v20, %s5433_s17 }
  0x52   :  { %1087 = vrot.lane.b32.xlu1 %v5029_v24, %s5439_s5 }
  0x53   :  { %753 = vrot.lane.b32.xlu0 %v5028_v22, %s5436_s7 }
  0x56   :  { %421 = vrot.lane.b32.xlu1 %v5028_v22, %s5432_s16 }
  0x57   :  { %311 = vrot.lane.b32.xlu0 %v5001_v23, %s5433_s17 }
  0x5a   :  { %865 = vrot.lane.b32.xlu1 %v5616_v25, %s5437_s12 }
  0x5b   :  { %755 = vrot.lane.b32.xlu0 %v5029_v24, %s5436_s7 }
  0x5e   :  { %533 = vrot.lane.b32.xlu1 %v5616_v25, %s5434_s26 }
  0x5f   :  { %423 = vrot.lane.b32.xlu0 %v5029_v24, %s5432_s16 }
  0x62   :  { %977 = vrot.lane.b32.xlu1 %v5002_v26, %s5438_s23 }
  0x63   :  { %867 = vrot.lane.b32.xlu0 %v5630_v27, %s5437_s12 }
  0x66   :  { %645 = vrot.lane.b32.xlu1 %v5002_v26, %s5435_s29 }
  0x67   :  { %535 = vrot.lane.b32.xlu0 %v5630_v27, %s5434_s26 }
  0x6a   :  { %1089 = vrot.lane.b32.xlu1 %v5030_v28, %s5439_s5 }
  0x6b   :  { %979 = vrot.lane.b32.xlu0 %v5003_v29, %s5438_s23 }
  0x6e   :  { %647 = vrot.lane.b32.xlu1 %v5003_v29, %s5435_s29 }
  0x6f   :  { %313 = vrot.lane.b32.xlu0 %v5002_v26, %s5433_s17 }
  0x72   :  { %1091 = vrot.lane.b32.xlu1 %v5031_v30, %s5439_s5 }
  0x73   :  { %757 = vrot.lane.b32.xlu0 %v5030_v28, %s5436_s7 }
  0x74   :  { %v410_v31 = vpop.permute.xlu1 %409 }
  0x75   :  { %v298_v32 = vpop.permute.xlu0 %297 }
  0x76   :  { %425 = vrot.lane.b32.xlu1 %v5030_v28, %s5432_s16  ;;  %v1166_v54 = vsel %vm9135_vm1, %v15_v53, %v298_v32  ;;  %v5034_v28 = vld [vmem:[%s9108_s0 + $0x92] sm:$0xff] }
  0x77   :  { %315 = vrot.lane.b32.xlu0 %v5003_v29, %s5433_s17  ;;  %v1195_v57 = vsel %vm9136_vm2, %v1166_v54, %v410_v31  ;;  %v5007_v29 = vld [vmem:[%s9108_s0 + $0x99] sm:$0xff] }
  0x78   :  { %v5660_v34 = vpop.permute.xlu1 %411 }
  0x79   :  { %v300_v35 = vpop.permute.xlu0 %299 }
  0x7a   :  { %869 = vrot.lane.b32.xlu1 %v5658_v33, %s5437_s12  ;;  %v1167_v2 = vsel %vm9135_vm1, %v16_v62, %v300_v35  ;;  %v5035_v35 = vld [vmem:[%s9108_s0 + $0x9a] sm:$0xff] }
  0x7b   :  { %759 = vrot.lane.b32.xlu0 %v5031_v30, %s5436_s7  ;;  %v1196_v10 = vsel %vm9136_vm2, %v1167_v2, %v5660_v34 }
  0x7c   :  { %v5665_v36 = vpop.permute.xlu1 %523 }
  0x7d   :  { %v522_v37 = vpop.permute.xlu0 %521  ;;  %v1225_v14 = vsel %vm1223_vm3, %v1196_v10, %v5665_v36  ;;  %v57_v10 = vld [vmem:[%s9108_s0 + $0xd9] sm:$0xff] }
  0x7e   :  { %537 = vrot.lane.b32.xlu1 %v5658_v33, %s5434_s26  ;;  %v1224_v59 = vsel %vm1223_vm3, %v1195_v57, %v522_v37  ;;  %v5008_v57 = vld [vmem:[%s9108_s0 + $0xa9] sm:$0xff] }
  0x7f   :  { %427 = vrot.lane.b32.xlu0 %v5031_v30, %s5432_s16 }
  0x80   :  { %v5678_v40 = vpop.permute.xlu1 %301 }
  0x81   :  { %v634_v41 = vpop.permute.xlu0 %633 }
  0x82   :  { %981 = vrot.lane.b32.xlu1 %v5004_v38, %s5438_s23  ;;  %v1253_v63 = vsel %vm1252_vm4, %v1224_v59, %v634_v41  ;;  %v4981_v59 = vld [vmem:[%s9108_s0 + $0xb0] sm:$0xff] }
  0x83   :  { %871 = vrot.lane.b32.xlu0 %v5676_v39, %s5437_s12 }
  0x84   :  { %v746_v42 = vpop.permute.xlu1 %745 }
  0x85   :  { %v636_v43 = vpop.permute.xlu0 %635  ;;  %v1282_v0 = vsel %vm1281_vm5, %v1253_v63, %v746_v42  ;;  %v1168_v42 = vsel %vm9135_vm1, %v5496_v5, %v5678_v40 }
  0x86   :  { %649 = vrot.lane.b32.xlu1 %v5004_v38, %s5435_s29  ;;  %v1254_v17 = vsel %vm1252_vm4, %v1225_v14, %v636_v43 }
  0x87   :  { %539 = vrot.lane.b32.xlu0 %v5676_v39, %s5434_s26 }
  0x88   :  { %v5692_v46 = vpop.permute.xlu1 %413 }
  0x89   :  { %v5694_v47 = vpop.permute.xlu0 %303  ;;  %v1197_v43 = vsel %vm9136_vm2, %v1168_v42, %v5692_v46 }
  0x8a   :  { %1093 = vrot.lane.b32.xlu1 %v5032_v44, %s5439_s5 }
  0x8b   :  { %983 = vrot.lane.b32.xlu0 %v5005_v45, %s5438_s23 }
  0x8c   :  { %v858_v48 = vpop.permute.xlu1 %857 }
  0x8d   :  { %v748_v49 = vpop.permute.xlu0 %747  ;;  %v1311_v1 = vsel %vm1310_vm6, %v1282_v0, %v858_v48 }
  0x8e   :  { %651 = vrot.lane.b32.xlu1 %v5005_v45, %s5435_s29  ;;  %v1283_v18 = vsel %vm1281_vm5, %v1254_v17, %v748_v49 }
  0x8f   :  { %317 = vrot.lane.b32.xlu0 %v5004_v38, %s5433_s17 }
  0x90   :  { %v5703_v51 = vpop.permute.xlu1 %525 }
  0x91   :  { %v5705_v52 = vpop.permute.xlu0 %415 }
  0x92   :  { %1095 = vrot.lane.b32.xlu1 %v5033_v50, %s5439_s5 }
  0x93   :  { %761 = vrot.lane.b32.xlu0 %v5032_v44, %s5436_s7 }
  0x94   :  { %v970_v55 = vpop.permute.xlu1 %969 }
  0x95   :  { %v860_v56 = vpop.permute.xlu0 %859  ;;  %v1340_v3 = vsel %vm1339_vm7, %v1311_v1, %v970_v55  ;;  %v1169_v55 = vsel %vm9135_vm1, %v5491_v4, %v5694_v47 }
  0x96   :  { %429 = vrot.lane.b32.xlu1 %v5032_v44, %s5432_s16  ;;  %v1312_v20 = vsel %vm1310_vm6, %v1283_v18, %v860_v56  ;;  %v4980_v44 = vld [vmem:[%s9108_s0 + $0xa8] sm:$0xff]  ;;  %v1198_v56 = vsel %vm9136_vm2, %v1169_v55, %v5705_v52 }
  0x97   :  { %319 = vrot.lane.b32.xlu0 %v5005_v45, %s5433_s17  ;;  %v1226_v45 = vsel %vm1223_vm3, %v1197_v43, %v5703_v51 }
  0x98   :  { %v5722_v60 = vpop.permute.xlu1 %637 }
  0x99   :  { %v5724_v61 = vpop.permute.xlu0 %527  ;;  %v1255_v5 = vsel %vm1252_vm4, %v1226_v45, %v5722_v60 }
  0x9a   :  { %873 = vrot.lane.b32.xlu1 %v5719_v58, %s5437_s12  ;;  %v1227_v4 = vsel %vm1223_vm3, %v1198_v56, %v5724_v61 }
  0x9b   :  { %763 = vrot.lane.b32.xlu0 %v5033_v50, %s5436_s7 }
  0x9c   :  { %v1082_v6 = vpop.permute.xlu1 %1081 }
  0x9d   :  { %v972_v7 = vpop.permute.xlu0 %971  ;;  %v1369_v8 = vsel %vm1368_vm8, %v1340_v3, %v1082_v6  ;;  %v5036_v3 = vld [vmem:[%s9108_s0 + $0xaa] sm:$0xff] }
  0x9e   :  { %541 = vrot.lane.b32.xlu1 %v5719_v58, %s5434_s26  ;;  %5217 = vmatprep.mubr.msk.f32.mxu0 %vm1400_vm9, %v1369_v8  ;;  %v1341_v22 = vsel %vm1339_vm7, %v1312_v20, %v972_v7  ;;  %v5009_v6 = vld [vmem:[%s9108_s0 + $0xb1] sm:$0xff]  ;;  %v85_v20 = vld [vmem:[%s9108_s0 + $0xda] sm:$0xff] }
  0x9f   :  { %431 = vrot.lane.b32.xlu0 %v5033_v50, %s5432_s16 }
  0xa0   :  { %v640_v15 = vpop.permute.xlu1 %639 }
  0xa1   :  { %v5754_v16 = vpop.permute.xlu0 %305  ;;  %v1256_v62 = vsel %vm1252_vm4, %v1227_v4, %v640_v15  ;;  %v5037_v15 = vld [vmem:[%s9108_s0 + $0xb2] sm:$0xff]  ;;  %v5011_v4 = vld [vmem:[%s9108_s0 + $0xc9] sm:$0xff] }
  0xa2   :  { %985 = vrot.lane.b32.xlu1 %v5006_v11, %s5438_s23 }
  0xa3   :  { %875 = vrot.lane.b32.xlu0 %v5750_v13, %s5437_s12 }
  0xa4   :  { %v1084_v23 = vpop.permute.xlu1 %1083 }
  0xa5   :  { %v750_v24 = vpop.permute.xlu0 %749  ;;  %v1370_v26 = vsel %vm1368_vm8, %v1341_v22, %v1084_v23  ;;  %v58_v22 = vld [vmem:[%s9108_s0 + $0xe1] sm:$0xff] }
  0xa6   :  { %653 = vrot.lane.b32.xlu1 %v5006_v11, %s5435_s29  ;;  %5218 = vmatmul.mubr.msk.f32.vlgmr.msra.gmra.mxu0 %vm1400_vm9, %v1370_v26  ;;  %v1284_v40 = vsel %vm1281_vm5, %v1255_v5, %v750_v24  ;;  %v1170_v26 = vsel %vm9135_vm1, %v5520_v9, %v5754_v16  ;;  %v5010_v5 = vld [vmem:[%s9108_s0 + $0xc1] sm:$0xff] }
  0xa7   :  { %543 = vrot.lane.b32.xlu0 %v5750_v13, %s5434_s26 }
  0xa8   :  { %v5774_v30 = vpop.permute.xlu1 %417 }
  0xa9   :  { %v5776_v31 = vpop.permute.xlu0 %307 }
  0xaa   :  { %1097 = vrot.lane.b32.xlu1 %v5034_v28, %s5439_s5  ;;  %v1171_v45 = vsel %vm9135_vm1, %v5537_v12, %v5776_v31 }
  0xab   :  { %987 = vrot.lane.b32.xlu0 %v5007_v29, %s5438_s23 }
  0xac   :  { %v862_v32 = vpop.permute.xlu1 %861 }
  0xad   :  { %v752_v34 = vpop.permute.xlu0 %751  ;;  %v1313_v46 = vsel %vm1310_vm6, %v1284_v40, %v862_v32  ;;  %v4983_v40 = vld [vmem:[%s9108_s0 + $0xc8] sm:$0xff] }
  0xae   :  { %655 = vrot.lane.b32.xlu1 %v5007_v29, %s5435_s29  ;;  %v1285_v52 = vsel %vm1281_vm5, %v1256_v62, %v752_v34 }
  0xaf   :  { %321 = vrot.lane.b32.xlu0 %v5006_v11, %s5433_s17 }
  0xb0   :  { %v5785_v36 = vpop.permute.xlu1 %529 }
  0xb1   :  { %v5787_v37 = vpop.permute.xlu0 %419 }
  0xb2   :  { %1099 = vrot.lane.b32.xlu1 %v5035_v35, %s5439_s5 }
  0xb3   :  { %765 = vrot.lane.b32.xlu0 %v5034_v28, %s5436_s7 }
  0xb4   :  { %v974_v38 = vpop.permute.xlu1 %973 }
  0xb5   :  { %v864_v41 = vpop.permute.xlu0 %863  ;;  %v1342_v50 = vsel %vm1339_vm7, %v1313_v46, %v974_v38  ;;  %v5899_v38 = vld [vmem:[%s9108_s0 + $0xf0] sm:$0xff] }
  0xb6   :  { %433 = vrot.lane.b32.xlu1 %v5034_v28, %s5432_s16  ;;  %v1314_v63 = vsel %vm1310_vm6, %v1285_v52, %v864_v41  ;;  %v1199_v28 = vsel %vm9136_vm2, %v1170_v26, %v5774_v30  ;;  %v4929_v52 = vld [vmem:[%s9108_s0 + $0xf9] sm:$0xff] }
  0xb7   :  { %323 = vrot.lane.b32.xlu0 %v5007_v29, %s5433_s17  ;;  %v4982_v29 = vld [vmem:[%s9108_s0 + $0xc0] sm:$0xff]  ;;  %v1228_v32 = vsel %vm1223_vm3, %v1199_v28, %v5785_v36 }
  0xb8   :  { %v642_v48 = vpop.permute.xlu1 %641  ;;  %v86_v36 = vld [vmem:[%s9108_s0 + $0xe2] sm:$0xff] }
  0xb9   :  { %v5803_v49 = vpop.permute.xlu0 %531  ;;  %v1257_v9 = vsel %vm1252_vm4, %v1228_v32, %v642_v48  ;;  %v1200_v48 = vsel %vm9136_vm2, %v1171_v45, %v5787_v37  ;;  %v5040_v45 = vld [vmem:[%s9108_s0 + $0x10a] sm:$0xff] }
  0xba   :  { %877 = vrot.lane.b32.xlu1 %v4980_v44, %s5437_s12  ;;  %v1229_v12 = vsel %vm1223_vm3, %v1200_v48, %v5803_v49  ;;  %v5939_v49 = vld [vmem:[%s9108_s0 + $0xf8] sm:$0xff] }
  0xbb   :  { %767 = vrot.lane.b32.xlu0 %v5035_v35, %s5436_s7  ;;  %v5013_v48 = vld [vmem:[%s9108_s0 + $0x111] sm:$0xff] }
  0xbc   :  { %v1086_v53 = vpop.permute.xlu1 %1085 }
  0xbd   :  { %v976_v54 = vpop.permute.xlu0 %975  ;;  %v1371_v51 = vsel %vm1368_vm8, %v1342_v50, %v1086_v53 }
  0xbe   :  { %545 = vrot.lane.b32.xlu1 %v4980_v44, %s5434_s26  ;;  %5220 = vmatprep.mubr.msk.f32.mxu0 %vm1400_vm9, %v1371_v51  ;;  %v1343_v0 = vsel %vm1339_vm7, %v1314_v63, %v976_v54  ;;  %v4928_v54 = vld [vmem:[%s9108_s0 + $0xf1] sm:$0xff] }
  0xbf   :  { %435 = vrot.lane.b32.xlu0 %v5035_v35, %s5432_s16 }
  0xc0   :  { %v5829_v47 = vpop.permute.xlu1 %643 }
  0xc1   :  { %v5831_v60 = vpop.permute.xlu0 %309  ;;  %v1258_v37 = vsel %vm1252_vm4, %v1229_v12, %v5829_v47 }
  0xc2   :  { %989 = vrot.lane.b32.xlu1 %v5008_v57, %s5438_s23 }
  0xc3   :  { %879 = vrot.lane.b32.xlu0 %v4981_v59, %s5437_s12 }
  0xc4   :  { %v1088_v1 = vpop.permute.xlu1 %1087 }
  0xc5   :  { %v754_v2 = vpop.permute.xlu0 %753  ;;  %v1372_v61 = vsel %vm1368_vm8, %v1343_v0, %v1088_v1  ;;  %v5039_v1 = vld [vmem:[%s9108_s0 + $0xca] sm:$0xff] }
  0xc6   :  { %657 = vrot.lane.b32.xlu1 %v5008_v57, %s5435_s29  ;;  %5221 = vmatmul.mubr.msk.f32.gmra.mxu0 %vm1400_vm9, %v1372_v61  ;;  %v1286_v16 = vsel %vm1281_vm5, %v1257_v9, %v754_v2  ;;  %v4956_v2 = vld [vmem:[%s9108_s0 + $0xf2] sm:$0xff]  ;;  %v5012_v9 = vld [vmem:[%s9108_s0 + $0x109] sm:$0xff] }
  0xc7   :  { %547 = vrot.lane.b32.xlu0 %v4981_v59, %s5434_s26  ;;  %v5038_v59 = vld [vmem:[%s9108_s0 + $0xc2] sm:$0xff] }
  0xc8   :  { %v5849_v7 = vpop.permute.xlu1 %421 }
  0xc9   :  { %v5851_v8 = vpop.permute.xlu0 %311 }
  0xca   :  { %1101 = vrot.lane.b32.xlu1 %v5036_v3, %s5439_s5  ;;  %v1173_v32 = vsel %vm9135_vm1, %v5588_v21, %v5851_v8 }
  0xcb   :  { %991 = vrot.lane.b32.xlu0 %v5009_v6, %s5438_s23 }
  0xcc   :  { %v866_v11 = vpop.permute.xlu1 %865 }
  0xcd   :  { %v756_v14 = vpop.permute.xlu0 %755  ;;  %v1315_v30 = vsel %vm1310_vm6, %v1286_v16, %v866_v11  ;;  %v1172_v11 = vsel %vm9135_vm1, %v5574_v19, %v5831_v60  ;;  %v6019_v16 = vld [vmem:[%s9108_s0 + $0x110] sm:$0xff] }
  0xce   :  { %659 = vrot.lane.b32.xlu1 %v5009_v6, %s5435_s29  ;;  %v1287_v50 = vsel %vm1281_vm5, %v1258_v37, %v756_v14  ;;  %v1201_v14 = vsel %vm9136_vm2, %v1172_v11, %v5849_v7  ;;  %v5041_v37 = vld [vmem:[%s9108_s0 + $0x112] sm:$0xff]  ;;  %v6100_v11 = vld [vmem:[%s9108_s0 + $0x128] sm:$0xff] }
  0xcf   :  { %325 = vrot.lane.b32.xlu0 %v57_v10, %s5433_s17 }
  0xd0   :  { %v5863_v17 = vpop.permute.xlu1 %533 }
  0xd1   :  { %v5865_v18 = vpop.permute.xlu0 %423 }
  0xd2   :  { %1103 = vrot.lane.b32.xlu1 %v5037_v15, %s5439_s5 }
  0xd3   :  { %769 = vrot.lane.b32.xlu0 %v5036_v3, %s5436_s7 }
  0xd4   :  { %v978_v23 = vpop.permute.xlu1 %977 }
  0xd5   :  { %v868_v24 = vpop.permute.xlu0 %867  ;;  %v1344_v41 = vsel %vm1339_vm7, %v1315_v30, %v978_v23 }
  0xd6   :  { %437 = vrot.lane.b32.xlu1 %v85_v20, %s5432_s16  ;;  %v1316_v53 = vsel %vm1310_vm6, %v1287_v50, %v868_v24  ;;  %v4957_v20 = vld [vmem:[%s9108_s0 + $0xfa] sm:$0xff] }
  0xd7   :  { %327 = vrot.lane.b32.xlu0 %v58_v22, %s5433_s17  ;;  %v1230_v22 = vsel %vm1223_vm3, %v1201_v14, %v5863_v17 }
  0xd8   :  { %v5887_v34 = vpop.permute.xlu1 %645 }
  0xd9   :  { %v5889_v35 = vpop.permute.xlu0 %535  ;;  %v1259_v23 = vsel %vm1252_vm4, %v1230_v22, %v5887_v34  ;;  %v1202_v34 = vsel %vm9136_vm2, %v1173_v32, %v5865_v18 }
  0xda   :  { %881 = vrot.lane.b32.xlu1 %v4982_v29, %s5437_s12  ;;  %v1231_v21 = vsel %vm1223_vm3, %v1202_v34, %v5889_v35  ;;  %v5043_v34 = vld [vmem:[%s9108_s0 + $0x12a] sm:$0xff] }
  0xdb   :  { %771 = vrot.lane.b32.xlu0 %v5037_v15, %s5436_s7  ;;  %v5986_v15 = vld [vmem:[%s9108_s0 + $0x108] sm:$0xff] }
  0xdc   :  { %v1090_v42 = vpop.permute.xlu1 %1089 }
  0xdd   :  { %v980_v43 = vpop.permute.xlu0 %979  ;;  %v1373_v44 = vsel %vm1368_vm8, %v1344_v41, %v1090_v42 }
  0xde   :  { %549 = vrot.lane.b32.xlu1 %v5899_v38, %s5434_s26  ;;  %5223 = vmatprep.mubr.msk.f32.mxu0 %vm1400_vm9, %v1373_v44  ;;  %v1345_v51 = vsel %vm1339_vm7, %v1316_v53, %v980_v43 }
  0xdf   :  { %439 = vrot.lane.b32.xlu0 %v86_v36, %s5432_s16 }
  0xe0   :  { %v5923_v31 = vpop.permute.xlu1 %647 }
  0xe1   :  { %v5925_v46 = vpop.permute.xlu0 %313  ;;  %v1260_v18 = vsel %vm1252_vm4, %v1231_v21, %v5923_v31 }
  0xe2   :  { %993 = vrot.lane.b32.xlu1 %v5010_v5, %s5438_s23 }
  0xe3   :  { %883 = vrot.lane.b32.xlu0 %v4983_v40, %s5437_s12 }
  0xe4   :  { %v1092_v55 = vpop.permute.xlu1 %1091 }
  0xe5   :  { %v758_v56 = vpop.permute.xlu0 %757  ;;  %v1374_v57 = vsel %vm1368_vm8, %v1345_v51, %v1092_v55  ;;  %v1174_v55 = vsel %vm9135_vm1, %v5616_v25, %v5925_v46 }
  0xe6   :  { %661 = vrot.lane.b32.xlu1 %v4928_v54, %s5435_s29  ;;  %5224 = vmatmul.mubr.msk.f32.gmra.mxu0 %vm1400_vm9, %v1374_v57  ;;  %v1288_v7 = vsel %vm1281_vm5, %v1259_v23, %v758_v56  ;;  %v6071_v57 = vld [vmem:[%s9108_s0 + $0x120] sm:$0xff] }
  0xe7   :  { %551 = vrot.lane.b32.xlu0 %v5939_v49, %s5434_s26 }
  0xe8   :  { %v5953_v47 = vpop.permute.xlu1 %425 }
  0xe9   :  { %v5955_v62 = vpop.permute.xlu0 %315  ;;  %v1203_v56 = vsel %vm9136_vm2, %v1174_v55, %v5953_v47 }
  0xea   :  { %1105 = vrot.lane.b32.xlu1 %v5038_v59, %s5439_s5 }
  0xeb   :  { %995 = vrot.lane.b32.xlu0 %v5011_v4, %s5438_s23 }
  0xec   :  { %v870_v63 = vpop.permute.xlu1 %869 }
  0xed   :  { %v760_v0 = vpop.permute.xlu0 %759  ;;  %v1317_v24 = vsel %vm1310_vm6, %v1288_v7, %v870_v63 }
  0xee   :  { %663 = vrot.lane.b32.xlu1 %v4929_v52, %s5435_s29  ;;  %v1289_v36 = vsel %vm1281_vm5, %v1260_v18, %v760_v0 }
  0xef   :  { %329 = vrot.lane.b32.xlu0 %v4928_v54, %s5433_s17 }
  0xf0   :  { %v5970_v61 = vpop.permute.xlu1 %537 }
  0xf1   :  { %v5972_v3 = vpop.permute.xlu0 %427  ;;  %v1232_v59 = vsel %vm1223_vm3, %v1203_v56, %v5970_v61  ;;  %v1175_v61 = vsel %vm9135_vm1, %v5630_v27, %v5955_v62 }
  0xf2   :  { %1107 = vrot.lane.b32.xlu1 %v5039_v1, %s5439_s5 }
  0xf3   :  { %773 = vrot.lane.b32.xlu0 %v4956_v2, %s5436_s7 }
  0xf4   :  { %v982_v6 = vpop.permute.xlu1 %981 }
  0xf5   :  { %v872_v10 = vpop.permute.xlu0 %871  ;;  %v1346_v26 = vsel %vm1339_vm7, %v1317_v24, %v982_v6  ;;  %v1204_v6 = vsel %vm9136_vm2, %v1175_v61, %v5972_v3  ;;  %v5042_v24 = vld [vmem:[%s9108_s0 + $0x122] sm:$0xff] }
  0xf6   :  { %441 = vrot.lane.b32.xlu1 %v4956_v2, %s5432_s16  ;;  %v1318_v41 = vsel %vm1310_vm6, %v1289_v36, %v872_v10  ;;  %v5014_v10 = vld [vmem:[%s9108_s0 + $0x121] sm:$0xff] }
  0xf7   :  { %331 = vrot.lane.b32.xlu0 %v4929_v52, %s5433_s17 }
  0xf8   :  { %v650_v19 = vpop.permute.xlu1 %649 }
  0xf9   :  { %v5993_v60 = vpop.permute.xlu0 %539  ;;  %v1261_v25 = vsel %vm1252_vm4, %v1232_v59, %v650_v19 }
  0xfa   :  { %885 = vrot.lane.b32.xlu1 %v5986_v15, %s5437_s12  ;;  %v1233_v27 = vsel %vm1223_vm3, %v1204_v6, %v5993_v60  ;;  %v5045_v6 = vld [vmem:[%s9108_s0 + $0x142] sm:$0xff] }
  0xfb   :  { %775 = vrot.lane.b32.xlu0 %v4957_v20, %s5436_s7 }
  0xfc   :  { %v1094_v28 = vpop.permute.xlu1 %1093 }
  0xfd   :  { %v984_v29 = vpop.permute.xlu0 %983  ;;  %v1375_v17 = vsel %vm1368_vm8, %v1346_v26, %v1094_v28  ;;  %v5015_v26 = vld [vmem:[%s9108_s0 + $0x129] sm:$0xff] }
  0xfe   :  { %553 = vrot.lane.b32.xlu1 %v5986_v15, %s5434_s26  ;;  %5226 = vmatprep.mubr.msk.f32.mxu0 %vm1400_vm9, %v1375_v17  ;;  %v1347_v42 = vsel %vm1339_vm7, %v1318_v41, %v984_v29 }
  0xff   :  { %443 = vrot.lane.b32.xlu0 %v4957_v20, %s5432_s16 }
 0x100   :  { %v652_v8 = vpop.permute.xlu1 %651 }
 0x101   :  { %v6023_v30 = vpop.permute.xlu0 %317  ;;  %v1262_v20 = vsel %vm1252_vm4, %v1233_v27, %v652_v8 }
 0x102   :  { %997 = vrot.lane.b32.xlu1 %v5012_v9, %s5438_s23  ;;  %v1176_v36 = vsel %vm9135_vm1, %v5658_v33, %v6023_v30 }
 0x103   :  { %887 = vrot.lane.b32.xlu0 %v6019_v16, %s5437_s12 }
 0x104   :  { %v1096_v43 = vpop.permute.xlu1 %1095 }
 0x105   :  { %v762_v44 = vpop.permute.xlu0 %761  ;;  %v1376_v35 = vsel %vm1368_vm8, %v1347_v42, %v1096_v43  ;;  %v6151_v42 = vld [vmem:[%s9108_s0 + $0x138] sm:$0xff] }
 0x106   :  { %665 = vrot.lane.b32.xlu1 %v5012_v9, %s5435_s29  ;;  %5227 = vmatmul.mubr.msk.f32.gmra.mxu0 %vm1400_vm9, %v1376_v35  ;;  %v1290_v46 = vsel %vm1281_vm5, %v1261_v25, %v762_v44 }
 0x107   :  { %555 = vrot.lane.b32.xlu0 %v6019_v16, %s5434_s26 }
 0x108   :  { %v6044_v5 = vpop.permute.xlu1 %429 }
 0x109   :  { %v6046_v40 = vpop.permute.xlu0 %319  ;;  %v1205_v41 = vsel %vm9136_vm2, %v1176_v36, %v6044_v5 }
 0x10a   :  { %1109 = vrot.lane.b32.xlu1 %v5040_v45, %s5439_s5 }
 0x10b   :  { %999 = vrot.lane.b32.xlu0 %v5013_v48, %s5438_s23 }
 0x10c   :  { %v874_v12 = vpop.permute.xlu1 %873 }
 0x10d   :  { %v764_v31 = vpop.permute.xlu0 %763  ;;  %v1319_v47 = vsel %vm1310_vm6, %v1290_v46, %v874_v12 }
 0x10e   :  { %667 = vrot.lane.b32.xlu1 %v5013_v48, %s5435_s29  ;;  %v1291_v3 = vsel %vm1281_vm5, %v1262_v20, %v764_v31 }
 0x10f   :  { %333 = vrot.lane.b32.xlu0 %v5012_v9, %s5433_s17 }
 0x110   :  { %v6055_v50 = vpop.permute.xlu1 %541 }
 0x111   :  { %v6057_v53 = vpop.permute.xlu0 %431  ;;  %v1234_v43 = vsel %vm1223_vm3, %v1205_v41, %v6055_v50 }
 0x112   :  { %1111 = vrot.lane.b32.xlu1 %v5041_v37, %s5439_s5 }
 0x113   :  { %777 = vrot.lane.b32.xlu0 %v5040_v45, %s5436_s7 }
 0x114   :  { %v986_v54 = vpop.permute.xlu1 %985 }
 0x115   :  { %v876_v51 = vpop.permute.xlu0 %875  ;;  %v1348_v63 = vsel %vm1339_vm7, %v1319_v47, %v986_v54  ;;  %v5016_v54 = vld [vmem:[%s9108_s0 + $0x139] sm:$0xff] }
 0x116   :  { %445 = vrot.lane.b32.xlu1 %v5040_v45, %s5432_s16  ;;  %v1320_v22 = vsel %vm1310_vm6, %v1291_v3, %v876_v51  ;;  %v6180_v51 = vld [vmem:[%s9108_s0 + $0x140] sm:$0xff] }
 0x117   :  { %335 = vrot.lane.b32.xlu0 %v5013_v48, %s5433_s17  ;;  %v5044_v47 = vld [vmem:[%s9108_s0 + $0x13a] sm:$0xff] }
 0x118   :  { %v654_v4 = vpop.permute.xlu1 %653 }
 0x119   :  { %v6075_v52 = vpop.permute.xlu0 %543  ;;  %v1263_v33 = vsel %vm1252_vm4, %v1234_v43, %v654_v4 }
 0x11a   :  { %889 = vrot.lane.b32.xlu1 %v6071_v57, %s5437_s12 }
 0x11b   :  { %779 = vrot.lane.b32.xlu0 %v5041_v37, %s5436_s7 }
 0x11c   :  { %v1098_v0 = vpop.permute.xlu1 %1097 }
 0x11d   :  { %v988_v1 = vpop.permute.xlu0 %987  ;;  %v1377_v2 = vsel %vm1368_vm8, %v1348_v63, %v1098_v0  ;;  %v5017_v63 = vld [vmem:[%s9108_s0 + $0x141] sm:$0xff] }
 0x11e   :  { %557 = vrot.lane.b32.xlu1 %v6071_v57, %s5434_s26  ;;  %5229 = vmatprep.mubr.msk.f32.mxu0 %vm1400_vm9, %v1377_v2  ;;  %v1349_v19 = vsel %vm1339_vm7, %v1320_v22, %v988_v1 }
 0x11f   :  { %447 = vrot.lane.b32.xlu0 %v5041_v37, %s5432_s16  ;;  %v1177_v37 = vsel %vm9135_vm1, %v5676_v39, %v6046_v40 }
 0x120   :  { %v656_v62 = vpop.permute.xlu1 %655  ;;  %v1206_v50 = vsel %vm9136_vm2, %v1177_v37, %v6057_v53 }
 0x121   :  { %v6104_v14 = vpop.permute.xlu0 %321  ;;  %v1235_v39 = vsel %vm1223_vm3, %v1206_v50, %v6075_v52  ;;  %v5047_v50 = vld [vmem:[%s9108_s0 + $0x15a] sm:$0xff] }
 0x122   :  { %1001 = vrot.lane.b32.xlu1 %v5014_v10, %s5438_s23  ;;  %v1264_v56 = vsel %vm1252_vm4, %v1235_v39, %v656_v62  ;;  %v1178_v3 = vsel %vm9135_vm1, %v5719_v58, %v6104_v14 }
 0x123   :  { %891 = vrot.lane.b32.xlu0 %v6100_v11, %s5437_s12 }
 0x124   :  { %v1100_v23 = vpop.permute.xlu1 %1099 }
 0x125   :  { %v766_v7 = vpop.permute.xlu0 %765  ;;  %v1378_v60 = vsel %vm1368_vm8, %v1349_v19, %v1100_v23  ;;  %v6231_v19 = vld [vmem:[%s9108_s0 + $0x150] sm:$0xff] }
 0x126   :  { %669 = vrot.lane.b32.xlu1 %v5014_v10, %s5435_s29  ;;  %5230 = vmatmul.mubr.msk.f32.gmra.mxu0 %vm1400_vm9, %v1378_v60  ;;  %v1292_v30 = vsel %vm1281_vm5, %v1263_v33, %v766_v7 }
 0x127   :  { %559 = vrot.lane.b32.xlu0 %v6100_v11, %s5434_s26 }
 0x128   :  { %v6124_v28 = vpop.permute.xlu1 %433 }
 0x129   :  { %v6126_v29 = vpop.permute.xlu0 %323  ;;  %v1207_v22 = vsel %vm9136_vm2, %v1178_v3, %v6124_v28 }
 0x12a   :  { %1113 = vrot.lane.b32.xlu1 %v5042_v24, %s5439_s5 }
 0x12b   :  { %1003 = vrot.lane.b32.xlu0 %v5015_v26, %s5438_s23 }
 0x12c   :  { %v878_v17 = vpop.permute.xlu1 %877 }
 0x12d   :  { %v768_v32 = vpop.permute.xlu0 %767  ;;  %v1321_v45 = vsel %vm1310_vm6, %v1292_v30, %v878_v17 }
 0x12e   :  { %671 = vrot.lane.b32.xlu1 %v5015_v26, %s5435_s29  ;;  %v1293_v53 = vsel %vm1281_vm5, %v1264_v56, %v768_v32 }
 0x12f   :  { %337 = vrot.lane.b32.xlu0 %v5014_v10, %s5433_s17 }
 0x130   :  { %v6135_v9 = vpop.permute.xlu1 %545 }
 0x131   :  { %v6137_v21 = vpop.permute.xlu0 %435  ;;  %v1236_v23 = vsel %vm1223_vm3, %v1207_v22, %v6135_v9  ;;  %v5020_v22 = vld [vmem:[%s9108_s0 + $0x169] sm:$0xff] }
 0x132   :  { %1115 = vrot.lane.b32.xlu1 %v5043_v34, %s5439_s5 }
 0x133   :  { %781 = vrot.lane.b32.xlu0 %v5042_v24, %s5436_s7 }
 0x134   :  { %v990_v8 = vpop.permute.xlu1 %989 }
 0x135   :  { %v880_v18 = vpop.permute.xlu0 %879  ;;  %v1350_v48 = vsel %vm1339_vm7, %v1321_v45, %v990_v8  ;;  %v5018_v8 = vld [vmem:[%s9108_s0 + $0x151] sm:$0xff] }
 0x136   :  { %449 = vrot.lane.b32.xlu1 %v5042_v24, %s5432_s16  ;;  %v1322_v59 = vsel %vm1310_vm6, %v1293_v53, %v880_v18  ;;  %v6260_v18 = vld [vmem:[%s9108_s0 + $0x158] sm:$0xff] }
 0x137   :  { %339 = vrot.lane.b32.xlu0 %v5015_v26, %s5433_s17  ;;  %v5046_v45 = vld [vmem:[%s9108_s0 + $0x152] sm:$0xff] }
 0x138   :  { %v658_v44 = vpop.permute.xlu1 %657 }
 0x139   :  { %v6155_v35 = vpop.permute.xlu0 %547  ;;  %v1265_v58 = vsel %vm1252_vm4, %v1236_v23, %v658_v44  ;;  %v6344_v23 = vld [vmem:[%s9108_s0 + $0x170] sm:$0xff] }
 0x13a   :  { %893 = vrot.lane.b32.xlu1 %v6151_v42, %s5437_s12 }
 0x13b   :  { %783 = vrot.lane.b32.xlu0 %v5043_v34, %s5436_s7 }
 0x13c   :  { %v1102_v5 = vpop.permute.xlu1 %1101 }
 0x13d   :  { %v992_v12 = vpop.permute.xlu0 %991  ;;  %v1379_v31 = vsel %vm1368_vm8, %v1350_v48, %v1102_v5  ;;  %v5019_v48 = vld [vmem:[%s9108_s0 + $0x159] sm:$0xff] }
 0x13e   :  { %561 = vrot.lane.b32.xlu1 %v6151_v42, %s5434_s26  ;;  %5232 = vmatprep.mubr.msk.f32.mxu0 %vm1400_vm9, %v1379_v31  ;;  %v1351_v4 = vsel %vm1339_vm7, %v1322_v59, %v992_v12 }
 0x13f   :  { %451 = vrot.lane.b32.xlu0 %v5043_v34, %s5432_s16  ;;  %v1179_v34 = vsel %vm9135_vm1, %v5750_v13, %v6126_v29 }
 0x140   :  { %v660_v40 = vpop.permute.xlu1 %659  ;;  %v1208_v9 = vsel %vm9136_vm2, %v1179_v34, %v6137_v21  ;;  %v5021_v34 = vld [vmem:[%s9108_s0 + $0x171] sm:$0xff] }
 0x141   :  { %v6184_v55 = vpop.permute.xlu0 %325  ;;  %v1237_v13 = vsel %vm1223_vm3, %v1208_v9, %v6155_v35 }
 0x142   :  { %1005 = vrot.lane.b32.xlu1 %v5016_v54, %s5438_s23  ;;  %v1266_v41 = vsel %vm1252_vm4, %v1237_v13, %v660_v40  ;;  %v29_v40 = vld [vmem:[%s9108_s0 + $0xd8] sm:$0xff] }
 0x143   :  { %895 = vrot.lane.b32.xlu0 %v6180_v51, %s5437_s12  ;;  %v1180_v59 = vsel %vm9135_vm1, %v29_v40, %v6184_v55 }
 0x144   :  { %v1104_v25 = vpop.permute.xlu1 %1103 }
 0x145   :  { %v770_v46 = vpop.permute.xlu0 %769  ;;  %v1380_v52 = vsel %vm1368_vm8, %v1351_v4, %v1104_v25  ;;  %v6313_v25 = vld [vmem:[%s9108_s0 + $0x168] sm:$0xff] }
 0x146   :  { %673 = vrot.lane.b32.xlu1 %v5016_v54, %s5435_s29  ;;  %5233 = vmatmul.mubr.msk.f32.gmra.mxu0 %vm1400_vm9, %v1380_v52  ;;  %v1294_v14 = vsel %vm1281_vm5, %v1265_v58, %v770_v46 }
 0x147   :  { %563 = vrot.lane.b32.xlu0 %v6180_v51, %s5434_s26 }
 0x148   :  { %v6204_v0 = vpop.permute.xlu1 %437 }
 0x149   :  { %v6206_v1 = vpop.permute.xlu0 %327  ;;  %v1209_v4 = vsel %vm9136_vm2, %v1180_v59, %v6204_v0  ;;  %v30_v0 = vld [vmem:[%s9108_s0 + $0xe0] sm:$0xff] }
 0x14a   :  { %1117 = vrot.lane.b32.xlu1 %v5044_v47, %s5439_s5 }
 0x14b   :  { %1007 = vrot.lane.b32.xlu0 %v5017_v63, %s5438_s23 }
 0x14c   :  { %v882_v2 = vpop.permute.xlu1 %881 }
 0x14d   :  { %v772_v61 = vpop.permute.xlu0 %771  ;;  %v1323_v24 = vsel %vm1310_vm6, %v1294_v14, %v882_v2 }
 0x14e   :  { %675 = vrot.lane.b32.xlu1 %v5017_v63, %s5435_s29  ;;  %v1295_v21 = vsel %vm1281_vm5, %v1266_v41, %v772_v61  ;;  %v5049_v41 = vld [vmem:[%s9108_s0 + $0x172] sm:$0xff] }
 0x14f   :  { %341 = vrot.lane.b32.xlu0 %v5016_v54, %s5433_s17 }
 0x150   :  { %v6215_v10 = vpop.permute.xlu1 %549 }
 0x151   :  { %v6217_v27 = vpop.permute.xlu0 %439  ;;  %v1238_v46 = vsel %vm1223_vm3, %v1209_v4, %v6215_v10  ;;  %v5022_v4 = vld [vmem:[%s9108_s0 + $0x181] sm:$0xff] }
 0x152   :  { %1119 = vrot.lane.b32.xlu1 %v5045_v6, %s5439_s5 }
 0x153   :  { %785 = vrot.lane.b32.xlu0 %v5044_v47, %s5436_s7 }
 0x154   :  { %v994_v62 = vpop.permute.xlu1 %993 }
 0x155   :  { %v884_v20 = vpop.permute.xlu0 %883  ;;  %v1352_v26 = vsel %vm1339_vm7, %v1323_v24, %v994_v62 }
 0x156   :  { %453 = vrot.lane.b32.xlu1 %v5044_v47, %s5432_s16  ;;  %v1324_v43 = vsel %vm1310_vm6, %v1295_v21, %v884_v20  ;;  %v1181_v20 = vsel %vm9135_vm1, %v30_v0, %v6206_v1 }
 0x157   :  { %343 = vrot.lane.b32.xlu0 %v5017_v63, %s5433_s17  ;;  %v1210_v3 = vsel %vm9136_vm2, %v1181_v20, %v6217_v27 }
 0x158   :  { %v662_v7 = vpop.permute.xlu1 %661 }
 0x159   :  { %v6235_v60 = vpop.permute.xlu0 %551  ;;  %v1267_v55 = vsel %vm1252_vm4, %v1238_v46, %v662_v7  ;;  %v4995_v46 = vld [vmem:[%s9108_s0 + $0x188] sm:$0xff] }
 0x15a   :  { %897 = vrot.lane.b32.xlu1 %v6231_v19, %s5437_s12  ;;  %v1239_v1 = vsel %vm1223_vm3, %v1210_v3, %v6235_v60 }
 0x15b   :  { %787 = vrot.lane.b32.xlu0 %v5045_v6, %s5436_s7 }
 0x15c   :  { %v1106_v28 = vpop.permute.xlu1 %1105 }
 0x15d   :  { %v996_v17 = vpop.permute.xlu0 %995  ;;  %v1381_v32 = vsel %vm1368_vm8, %v1352_v26, %v1106_v28 }
 0x15e   :  { %565 = vrot.lane.b32.xlu1 %v6231_v19, %s5434_s26  ;;  %5235 = vmatprep.mubr.msk.f32.mxu0 %vm1400_vm9, %v1381_v32  ;;  %v1353_v44 = vsel %vm1339_vm7, %v1324_v43, %v996_v17  ;;  %v5048_v32 = vld [vmem:[%s9108_s0 + $0x16a] sm:$0xff] }
 0x15f   :  { %455 = vrot.lane.b32.xlu0 %v5045_v6, %s5432_s16 }
 0x160   :  { %v664_v29 = vpop.permute.xlu1 %663 }
 0x161   :  { %v6264_v36 = vpop.permute.xlu0 %329  ;;  %v1268_v14 = vsel %vm1252_vm4, %v1239_v1, %v664_v29  ;;  %v4969_v1 = vld [vmem:[%s9108_s0 + $0x18a] sm:$0xff] }
 0x162   :  { %1009 = vrot.lane.b32.xlu1 %v5018_v8, %s5438_s23 }
 0x163   :  { %899 = vrot.lane.b32.xlu0 %v6260_v18, %s5437_s12 }
 0x164   :  { %v1108_v33 = vpop.permute.xlu1 %1107 }
 0x165   :  { %v774_v30 = vpop.permute.xlu0 %773  ;;  %v1382_v35 = vsel %vm1368_vm8, %v1353_v44, %v1108_v33 }
 0x166   :  { %677 = vrot.lane.b32.xlu1 %v5018_v8, %s5435_s29  ;;  %5236 = vmatmul.mubr.msk.f32.gmra.mxu0 %vm1400_vm9, %v1382_v35  ;;  %v1296_v63 = vsel %vm1281_vm5, %v1267_v55, %v774_v30  ;;  %v1182_v30 = vsel %vm9135_vm1, %v5899_v38, %v6264_v36 }
 0x167   :  { %567 = vrot.lane.b32.xlu0 %v6260_v18, %s5434_s26 }
 0x168   :  { %v6284_v5 = vpop.permute.xlu1 %441 }
 0x169   :  { %v6286_v12 = vpop.permute.xlu0 %331  ;;  %v1211_v35 = vsel %vm9136_vm2, %v1182_v30, %v6284_v5 }
 0x16a   :  { %1121 = vrot.lane.b32.xlu1 %v5046_v45, %s5439_s5 }
 0x16b   :  { %1011 = vrot.lane.b32.xlu0 %v5019_v48, %s5438_s23 }
 0x16c   :  { %v886_v31 = vpop.permute.xlu1 %885 }
 0x16d   :  { %v776_v37 = vpop.permute.xlu0 %775  ;;  %v1325_v2 = vsel %vm1310_vm6, %v1296_v63, %v886_v31 }
 0x16e   :  { %679 = vrot.lane.b32.xlu1 %v5019_v48, %s5435_s29  ;;  %v1297_v27 = vsel %vm1281_vm5, %v1268_v14, %v776_v37 }
 0x16f   :  { %345 = vrot.lane.b32.xlu0 %v5018_v8, %s5433_s17 }
 0x170   :  { %v6295_v54 = vpop.permute.xlu1 %553 }
 0x171   :  { %v6297_v39 = vpop.permute.xlu0 %443 }
 0x172   :  { %1123 = vrot.lane.b32.xlu1 %v5047_v50, %s5439_s5 }
 0x173   :  { %789 = vrot.lane.b32.xlu0 %v5046_v45, %s5436_s7 }
 0x174   :  { %v998_v56 = vpop.permute.xlu1 %997 }
 0x175   :  { %v888_v53 = vpop.permute.xlu0 %887  ;;  %v1354_v61 = vsel %vm1339_vm7, %v1325_v2, %v998_v56 }
 0x176   :  { %457 = vrot.lane.b32.xlu1 %v5046_v45, %s5432_s16  ;;  %v1326_v24 = vsel %vm1310_vm6, %v1297_v27, %v888_v53  ;;  %v4994_v45 = vld [vmem:[%s9108_s0 + $0x180] sm:$0xff] }
 0x177   :  { %347 = vrot.lane.b32.xlu0 %v5019_v48, %s5433_s17  ;;  %v1240_v48 = vsel %vm1223_vm3, %v1211_v35, %v6295_v54  ;;  %v1183_v54 = vsel %vm9135_vm1, %v5939_v49, %v6286_v12  ;;  %v4997_v27 = vld [vmem:[%s9108_s0 + $0x1a0] sm:$0xff] }
 0x178   :  { %v666_v52 = vpop.permute.xlu1 %665  ;;  %v1212_v59 = vsel %vm9136_vm2, %v1183_v54, %v6297_v39 }
 0x179   :  { %v6317_v47 = vpop.permute.xlu0 %555 }
 0x17a   :  { %901 = vrot.lane.b32.xlu1 %v6313_v25, %s5437_s12  ;;  %v1241_v49 = vsel %vm1223_vm3, %v1212_v59, %v6317_v47  ;;  %v5050_v47 = vld [vmem:[%s9108_s0 + $0x182] sm:$0xff] }
 0x17b   :  { %791 = vrot.lane.b32.xlu0 %v5047_v50, %s5436_s7 }
 0x17c   :  { %v1110_v6 = vpop.permute.xlu1 %1109 }
 0x17d   :  { %v1000_v10 = vpop.permute.xlu0 %999  ;;  %v1383_v62 = vsel %vm1368_vm8, %v1354_v61, %v1110_v6 }
 0x17e   :  { %569 = vrot.lane.b32.xlu1 %v6313_v25, %s5434_s26  ;;  %5238 = vmatprep.mubr.msk.f32.mxu0 %vm1400_vm9, %v1383_v62  ;;  %v1355_v26 = vsel %vm1339_vm7, %v1326_v24, %v1000_v10  ;;  %v5023_v10 = vld [vmem:[%s9108_s0 + $0x189] sm:$0xff]  ;;  %v4996_v24 = vld [vmem:[%s9108_s0 + $0x198] sm:$0xff] }
 0x17f   :  { %459 = vrot.lane.b32.xlu0 %v5047_v50, %s5432_s16  ;;  %v1269_v50 = vsel %vm1252_vm4, %v1240_v48, %v666_v52 }
 0x180   :  { %v668_v7 = vpop.permute.xlu1 %667 }
 0x181   :  { %v6348_v58 = vpop.permute.xlu0 %333  ;;  %v1270_v55 = vsel %vm1252_vm4, %v1241_v49, %v668_v7 }
 0x182   :  { %1013 = vrot.lane.b32.xlu1 %v5020_v22, %s5438_s23 }
 0x183   :  { %903 = vrot.lane.b32.xlu0 %v6344_v23, %s5437_s12 }
 0x184   :  { %v1112_v28 = vpop.permute.xlu1 %1111 }
 0x185   :  { %v778_v17 = vpop.permute.xlu0 %777  ;;  %v1384_v60 = vsel %vm1368_vm8, %v1355_v26, %v1112_v28 }
 0x186   :  { %681 = vrot.lane.b32.xlu1 %v5020_v22, %s5435_s29  ;;  %5239 = vmatmul.mubr.msk.f32.gmra.mxu0 %vm1400_vm9, %v1384_v60  ;;  %v1298_v38 = vsel %vm1281_vm5, %v1269_v50, %v778_v17  ;;  %v1184_v17 = vsel %vm9135_vm1, %v5986_v15, %v6348_v58 }
 0x187   :  { %571 = vrot.lane.b32.xlu0 %v6344_v23, %s5434_s26 }
 0x188   :  { %v6368_v9 = vpop.permute.xlu1 %445 }
 0x189   :  { %v6370_v8 = vpop.permute.xlu0 %335  ;;  %v1213_v60 = vsel %vm9136_vm2, %v1184_v17, %v6368_v9 }
 0x18a   :  { %1125 = vrot.lane.b32.xlu1 %v5048_v32, %s5439_s5  ;;  %v1185_v48 = vsel %vm9135_vm1, %v6019_v16, %v6370_v8 }
 0x18b   :  { %1015 = vrot.lane.b32.xlu0 %v5021_v34, %s5438_s23 }
 0x18c   :  { %v890_v13 = vpop.permute.xlu1 %889 }
 0x18d   :  { %v780_v29 = vpop.permute.xlu0 %779  ;;  %v1327_v36 = vsel %vm1310_vm6, %v1298_v38, %v890_v13 }
 0x18e   :  { %683 = vrot.lane.b32.xlu1 %v5021_v34, %s5435_s29  ;;  %v1299_v39 = vsel %vm1281_vm5, %v1270_v55, %v780_v29 }
 0x18f   :  { %349 = vrot.lane.b32.xlu0 %v5020_v22, %s5433_s17 }
 0x190   :  { %v6379_v21 = vpop.permute.xlu1 %557 }
 0x191   :  { %v6381_v43 = vpop.permute.xlu0 %447  ;;  %v1242_v13 = vsel %vm1223_vm3, %v1213_v60, %v6379_v21  ;;  %v5052_v21 = vld [vmem:[%s9108_s0 + $0x19a] sm:$0xff] }
 0x192   :  { %1127 = vrot.lane.b32.xlu1 %v5049_v41, %s5439_s5 }
 0x193   :  { %793 = vrot.lane.b32.xlu0 %v5048_v32, %s5436_s7 }
 0x194   :  { %v1002_v44 = vpop.permute.xlu1 %1001 }
 0x195   :  { %v892_v33 = vpop.permute.xlu0 %891  ;;  %v1356_v5 = vsel %vm1339_vm7, %v1327_v36, %v1002_v44  ;;  %v5053_v44 = vld [vmem:[%s9108_s0 + $0x1a2] sm:$0xff] }
 0x196   :  { %461 = vrot.lane.b32.xlu1 %v5048_v32, %s5432_s16  ;;  %v1328_v63 = vsel %vm1310_vm6, %v1299_v39, %v892_v33  ;;  %v5025_v32 = vld [vmem:[%s9108_s0 + $0x1a1] sm:$0xff] }
 0x197   :  { %351 = vrot.lane.b32.xlu0 %v5021_v34, %s5433_s17  ;;  %v5024_v34 = vld [vmem:[%s9108_s0 + $0x199] sm:$0xff]  ;;  %s5442_s17 = smov 24  }
 0x198   :  { %v670_v31 = vpop.permute.xlu1 %669 }
 0x199   :  { %v6397_v37 = vpop.permute.xlu0 %559  ;;  %v1271_v58 = vsel %vm1252_vm4, %v1242_v13, %v670_v31  ;;  %v1214_v31 = vsel %vm9136_vm2, %v1185_v48, %v6381_v43 }
 0x19a   :  { %905 = vrot.lane.b32.xlu1 %v4994_v45, %s5437_s12  ;;  %v1243_v50 = vsel %vm1223_vm3, %v1214_v31, %v6397_v37 }
 0x19b   :  { %795 = vrot.lane.b32.xlu0 %v5049_v41, %s5436_s7 }
 0x19c   :  { %v1114_v40 = vpop.permute.xlu1 %1113 }
 0x19d   :  { %v1004_v56 = vpop.permute.xlu0 %1003  ;;  %v1385_v53 = vsel %vm1368_vm8, %v1356_v5, %v1114_v40 }
 0x19e   :  { %573 = vrot.lane.b32.xlu1 %v4994_v45, %s5434_s26  ;;  %5241 = vmatprep.mubr.msk.f32.mxu0 %vm1400_vm9, %v1385_v53  ;;  %v1357_v0 = vsel %vm1339_vm7, %v1328_v63, %v1004_v56 }
 0x19f   :  { %463 = vrot.lane.b32.xlu0 %v5049_v41, %s5432_s16 }
 0x1a0   :  { %v672_v12 = vpop.permute.xlu1 %671 }
 0x1a1   :  { %v6422_v52 = vpop.permute.xlu0 %337  ;;  %v1272_v5 = vsel %vm1252_vm4, %v1243_v50, %v672_v12 }
 0x1a2   :  { %1017 = vrot.lane.b32.xlu1 %v5022_v4, %s5438_s23  ;;  %v1186_v39 = vsel %vm9135_vm1, %v6071_v57, %v6422_v52 }
 0x1a3   :  { %907 = vrot.lane.b32.xlu0 %v4995_v46, %s5437_s12 }
 0x1a4   :  { %v1116_v2 = vpop.permute.xlu1 %1115 }
 0x1a5   :  { %v782_v61 = vpop.permute.xlu0 %781  ;;  %v1386_v6 = vsel %vm1368_vm8, %v1357_v0, %v1116_v2 }
 0x1a6   :  { %685 = vrot.lane.b32.xlu1 %v5022_v4, %s5435_s29  ;;  %5242 = vmatmul.mubr.msk.f32.gmra.mxu0 %vm1400_vm9, %v1386_v6  ;;  %v1300_v41 = vsel %vm1281_vm5, %v1271_v58, %v782_v61 }
 0x1a7   :  { %575 = vrot.lane.b32.xlu0 %v4995_v46, %s5434_s26 }
 0x1a8   :  { %v6440_v62 = vpop.permute.xlu1 %449 }
 0x1a9   :  { %v6442_v20 = vpop.permute.xlu0 %339  ;;  %v1215_v63 = vsel %vm9136_vm2, %v1186_v39, %v6440_v62 }
 0x1aa   :  { %1129 = vrot.lane.b32.xlu1 %v5050_v47, %s5439_s5  ;;  %v1187_v57 = vsel %vm9135_vm1, %v6100_v11, %v6442_v20 }
 0x1ab   :  { %1019 = vrot.lane.b32.xlu0 %v5023_v10, %s5438_s23 }
 0x1ac   :  { %v894_v3 = vpop.permute.xlu1 %893 }
 0x1ad   :  { %v784_v22 = vpop.permute.xlu0 %783  ;;  %v1329_v9 = vsel %vm1310_vm6, %v1300_v41, %v894_v3 }
 0x1ae   :  { %797 = vrot.lane.b32.xlu1 %v5050_v47, %s5436_s7  ;;  %v1301_v40 = vsel %vm1281_vm5, %v1272_v5, %v784_v22 }
 0x1af   :  { %687 = vrot.lane.b32.xlu0 %v5023_v10, %s5435_s29 }
 0x1b0   :  { %v562_v7 = vpop.permute.xlu1 %561 }
 0x1b1   :  { %v6451_v14 = vpop.permute.xlu0 %451  ;;  %v1244_v0 = vsel %vm1223_vm3, %v1215_v63, %v562_v7 }
 0x1b2   :  { %799 = vrot.lane.b32.xlu1 %v4969_v1, %s5436_s7  ;;  %v1216_v52 = vsel %vm9136_vm2, %v1187_v57, %v6451_v14 }
 0x1b3   :  { %1131 = vrot.lane.b32.xlu0 %v4969_v1, %s5439_s5 }
 0x1b4   :  { %v1006_v26 = vpop.permute.xlu1 %1005 }
 0x1b5   :  { %v896_v28 = vpop.permute.xlu0 %895  ;;  %v1358_v33 = vsel %vm1339_vm7, %v1329_v9, %v1006_v26 }
 0x1b6   :  { %911 = vrot.lane.b32.xlu1 %v4997_v27, %s5437_s12  ;;  %v1330_v16 = vsel %vm1310_vm6, %v1301_v40, %v896_v28 }
 0x1b7   :  { %909 = vrot.lane.b32.xlu0 %v4996_v24, %s5437_s12 }
 0x1b8   :  { %v674_v29 = vpop.permute.xlu1 %673 }
 0x1b9   :  { %v564_v15 = vpop.permute.xlu0 %563  ;;  %v1273_v6 = vsel %vm1252_vm4, %v1244_v0, %v674_v29 }
 0x1ba   :  { %1023 = vrot.lane.b32.xlu1 %v5025_v32, %s5438_s23  ;;  %v1245_v62 = vsel %vm1223_vm3, %v1216_v52, %v564_v15 }
 0x1bb   :  { %1021 = vrot.lane.b32.xlu0 %v5024_v34, %s5438_s23 }
 0x1bc   :  { %v1118_v30 = vpop.permute.xlu1 %1117 }
 0x1bd   :  { %v1008_v35 = vpop.permute.xlu0 %1007  ;;  %v1387_v45 = vsel %vm1368_vm8, %v1358_v33, %v1118_v30 }
 0x1be   :  { %1135 = vrot.lane.b32.xlu1 %v5053_v44, %s5439_s5  ;;  %5244 = vmatprep.mubr.msk.f32.mxu0 %vm1400_vm9, %v1387_v45  ;;  %v1359_v8 = vsel %vm1339_vm7, %v1330_v16, %v1008_v35 }
 0x1bf   :  { %1133 = vrot.lane.b32.xlu0 %v5052_v21, %s5439_s5 }
 0x1c0   :  { %v676_v38 = vpop.permute.xlu1 %675 }
 0x1c1   :  { %v342_v36 = vpop.permute.xlu0 %341  ;;  %v1274_v26 = vsel %vm1252_vm4, %v1245_v62, %v676_v38 }
 0x1c2   :  { %v1188_v44 = vsel %vm9135_vm1, %v6151_v42, %v342_v36 }
 0x1c4   :  { %v1120_v56 = vpop.permute.xlu1 %1119 }
 0x1c5   :  { %v786_v53 = vpop.permute.xlu0 %785  ;;  %v1388_v54 = vsel %vm1368_vm8, %v1359_v8, %v1120_v56 }
 0x1c6   :  { %5245 = vmatmul.mubr.msk.f32.gmra.mxu0 %vm1400_vm9, %v1388_v54  ;;  %v1302_v47 = vsel %vm1281_vm5, %v1273_v6, %v786_v53 }
 0x1c8   :  { %v454_v43 = vpop.permute.xlu1 %453 }
 0x1c9   :  { %v344_v59 = vpop.permute.xlu0 %343  ;;  %v1217_v21 = vsel %vm9136_vm2, %v1188_v44, %v454_v43 }
 0x1ca   :  { %v1189_v42 = vsel %vm9135_vm1, %v6180_v51, %v344_v59 }
 0x1cc   :  { %v898_v4 = vpop.permute.xlu1 %897 }
 0x1cd   :  { %v788_v37 = vpop.permute.xlu0 %787  ;;  %v1331_v10 = vsel %vm1310_vm6, %v1302_v47, %v898_v4 }
 0x1ce   :  { %v1303_v28 = vsel %vm1281_vm5, %v1274_v26, %v788_v37 }
 0x1d0   :  { %v566_v46 = vpop.permute.xlu1 %565 }
 0x1d1   :  { %v456_v49 = vpop.permute.xlu0 %455  ;;  %v1246_v33 = vsel %vm1223_vm3, %v1217_v21, %v566_v46 }
 0x1d2   :  { %v1218_v36 = vsel %vm9136_vm2, %v1189_v42, %v456_v49 }
 0x1d4   :  { %v1010_v55 = vpop.permute.xlu1 %1009 }
 0x1d5   :  { %v900_v12 = vpop.permute.xlu0 %899  ;;  %v1360_v3 = vsel %vm1339_vm7, %v1331_v10, %v1010_v55 }
 0x1d6   :  { %v1332_v17 = vsel %vm1310_vm6, %v1303_v28, %v900_v12 }
 0x1d8   :  { %v678_v2 = vpop.permute.xlu1 %677 }
 0x1d9   :  { %v568_v61 = vpop.permute.xlu0 %567  ;;  %v1275_v45 = vsel %vm1252_vm4, %v1246_v33, %v678_v2 }
 0x1da   :  { %v1247_v16 = vsel %vm1223_vm3, %v1218_v36, %v568_v61 }
 0x1dc   :  { %v1122_v22 = vpop.permute.xlu1 %1121 }
 0x1dd   :  { %v1012_v1 = vpop.permute.xlu0 %1011  ;;  %v1389_v27 = vsel %vm1368_vm8, %v1360_v3, %v1122_v22 }
 0x1de   :  { %5247 = vmatprep.mubr.msk.f32.mxu0 %vm1400_vm9, %v1389_v27  ;;  %v1361_v60 = vsel %vm1339_vm7, %v1332_v17, %v1012_v1 }
 0x1e0   :  { %v680_v7 = vpop.permute.xlu1 %679 }
 0x1e1   :  { %v346_v24 = vpop.permute.xlu0 %345  ;;  %v1276_v53 = vsel %vm1252_vm4, %v1247_v16, %v680_v7  ;;  %v9112_v16 = vlaneseq }
 0x1e2   :  { %v1190_v61 = vsel %vm9135_vm1, %v6231_v19, %v346_v24 }
 0x1e4   :  { %v1124_v32 = vpop.permute.xlu1 %1123 }
 0x1e5   :  { %v790_v34 = vpop.permute.xlu0 %789  ;;  %v1390_v11 = vsel %vm1368_vm8, %v1361_v60, %v1124_v32 }
 0x1e6   :  { %5248 = vmatmul.mubr.msk.f32.gmra.mxu0 %vm1400_vm9, %v1390_v11  ;;  %v1304_v48 = vsel %vm1281_vm5, %v1275_v45, %v790_v34 }
 0x1e8   :  { %v458_v20 = vpop.permute.xlu1 %457 }
 0x1e9   :  { %v348_v14 = vpop.permute.xlu0 %347  ;;  %v1219_v6 = vsel %vm9136_vm2, %v1190_v61, %v458_v20 }
 0x1ea   :  { %v1191_v19 = vsel %vm9135_vm1, %v6260_v18, %v348_v14 }
 0x1ec   :  { %v902_v13 = vpop.permute.xlu1 %901 }
 0x1ed   :  { %v792_v29 = vpop.permute.xlu0 %791  ;;  %v1333_v31 = vsel %vm1310_vm6, %v1304_v48, %v902_v13 }
 0x1ee   :  { %v1305_v54 = vsel %vm1281_vm5, %v1276_v53, %v792_v29  ;;  %v5219_v53 = vpop.f32.mrf.mxu0 }
 0x1f0   :  { %v570_v15 = vpop.permute.xlu1 %569 }
 0x1f1   :  { %v460_v58 = vpop.permute.xlu0 %459  ;;  %v1248_v47 = vsel %vm1223_vm3, %v1219_v6, %v570_v15 }
 0x1f2   :  { %v1220_v24 = vsel %vm9136_vm2, %v1191_v19, %v460_v58 }
 0x1f4   :  { %v1014_v41 = vpop.permute.xlu1 %1013 }
 0x1f5   :  { %v904_v9 = vpop.permute.xlu0 %903  ;;  %v1362_v50 = vsel %vm1339_vm7, %v1333_v31, %v1014_v41 }
 0x1f6   :  { %v1334_v43 = vsel %vm1310_vm6, %v1305_v54, %v904_v9 }
 0x1f8   :  { %v682_v30 = vpop.permute.xlu1 %681 }
 0x1f9   :  { %v572_v35 = vpop.permute.xlu0 %571  ;;  %v1277_v22 = vsel %vm1252_vm4, %v1248_v47, %v682_v30 }
 0x1fa   :  { %v1249_v26 = vsel %vm1223_vm3, %v1220_v24, %v572_v35 }
 0x1fc   :  { %v1126_v38 = vpop.permute.xlu1 %1125 }
 0x1fd   :  { %v1016_v5 = vpop.permute.xlu0 %1015  ;;  %v1391_v40 = vsel %vm1368_vm8, %v1362_v50, %v1126_v38 }
 0x1fe   :  { %5250 = vmatprep.mubr.msk.f32.mxu0 %vm1400_vm9, %v1391_v40  ;;  %v1363_v4 = vsel %vm1339_vm7, %v1334_v43, %v1016_v5  ;;  %v6596_v43 = vpop.f32.mrf.mxu0 }
 0x200   :  { %v684_v8 = vpop.permute.xlu1 %683 }
 0x201   :  { %v350_v56 = vpop.permute.xlu0 %349  ;;  %v1278_v60 = vsel %vm1252_vm4, %v1249_v26, %v684_v8  ;;  %v6590_v8 = vshrl.u32 %v9112_v16, 7 }
 0x202   :  { %v1192_v15 = vsel %vm9135_vm1, %v6313_v25, %v350_v56 }
 0x203   :  { %9140 = vst [vmem:[#allocation9_spill] sm:$0xff] %v6590_v8  ;;  %v6593_v56 = vadd.s32 8, %v6590_v8  ;;  %v1704_v19 = vadd.s32 72, %v6590_v8 }
 0x204   :  { %v1128_v37 = vpop.permute.xlu1 %1127 }
 0x205   :  { %v794_v46 = vpop.permute.xlu0 %793  ;;  %v1392_v51 = vsel %vm1368_vm8, %v1363_v4, %v1128_v37  ;;  %9141 = vst [vmem:[#allocation10_spill] sm:$0xff] %v6593_v56  ;;  %v1724_v54 = vand.u32 15, %v6593_v56  ;;  %v6599_v4 = vadd.s32 24, %v6590_v8  ;;  %v5222_v37 = vpop.f32.mrf.mxu0 }
 0x206   :  { %5251 = vmatmul.mubr.msk.f32.gmra.mxu0 %vm1400_vm9, %v1392_v51  ;;  %v1306_v1 = vsel %vm1281_vm5, %v1277_v22, %v794_v46 }
 0x207   :  { %vm1752_vm10 = vcmp.lt.s32.totalorder %v1724_v54, 9  ;;  %9142 = vst [vmem:[#allocation11_spill] sm:$0xff] %v6599_v4  ;;  %v1726_v51 = vand.u32 15, %v6599_v4 }
 0x208   :  { %v462_v59 = vpop.permute.xlu1 %461  ;;  %v6601_v46 = vsel %vm1752_vm10, %v5219_v53, 0.0 }
 0x209   :  { %v352_v49 = vpop.permute.xlu0 %351  ;;  %v1221_v41 = vsel %vm9136_vm2, %v1192_v15, %v462_v59  ;;  %v6604_v59 = vpop.f32.mrf.mxu0  ;;  %vm1754_vm12 = vcmp.lt.s32.totalorder %v1726_v51, 9 }
 0x20a   :  { %v1193_v58 = vsel %vm9135_vm1, %v6344_v23, %v352_v49  ;;  %v1867_v49 = vsel %vm9137_vm11, %v6601_v46, 0.0  ;;  %v6616_v61 = vsel %vm1754_vm12, %v5222_v37, 0.0  ;;  %v1712_v37 = vadd.s32 136, %v6590_v8 }
 0x20b   :  { %v1871_v22 = vsel %vm9137_vm11, %v6616_v61, 0.0 }
 0x20c   :  { %v906_v55 = vpop.permute.xlu1 %905 }
 0x20d   :  { %v796_v12 = vpop.permute.xlu0 %795  ;;  %v1335_v27 = vsel %vm1310_vm6, %v1306_v1, %v906_v55  ;;  %v1866_v55 = vsel %vm9137_vm11, %v6596_v43, 0.0 }
 0x20e   :  { %v1307_v32 = vsel %vm1281_vm5, %v1278_v60, %v796_v12  ;;  %v6611_v12 = vadd.s32 40, %v6590_v8  ;;  %v1732_v60 = vand.u32 15, %v1704_v19 }
 0x210   :  { %v574_v39 = vpop.permute.xlu1 %573  ;;  %9143 = vst [vmem:[#allocation12_spill] sm:$0xff] %v6611_v12  ;;  %vm1760_vm15 = vcmp.lt.s32.totalorder %v1732_v60, 9 }
 0x211   :  { %v464_v63 = vpop.permute.xlu0 %463  ;;  %v1250_v44 = vsel %vm1223_vm3, %v1221_v41, %v574_v39  ;;  %v5225_v39 = vpop.f32.mrf.mxu0 }
 0x212   :  { %v1222_v9 = vsel %vm9136_vm2, %v1193_v58, %v464_v63  ;;  %v1869_v63 = vsel %vm9137_vm11, %v6604_v59, 0.0 }
 0x213   :  { %v6618_v47 = vpop.f32.mrf.mxu0 }
 0x214   :  { %v1018_v0 = vpop.permute.xlu1 %1017  ;;  %v1873_v1 = vsel %vm9137_vm11, %v6618_v47, 0.0 }
 0x215   :  { %v908_v2 = vpop.permute.xlu0 %907  ;;  %v1364_v57 = vsel %vm1339_vm7, %v1335_v27, %v1018_v0  ;;  %v1868_v0 = vadd.f32 %v1867_v49, %v1866_v55 }
 0x216   :  { %v1336_v34 = vsel %vm1310_vm6, %v1307_v32, %v908_v2  ;;  %v1728_v2 = vand.u32 15, %v6611_v12 }
 0x217   :  { %v1870_v6 = vadd.f32 %v1869_v63, %v1868_v0  ;;  %v1740_v63 = vand.u32 15, %v1712_v37 }
 0x218   :  { %v686_v10 = vpop.permute.xlu1 %685  ;;  %vm1756_vm13 = vcmp.lt.s32.totalorder %v1728_v2, 9 }
 0x219   :  { %v576_v3 = vpop.permute.xlu0 %575  ;;  %v1279_v35 = vsel %vm1252_vm4, %v1250_v44, %v686_v10  ;;  %v6621_v10 = vadd.s32 56, %v6590_v8  ;;  %v1872_v27 = vadd.f32 %v1871_v22, %v1870_v6  ;;  %v1708_v44 = vadd.s32 104, %v6590_v8 }
 0x21a   :  { %v1251_v21 = vsel %vm1223_vm3, %v1222_v9, %v576_v3  ;;  %v5228_v3 = vpop.f32.mrf.mxu0 }
 0x21b   :  { %9144 = vst [vmem:[#allocation13_spill] sm:$0xff] %v6621_v10 }
 0x21c   :  { %v1130_v52 = vpop.permute.xlu1 %1129 }
 0x21d   :  { %v1020_v62 = vpop.permute.xlu0 %1019  ;;  %v1393_v7 = vsel %vm1368_vm8, %v1364_v57, %v1130_v52  ;;  %v1730_v57 = vand.u32 15, %v6621_v10  ;;  %v6628_v52 = vsel %vm1756_vm13, %v5225_v39, 0.0 }
 0x21e   :  { %5253 = vmatprep.mubr.msk.f32.mxu0 %vm1400_vm9, %v1393_v7  ;;  %v1365_v11 = vsel %vm1339_vm7, %v1336_v34, %v1020_v62  ;;  %v1874_v62 = vadd.f32 %v1873_v1, %v1872_v27  ;;  %v6630_v7 = vpop.f32.mrf.mxu0  ;;  %v1875_v26 = vsel %vm9137_vm11, %v6628_v52, 0.0 }
 0x21f   :  { %vm1758_vm14 = vcmp.lt.s32.totalorder %v1730_v57, 9 }
 0x220   :  { %v798_v28 = vpop.permute.xlu1 %797  ;;  %v5231_v24 = vpop.f32.mrf.mxu0  ;;  %v6637_v32 = vsel %vm1758_vm14, %v5228_v3, 0.0  ;;  %v1714_v3 = vadd.s32 152, %v6590_v8 }
 0x221   :  { %v688_v17 = vpop.permute.xlu0 %687  ;;  %v1308_v48 = vsel %vm1281_vm5, %v1279_v35, %v798_v28  ;;  %v1877_v28 = vsel %vm9137_vm11, %v6630_v7, 0.0  ;;  %v6646_v58 = vsel %vm1760_vm15, %v5231_v24, 0.0 }
 0x222   :  { %v1280_v45 = vsel %vm1252_vm4, %v1251_v21, %v688_v17  ;;  %v1876_v17 = vadd.f32 %v1875_v26, %v1874_v62  ;;  %v1742_v62 = vand.u32 15, %v1714_v3 }
 0x224   :  { %v800_v20 = vpop.permute.xlu1 %799  ;;  %v1878_v34 = vadd.f32 %v1877_v28, %v1876_v17  ;;  %v1716_v28 = vadd.s32 168, %v6590_v8 }
 0x225   :  { %v1132_v13 = vpop.permute.xlu0 %1131  ;;  %v1309_v25 = vsel %vm1281_vm5, %v1280_v45, %v800_v20  ;;  %v1706_v20 = vadd.s32 88, %v6590_v8  ;;  %v1736_v45 = vand.u32 15, %v1708_v44  ;;  %vm1768_vm5 = vcmp.lt.s32.totalorder %v1740_v63, 9 }
 0x226   :  { %v1394_v18 = vsel %vm1368_vm8, %v1365_v11, %v1132_v13  ;;  %v6639_v11 = vpop.f32.mrf.mxu0 }
 0x227   :  { %5254 = vmatmul.mubr.msk.f32.gmra.mxu0 %vm1400_vm9, %v1394_v18  ;;  %v1879_v18 = vsel %vm9137_vm11, %v6637_v32, 0.0  ;;  %v1734_v15 = vand.u32 15, %v1706_v20  ;;  %vm1764_vm3 = vcmp.lt.s32.totalorder %v1736_v45, 9 }
 0x228   :  { %v912_v14 = vpop.permute.xlu1 %911  ;;  %v5234_v13 = vpop.f32.mrf.mxu0 }
 0x229   :  { %v910_v29 = vpop.permute.xlu0 %909  ;;  %v1338_v23 = vsel %vm1310_vm6, %v1309_v25, %v912_v14  ;;  %v1881_v14 = vsel %vm9137_vm11, %v6639_v11, 0.0  ;;  %vm1762_vm0 = vcmp.lt.s32.totalorder %v1734_v15, 9  ;;  %v1718_v15 = vadd.s32 184, %v6590_v8 }
 0x22a   :  { %v1337_v31 = vsel %vm1310_vm6, %v1308_v48, %v910_v29  ;;  %v1880_v29 = vadd.f32 %v1879_v18, %v1878_v34  ;;  %v6648_v9 = vpop.f32.mrf.mxu0  ;;  %v6655_v48 = vsel %vm1762_vm0, %v5234_v13, 0.0  ;;  %v1744_v13 = vand.u32 15, %v1716_v28 }
 0x22c   :  { %v1024_v33 = vpop.permute.xlu1 %1023  ;;  %v1882_v41 = vadd.f32 %v1881_v14, %v1880_v29  ;;  %v5237_v21 = vpop.f32.mrf.mxu0 }
 0x22d   :  { %v1022_v30 = vpop.permute.xlu0 %1021  ;;  %v1367_v50 = vsel %vm1339_vm7, %v1338_v23, %v1024_v33  ;;  %v1883_v33 = vsel %vm9137_vm11, %v6646_v58, 0.0 }
 0x22e   :  { %v1366_v38 = vsel %vm1339_vm7, %v1337_v31, %v1022_v30  ;;  %v1885_v30 = vsel %vm9137_vm11, %v6648_v9, 0.0  ;;  %v1884_v35 = vadd.f32 %v1883_v33, %v1882_v41  ;;  %v6657_v23 = vpop.f32.mrf.mxu0  ;;  %v1710_v31 = vadd.s32 120, %v6590_v8 }
 0x22f   :  { %vm1770_vm7 = vcmp.lt.s32.totalorder %v1742_v62, 9 }
 0x230   :  { %v1136_v5 = vpop.permute.xlu1 %1135  ;;  %v1886_v25 = vadd.f32 %v1885_v30, %v1884_v35  ;;  %v1746_v30 = vand.u32 15, %v1718_v15 }
 0x231   :  { %v1134_v40 = vpop.permute.xlu0 %1133  ;;  %v1396_v42 = vsel %vm1368_vm8, %v1367_v50, %v1136_v5  ;;  %v1889_v5 = vsel %vm9137_vm11, %v6657_v23, 0.0 }
 0x232   :  { %v1395_v36 = vsel %vm1368_vm8, %v1366_v38, %v1134_v40  ;;  %v1887_v38 = vsel %vm9137_vm11, %v6655_v48, 0.0  ;;  %vm1772_vm8 = vcmp.lt.s32.totalorder %v1744_v13, 9 }
 0x233   :  { %5256 = vmatprep.mubr.msk.f32.mxu0 %vm1400_vm9, %v1395_v36  ;;  %v1888_v40 = vadd.f32 %v1887_v38, %v1886_v25  ;;  %v6664_v36 = vsel %vm1764_vm3, %v5237_v21, 0.0 }
 0x234   :  { %5257 = vmatmul.mubr.msk.f32.gmra.mxu0 %vm1400_vm9, %v1396_v42  ;;  %v1738_v42 = vand.u32 15, %v1710_v31  ;;  %v1891_v49 = vsel %vm9137_vm11, %v6664_v36, 0.0  ;;  %v1720_v31 = vadd.s32 200, %v6590_v8  ;;  %vm1774_vm9 = vcmp.lt.s32.totalorder %v1746_v30, 9 }
 0x235   :  { %v1890_v53 = vadd.f32 %v1889_v5, %v1888_v40 }
 0x236   :  { %vm1766_vm4 = vcmp.lt.s32.totalorder %v1738_v42, 9  ;;  %v1748_v42 = vand.u32 15, %v1720_v31 }
 0x237   :  { %v1892_v39 = vadd.f32 %v1891_v49, %v1890_v53  ;;  %v1722_v53 = vadd.s32 216, %v6590_v8 }
 0x238   :  { %vm1776_vm10 = vcmp.lt.s32.totalorder %v1748_v42, 9 }
 0x239   :  { %v1750_v63 = vand.u32 15, %v1722_v53 }
 0x23b   :  { %vm1778_vm12 = vcmp.lt.s32.totalorder %v1750_v63, 9 }
 0x246   :  { %v5240_v50 = vpop.f32.mrf.mxu0 }
 0x247   :  { %v6673_v0 = vsel %vm1766_vm4, %v5240_v50, 0.0 }
 0x248   :  { %v6666_v54 = vpop.f32.mrf.mxu0  ;;  %v1895_v1 = vsel %vm9137_vm11, %v6673_v0, 0.0 }
 0x249   :  { %v1893_v55 = vsel %vm9137_vm11, %v6666_v54, 0.0 }
 0x24a   :  { %v1894_v2 = vadd.f32 %v1893_v55, %v1892_v39 }
 0x24c   :  { %v1896_v57 = vadd.f32 %v1895_v1, %v1894_v2 }
 0x266   :  { %v5243_v51 = vpop.f32.mrf.mxu0 }
 0x267   :  { %v6682_v19 = vsel %vm1768_vm5, %v5243_v51, 0.0 }
 0x268   :  { %v6675_v6 = vpop.f32.mrf.mxu0  ;;  %v1899_v60 = vsel %vm9137_vm11, %v6682_v19, 0.0 }
 0x269   :  { %v1897_v27 = vsel %vm9137_vm11, %v6675_v6, 0.0 }
 0x26a   :  { %v1898_v24 = vadd.f32 %v1897_v27, %v1896_v57 }
 0x26c   :  { %v1900_v20 = vadd.f32 %v1899_v60, %v1898_v24 }
 0x286   :  { %v5246_v22 = vpop.f32.mrf.mxu0 }
 0x287   :  { %v6691_v18 = vsel %vm1770_vm7, %v5246_v22, 0.0 }
 0x288   :  { %v6684_v26 = vpop.f32.mrf.mxu0  ;;  %v1903_v44 = vsel %vm9137_vm11, %v6691_v18, 0.0 }
 0x289   :  { %v1901_v34 = vsel %vm9137_vm11, %v6684_v26, 0.0 }
 0x28a   :  { %v1902_v14 = vadd.f32 %v1901_v34, %v1900_v20 }
 0x28c   :  { %v1904_v33 = vadd.f32 %v1903_v44, %v1902_v14 }
 0x2a6   :  { %v5249_v17 = vpop.f32.mrf.mxu0 }
 0x2a7   :  { %v6700_v35 = vsel %vm1772_vm8, %v5249_v17, 0.0 }
 0x2a8   :  { %v6693_v29 = vpop.f32.mrf.mxu0  ;;  %v1907_v38 = vsel %vm9137_vm11, %v6700_v35, 0.0 }
 0x2a9   :  { %v1905_v21 = vsel %vm9137_vm11, %v6693_v29, 0.0 }
 0x2aa   :  { %v1906_v45 = vadd.f32 %v1905_v21, %v1904_v33 }
 0x2ac   :  { %v1908_v40 = vadd.f32 %v1907_v38, %v1906_v45 }
 0x2c6   :  { %v5252_v41 = vpop.f32.mrf.mxu0 }
 0x2c7   :  { %v6710_v37 = vsel %vm1774_vm9, %v5252_v41, 0.0 }
 0x2c8   :  { %v6702_v25 = vpop.f32.mrf.mxu0  ;;  %v1911_v55 = vsel %vm9137_vm11, %v6710_v37, 0.0 }
 0x2c9   :  { %v1909_v5 = vsel %vm9137_vm11, %v6702_v25, 0.0 }
 0x2ca   :  { %v1910_v51 = vadd.f32 %v1909_v5, %v1908_v40 }
 0x2cc   :  { %v1912_v2 = vadd.f32 %v1911_v55, %v1910_v51 }
 0x2e7   :  { %v5255_v50 = vpop.f32.mrf.mxu0 }
 0x2e8   :  { %v6718_v3 = vsel %vm1776_vm10, %v5255_v50, 0.0 }
 0x2e9   :  { %v6712_v49 = vpop.f32.mrf.mxu0  ;;  %v1915_v27 = vsel %vm9137_vm11, %v6718_v3, 0.0 }
 0x2ea   :  { %v1913_v39 = vsel %vm9137_vm11, %v6712_v49, 0.0 }
 0x2eb   :  { %v1914_v22 = vadd.f32 %v1913_v39, %v1912_v2 }
 0x2ed   :  { %v1916_v24 = vadd.f32 %v1915_v27, %v1914_v22 }
 0x2f4   :  { %v5258_v1 = vpop.f32.mrf.mxu0 }
 0x2f5   :  { %v6722_v57 = vsel %vm1778_vm12, %v5258_v1, 0.0 }
 0x2f6   :  { %v6724_v62 = vpop.f32.mrf.mxu0  ;;  %v1919_v60 = vsel %vm9137_vm11, %v6722_v57, 0.0 }
 0x2f7   :  { %v1917_v28 = vsel %vm9137_vm11, %v6724_v62, 0.0 }
 0x2f8   :  { %v1918_v17 = vadd.f32 %v1917_v28, %v1916_v24 }
 0x2fa   :  { %v1920_v34 = vadd.f32 %v1919_v60, %v1918_v17 }
 0x2fc   :  { %v1921_v20 = vrot.slane %v1920_v34, 4 }
 0x2fe   :  { %v1922_v13 = vadd.f32 %v1921_v20, %v1920_v34 }
 0x300   :  { %v1923_v14 = vrot.slane %v1922_v13, 2 }
 0x302   :  { %v1924_v15 = vadd.f32 %v1923_v14, %v1922_v13 }
 0x304   :  { %v1925_v41 = vrot.slane %v1924_v15, 1 }
 0x306   :  { %v1926_v44 = vadd.f32 %v1925_v41, %v1924_v15 }
 0x308   :  { %v6730_v21 = vmul.f32 0.007936508, %v1926_v44 }
 0x30a   :  { %v6734_v33 = vsub.f32 %v6596_v43, %v6730_v21  ;;  %v6738_v30 = vsub.f32 %v6601_v46, %v6730_v21  ;;  %v6742_v45 = vsub.f32 %v6604_v59, %v6730_v21  ;;  %v6746_v31 = vsub.f32 %v6616_v61, %v6730_v21 }
 0x30b   :  { %v6754_v5 = vsub.f32 %v6618_v47, %v6730_v21  ;;  %v6760_v42 = vsub.f32 %v6628_v52, %v6730_v21  ;;  %v6775_v2 = vsub.f32 %v6637_v32, %v6730_v21  ;;  %v6782_v27 = vsub.f32 %v6639_v11, %v6730_v21 }
 0x30c   :  { %v1956_v50 = vmul.f32 %v6734_v33, %v6596_v43  ;;  %v1957_v38 = vmul.f32 %v6738_v30, %v6601_v46  ;;  %v1958_v40 = vmul.f32 %v6742_v45, %v6604_v59  ;;  %v1959_v53 = vmul.f32 %v6746_v31, %v6616_v61 }
 0x30d   :  { %v6768_v46 = vsub.f32 %v6630_v7, %v6730_v21  ;;  %v1960_v39 = vmul.f32 %v6754_v5, %v6618_v47  ;;  %v1961_v61 = vmul.f32 %v6760_v42, %v6628_v52  ;;  %v6789_v17 = vsub.f32 %v6646_v58, %v6730_v21 }
 0x30e   :  { %v1984_v51 = vsel %vm9137_vm11, %v1956_v50, 0.0  ;;  %v1985_v43 = vsel %vm9137_vm11, %v1957_v38, 0.0  ;;  %v1987_v59 = vsel %vm9137_vm11, %v1958_v40, 0.0  ;;  %v1989_v22 = vsel %vm9137_vm11, %v1959_v53, 0.0 }
 0x30f   :  { %v1986_v55 = vadd.f32 %v1985_v43, %v1984_v51  ;;  %v1962_v47 = vmul.f32 %v6768_v46, %v6630_v7  ;;  %v1991_v24 = vsel %vm9137_vm11, %v1960_v39, 0.0  ;;  %v1963_v52 = vmul.f32 %v6775_v2, %v6637_v32 }
 0x310   :  { %v1993_v60 = vsel %vm9137_vm11, %v1961_v61, 0.0  ;;  %v6796_v20 = vsub.f32 %v6648_v9, %v6730_v21  ;;  %v1964_v7 = vmul.f32 %v6782_v27, %v6639_v11  ;;  %v6803_v15 = vsub.f32 %v6655_v48, %v6730_v21 }
 0x311   :  { %v1988_v63 = vadd.f32 %v1987_v59, %v1986_v55  ;;  %v1995_v13 = vsel %vm9137_vm11, %v1962_v47, 0.0  ;;  %v1965_v32 = vmul.f32 %v6789_v17, %v6646_v58  ;;  %v1997_v41 = vsel %vm9137_vm11, %v1963_v52, 0.0 }
 0x312   :  { %v6810_v50 = vsub.f32 %v6657_v23, %v6730_v21  ;;  %v1966_v11 = vmul.f32 %v6796_v20, %v6648_v9  ;;  %v1999_v38 = vsel %vm9137_vm11, %v1964_v7, 0.0  ;;  %v6817_v53 = vsub.f32 %v6664_v36, %v6730_v21 }
 0x313   :  { %v1990_v1 = vadd.f32 %v1989_v22, %v1988_v63  ;;  %v1967_v58 = vmul.f32 %v6803_v15, %v6655_v48  ;;  %v2001_v51 = vsel %vm9137_vm11, %v1965_v32, 0.0  ;;  %v6824_v55 = vsub.f32 %v6666_v54, %v6730_v21 }
 0x314   :  { %v1968_v9 = vmul.f32 %v6810_v50, %v6657_v23  ;;  %v2003_v39 = vsel %vm9137_vm11, %v1966_v11, 0.0  ;;  %v6831_v63 = vsub.f32 %v6673_v0, %v6730_v21  ;;  %v1969_v48 = vmul.f32 %v6817_v53, %v6664_v36 }
 0x315   :  { %v1992_v28 = vadd.f32 %v1991_v24, %v1990_v1  ;;  %v2005_v61 = vsel %vm9137_vm11, %v1967_v58, 0.0  ;;  %v6838_v1 = vsub.f32 %v6675_v6, %v6730_v21  ;;  %v1970_v23 = vmul.f32 %v6824_v55, %v6666_v54 }
 0x316   :  { %v2007_v47 = vsel %vm9137_vm11, %v1968_v9, 0.0  ;;  %v1971_v36 = vmul.f32 %v6831_v63, %v6673_v0  ;;  %v2009_v52 = vsel %vm9137_vm11, %v1969_v48, 0.0 }
 0x317   :  { %v1994_v34 = vadd.f32 %v1993_v60, %v1992_v28  ;;  %v6845_v28 = vsub.f32 %v6682_v19, %v6730_v21  ;;  %v1972_v54 = vmul.f32 %v6838_v1, %v6675_v6  ;;  %v2011_v7 = vsel %vm9137_vm11, %v1970_v23, 0.0 }
 0x318   :  { %v2013_v32 = vsel %vm9137_vm11, %v1971_v36, 0.0 }
 0x319   :  { %v1996_v14 = vadd.f32 %v1995_v13, %v1994_v34  ;;  %v6852_v34 = vsub.f32 %v6684_v26, %v6730_v21  ;;  %v1973_v0 = vmul.f32 %v6845_v28, %v6682_v19  ;;  %v2015_v11 = vsel %vm9137_vm11, %v1972_v54, 0.0 }
 0x31b   :  { %v1998_v44 = vadd.f32 %v1997_v41, %v1996_v14  ;;  %v6859_v14 = vsub.f32 %v6691_v18, %v6730_v21  ;;  %v1974_v6 = vmul.f32 %v6852_v34, %v6684_v26  ;;  %v2017_v19 = vsel %vm9137_vm11, %v1973_v0, 0.0 }
 0x31d   :  { %v2000_v40 = vadd.f32 %v1999_v38, %v1998_v44  ;;  %v6866_v44 = vsub.f32 %v6693_v29, %v6730_v21  ;;  %v1975_v58 = vmul.f32 %v6859_v14, %v6691_v18  ;;  %v2019_v26 = vsel %vm9137_vm11, %v1974_v6, 0.0 }
 0x31f   :  { %v2002_v43 = vadd.f32 %v2001_v51, %v2000_v40  ;;  %v1949_v40 = vsub.f32 %v6700_v35, %v6730_v21  ;;  %v1976_v9 = vmul.f32 %v6866_v44, %v6693_v29  ;;  %v1953_v29 = vsub.f32 %v6718_v3, %v6730_v21 }
 0x321   :  { %v2004_v59 = vadd.f32 %v2003_v39, %v2002_v43  ;;  %v1950_v43 = vsub.f32 %v6702_v25, %v6730_v21  ;;  %v1977_v48 = vmul.f32 %v1949_v40, %v6700_v35  ;;  %v1954_v35 = vsub.f32 %v6724_v62, %v6730_v21 }
 0x322   :  { %v1981_v0 = vmul.f32 %v1953_v29, %v6718_v3 }
 0x323   :  { %v2006_v22 = vadd.f32 %v2005_v61, %v2004_v59  ;;  %v1951_v59 = vsub.f32 %v6710_v37, %v6730_v21  ;;  %v2021_v61 = vsel %vm9137_vm11, %v1975_v58, 0.0  ;;  %v1978_v23 = vmul.f32 %v1950_v43, %v6702_v25 }
 0x324   :  { %v1955_v25 = vsub.f32 %v6722_v57, %v6730_v21 }
 0x325   :  { %v2008_v24 = vadd.f32 %v2007_v47, %v2006_v22  ;;  %v1952_v22 = vsub.f32 %v6712_v49, %v6730_v21  ;;  %v2023_v47 = vsel %vm9137_vm11, %v1976_v9, 0.0  ;;  %v1979_v36 = vmul.f32 %v1951_v59, %v6710_v37 }
 0x326   :  { %v1982_v37 = vmul.f32 %v1954_v35, %v6724_v62 }
 0x327   :  { %v2010_v60 = vadd.f32 %v2009_v52, %v2008_v24  ;;  %v2025_v52 = vsel %vm9137_vm11, %v1977_v48, 0.0  ;;  %v1980_v54 = vmul.f32 %v1952_v22, %v6712_v49  ;;  %v2033_v49 = vsel %vm9137_vm11, %v1981_v0, 0.0 }
 0x329   :  { %v2012_v13 = vadd.f32 %v2011_v7, %v2010_v60  ;;  %v2027_v7 = vsel %vm9137_vm11, %v1978_v23, 0.0  ;;  %v2031_v6 = vsel %vm9137_vm11, %v1980_v54, 0.0 }
 0x32b   :  { %v2014_v41 = vadd.f32 %v2013_v32, %v2012_v13  ;;  %v2029_v32 = vsel %vm9137_vm11, %v1979_v36, 0.0 }
 0x32d   :  { %v2016_v38 = vadd.f32 %v2015_v11, %v2014_v41 }
 0x32f   :  { %v2018_v51 = vadd.f32 %v2017_v19, %v2016_v38  ;;  %v1983_v38 = vmul.f32 %v1955_v25, %v6722_v57  ;;  %v2035_v19 = vsel %vm9137_vm11, %v1982_v37, 0.0 }
 0x331   :  { %v2020_v39 = vadd.f32 %v2019_v26, %v2018_v51  ;;  %v2037_v21 = vsel %vm9137_vm11, %v1983_v38, 0.0 }
 0x333   :  { %v2022_v18 = vadd.f32 %v2021_v61, %v2020_v39 }
 0x335   :  { %v2024_v24 = vadd.f32 %v2023_v47, %v2022_v18 }
 0x337   :  { %v2026_v60 = vadd.f32 %v2025_v52, %v2024_v24 }
 0x339   :  { %v2028_v13 = vadd.f32 %v2027_v7, %v2026_v60  ;;  %v6924_v60 = vld [vmem:[%s9110_s2] ss:$0 sm:$0xff] }
 0x33b   :  { %v2030_v41 = vadd.f32 %v2029_v32, %v2028_v13 }
 0x33d   :  { %v2032_v11 = vadd.f32 %v2031_v6, %v2030_v41 }
 0x33f   :  { %v2034_v58 = vadd.f32 %v2033_v49, %v2032_v11 }
 0x341   :  { %v2036_v51 = vadd.f32 %v2035_v19, %v2034_v58 }
 0x343   :  { %v2038_v9 = vadd.f32 %v2037_v21, %v2036_v51 }
 0x345   :  { %v2039_v3 = vrot.slane %v2038_v9, 4 }
 0x347   :  { %v2040_v26 = vadd.f32 %v2039_v3, %v2038_v9 }
 0x349   :  { %v2041_v39 = vrot.slane %v2040_v26, 2 }
 0x34b   :  { %v2042_v48 = vadd.f32 %v2041_v39, %v2040_v26 }
 0x34d   :  { %v2043_v61 = vrot.slane %v2042_v48, 1 }
 0x34f   :  { %v2044_v62 = vadd.f32 %v2043_v61, %v2042_v48 }
 0x351   :  { %v2045_v18 = vmul.f32 0.007936508, %v2044_v62 }
 0x353   :  { %v2046_v23 = vadd.f32 1e-05, %v2045_v18 }
 0x355   :  { %5378 = vrsqrt.f32 %v2046_v23 }
 0x362   :  { %v6907_v47 = vpop.eup %5378 }
 0x363   :  { %v6911_v57 = vmul.f32 %v6907_v47, %v6796_v20  ;;  %v6915_v24 = vmul.f32 %v6907_v47, %v6803_v15  ;;  %v2060_v36 = vmul.f32 %v6907_v47, %v6810_v50  ;;  %v2061_v52 = vmul.f32 %v6907_v47, %v6817_v53 }
 0x364   :  { %v2062_v54 = vmul.f32 %v6907_v47, %v6824_v55  ;;  %v2063_v20 = vmul.f32 %v6907_v47, %v6831_v63  ;;  %v2064_v15 = vmul.f32 %v6907_v47, %v6838_v1  ;;  %v2065_v50 = vmul.f32 %v6907_v47, %v6845_v28 }
 0x365   :  { %v2066_v53 = vmul.f32 %v6907_v47, %v6852_v34  ;;  %v2067_v7 = vmul.f32 %v6907_v47, %v6859_v14  ;;  %v2068_v13 = vmul.f32 %v6907_v47, %v6866_v44  ;;  %v2069_v55 = vmul.f32 %v6907_v47, %v1949_v40  ;;  %v6956_v44 = vld [vmem:[%s9110_s2 + $0x1] ss:$0 sm:$0xff] }
 0x366   :  { %v2070_v0 = vmul.f32 %v6907_v47, %v1950_v43  ;;  %v2071_v63 = vmul.f32 %v6907_v47, %v1951_v59  ;;  %v2072_v1 = vmul.f32 %v6907_v47, %v1952_v22  ;;  %v2073_v32 = vmul.f32 %v6907_v47, %v1953_v29 }
 0x367   :  { %v2074_v28 = vmul.f32 %v6907_v47, %v1954_v35  ;;  %v2075_v34 = vmul.f32 %v6907_v47, %v1955_v25  ;;  %v6948_v41 = vmul.f32 %v6924_v60, %v2060_v36  ;;  %v6951_v14 = vmul.f32 %v6924_v60, %v2061_v52 }
 0x368   :  { %v2094_v40 = vmul.f32 %v6924_v60, %v2062_v54  ;;  %v2095_v43 = vmul.f32 %v6924_v60, %v2063_v20  ;;  %v2096_v59 = vmul.f32 %v6924_v60, %v2064_v15  ;;  %v2097_v22 = vmul.f32 %v6924_v60, %v2065_v50 }
 0x369   :  { %v2098_v29 = vmul.f32 %v6924_v60, %v2066_v53  ;;  %v2099_v35 = vmul.f32 %v6924_v60, %v2067_v7  ;;  %v2100_v25 = vmul.f32 %v6924_v60, %v2068_v13  ;;  %v2101_v37 = vmul.f32 %v6924_v60, %v2069_v55 }
 0x36a   :  { %v2102_v6 = vmul.f32 %v6924_v60, %v2070_v0  ;;  %v2103_v11 = vmul.f32 %v6924_v60, %v2071_v63  ;;  %v2104_v38 = vmul.f32 %v6924_v60, %v2072_v1  ;;  %v2105_v49 = vmul.f32 %v6924_v60, %v2073_v32 }
 0x36b   :  { %v2106_v58 = vmul.f32 %v6924_v60, %v2074_v28  ;;  %v2107_v19 = vmul.f32 %v6924_v60, %v2075_v34  ;;  %v2126_v51 = vadd.f32 %v6956_v44, %v2094_v40  ;;  %v2127_v21 = vadd.f32 %v6956_v44, %v2095_v43 }
 0x36c   :  { %v2128_v9 = vadd.f32 %v6956_v44, %v2096_v59  ;;  %v2129_v3 = vadd.f32 %v6956_v44, %v2097_v22  ;;  %v2130_v26 = vadd.f32 %v6956_v44, %v2098_v29  ;;  %v2131_v39 = vadd.f32 %v6956_v44, %v2099_v35 }
 0x36d   :  { %v2132_v48 = vadd.f32 %v6956_v44, %v2100_v25  ;;  %v2133_v61 = vadd.f32 %v6956_v44, %v2101_v37  ;;  %v2134_v62 = vadd.f32 %v6956_v44, %v2102_v6  ;;  %v2135_v18 = vadd.f32 %v6956_v44, %v2103_v11 }
 0x36e   :  { %v2136_v23 = vadd.f32 %v6956_v44, %v2104_v38  ;;  %v2137_v36 = vadd.f32 %v6956_v44, %v2105_v49  ;;  %v2138_v52 = vadd.f32 %v6956_v44, %v2106_v58  ;;  %v2139_v54 = vadd.f32 %v6956_v44, %v2107_v19 }
 0x36f   :  { %v2154_v20 = vmax.f32 %v2126_v51, 0.0  ;;  %v2155_v15 = vmax.f32 %v2127_v21, 0.0  ;;  %v2156_v50 = vmax.f32 %v2128_v9, 0.0  ;;  %v2157_v53 = vmax.f32 %v2129_v3, 0.0 }
 0x370   :  { %v2158_v7 = vmax.f32 %v2130_v26, 0.0  ;;  %v2159_v13 = vmax.f32 %v2131_v39, 0.0  ;;  %v2160_v55 = vmax.f32 %v2132_v48, 0.0  ;;  %v2161_v0 = vmax.f32 %v2133_v61, 0.0 }
 0x371   :  { %v2162_v63 = vmax.f32 %v2134_v62, 0.0  ;;  %v2163_v1 = vmax.f32 %v2135_v18, 0.0  ;;  %v2164_v32 = vmax.f32 %v2136_v23, 0.0  ;;  %v2165_v28 = vmax.f32 %v2137_v36, 0.0  ;;  %2184 = vst.msk [vmem:[#allocation2 + $0x80] sm:$0xff] %vm9137_vm11, %v2156_v50  ;;  %2185 = vst.msk [vmem:[#allocation2 + $0x88] sm:$0xff] %vm9137_vm11, %v2157_v53 }
 0x372   :  { %2182 = vst.msk [vmem:[#allocation2 + $0x70] sm:$0xff] %vm9137_vm11, %v2154_v20  ;;  %2183 = vst.msk [vmem:[#allocation2 + $0x78] sm:$0xff] %vm9137_vm11, %v2155_v15  ;;  %v2166_v34 = vmax.f32 %v2138_v52, 0.0  ;;  %v2167_v40 = vmax.f32 %v2139_v54, 0.0  ;;  %v2048_v43 = vmul.f32 %v6907_v47, %v6734_v33  ;;  %v2049_v59 = vmul.f32 %v6907_v47, %v6738_v30 }
 0x373   :  { %2186 = vst.msk [vmem:[#allocation2 + $0x90] sm:$0xff] %vm9137_vm11, %v2158_v7  ;;  %2187 = vst.msk [vmem:[#allocation2 + $0x98] sm:$0xff] %vm9137_vm11, %v2159_v13  ;;  %v2050_v22 = vmul.f32 %v6907_v47, %v6742_v45  ;;  %v2051_v29 = vmul.f32 %v6907_v47, %v6746_v31  ;;  %v2052_v33 = vmul.f32 %v6907_v47, %v6754_v5 }
 0x374   :  { %2188 = vst.msk [vmem:[#allocation2 + $0xa0] sm:$0xff] %vm9137_vm11, %v2160_v55  ;;  %2189 = vst.msk [vmem:[#allocation2 + $0xa8] sm:$0xff] %vm9137_vm11, %v2161_v0  ;;  %v2053_v30 = vmul.f32 %v6907_v47, %v6760_v42  ;;  %v2080_v35 = vmul.f32 %v6924_v60, %v2048_v43  ;;  %v2081_v25 = vmul.f32 %v6924_v60, %v2049_v59 }
 0x375   :  { %2190 = vst.msk [vmem:[#allocation2 + $0xb0] sm:$0xff] %vm9137_vm11, %v2162_v63  ;;  %2191 = vst.msk [vmem:[#allocation2 + $0xb8] sm:$0xff] %vm9137_vm11, %v2163_v1  ;;  %v2054_v45 = vmul.f32 %v6907_v47, %v6768_v46  ;;  %v2055_v31 = vmul.f32 %v6907_v47, %v6775_v2  ;;  %v2082_v37 = vmul.f32 %v6924_v60, %v2050_v22 }
 0x376   :  { %2192 = vst.msk [vmem:[#allocation2 + $0xc0] sm:$0xff] %vm9137_vm11, %v2164_v32  ;;  %2193 = vst.msk [vmem:[#allocation2 + $0xc8] sm:$0xff] %vm9137_vm11, %v2165_v28  ;;  %v2083_v5 = vmul.f32 %v6924_v60, %v2051_v29  ;;  %v2084_v42 = vmul.f32 %v6924_v60, %v2052_v33  ;;  %v2085_v6 = vmul.f32 %v6924_v60, %v2053_v30 }
 0x377   :  { %2194 = vst.msk [vmem:[#allocation2 + $0xd0] sm:$0xff] %vm9137_vm11, %v2166_v34  ;;  %2195 = vst.msk [vmem:[#allocation2 + $0xd8] sm:$0xff] %vm9137_vm11, %v2167_v40  ;;  %v2112_v11 = vadd.f32 %v6956_v44, %v2080_v35  ;;  %v2113_v38 = vadd.f32 %v6956_v44, %v2081_v25  ;;  %v2086_v49 = vmul.f32 %v6924_v60, %v2054_v45 }
 0x378   :  { %v2087_v58 = vmul.f32 %v6924_v60, %v2055_v31  ;;  %v2114_v46 = vadd.f32 %v6956_v44, %v2082_v37  ;;  %v2115_v2 = vadd.f32 %v6956_v44, %v2083_v5  ;;  %v2116_v19 = vadd.f32 %v6956_v44, %v2084_v42 }
 0x379   :  { %v2117_v51 = vadd.f32 %v6956_v44, %v2085_v6  ;;  %v2140_v21 = vmax.f32 %v2112_v11, 0.0  ;;  %v2141_v9 = vmax.f32 %v2113_v38, 0.0  ;;  %v2118_v3 = vadd.f32 %v6956_v44, %v2086_v49  ;;  %v7172_v49 = vld [vmem:[#allocation2 + $0x70] sm:$0xff] }
 0x37a   :  { %v2119_v26 = vadd.f32 %v6956_v44, %v2087_v58  ;;  %v2142_v39 = vmax.f32 %v2114_v46, 0.0  ;;  %v2143_v48 = vmax.f32 %v2115_v2, 0.0  ;;  %v2144_v61 = vmax.f32 %v2116_v19, 0.0  ;;  %v7184_v2 = vld [vmem:[#allocation2 + $0x71] sm:$0xff] }
 0x37b   :  { %v2145_v62 = vmax.f32 %v2117_v51, 0.0  ;;  %2168 = vst.msk [vmem:[#allocation2] sm:$0xff] %vm9137_vm11, %v2140_v21  ;;  %2169 = vst.msk [vmem:[#allocation2 + $0x8] sm:$0xff] %vm9137_vm11, %v2141_v9  ;;  %v2146_v18 = vmax.f32 %v2118_v3, 0.0  ;;  %v2056_v36 = vmul.f32 %v6907_v47, %v6782_v27  ;;  %v2057_v52 = vmul.f32 %v6907_v47, %v6789_v17  ;;  %v7198_v21 = vld [vmem:[#allocation2 + $0x80] sm:$0xff] }
 0x37c   :  { %v2147_v23 = vmax.f32 %v2119_v26, 0.0  ;;  %2170 = vst.msk [vmem:[#allocation2 + $0x10] sm:$0xff] %vm9137_vm11, %v2142_v39  ;;  %2171 = vst.msk [vmem:[#allocation2 + $0x18] sm:$0xff] %vm9137_vm11, %v2143_v48  ;;  %v2090_v54 = vmul.f32 %v6924_v60, %v6911_v57  ;;  %v2091_v20 = vmul.f32 %v6924_v60, %v6915_v24  ;;  %v2124_v27 = vadd.f32 %v6956_v44, %v6948_v41  ;;  %v7208_v3 = vld [vmem:[#allocation2 + $0x81] sm:$0xff]  ;;  %v7218_v39 = vld [vmem:[#allocation2 + $0x90] sm:$0xff] }
 0x37d   :  { %2172 = vst.msk [vmem:[#allocation2 + $0x20] sm:$0xff] %vm9137_vm11, %v2144_v61  ;;  %2173 = vst.msk [vmem:[#allocation2 + $0x28] sm:$0xff] %vm9137_vm11, %v2145_v62  ;;  %v2088_v17 = vmul.f32 %v6924_v60, %v2056_v36  ;;  %v2089_v47 = vmul.f32 %v6924_v60, %v2057_v52  ;;  %v2125_v41 = vadd.f32 %v6956_v44, %v6951_v14  ;;  %v7244_v36 = vld [vmem:[#allocation2 + $0xa0] sm:$0xff] }
 0x37e   :  { %2174 = vst.msk [vmem:[#allocation2 + $0x30] sm:$0xff] %vm9137_vm11, %v2146_v18  ;;  %2175 = vst.msk [vmem:[#allocation2 + $0x38] sm:$0xff] %vm9137_vm11, %v2147_v23  ;;  %v2122_v15 = vadd.f32 %v6956_v44, %v2090_v54  ;;  %v2123_v50 = vadd.f32 %v6956_v44, %v2091_v20  ;;  %v2152_v53 = vmax.f32 %v2124_v27, 0.0  ;;  %v7180_v58 = vmul.f32 %v7172_v49, %v7172_v49  ;;  %v7234_v18 = vld [vmem:[#allocation2 + $0x91] sm:$0xff]  ;;  %v7254_v54 = vld [vmem:[#allocation2 + $0xa1] sm:$0xff] }
 0x37f   :  { %v2120_v57 = vadd.f32 %v6956_v44, %v2088_v17  ;;  %v2121_v24 = vadd.f32 %v6956_v44, %v2089_v47  ;;  %v2153_v63 = vmax.f32 %v2125_v41, 0.0  ;;  %v7196_v51 = vmul.f32 %v7184_v2, %v7184_v2  ;;  %v7264_v27 = vld [vmem:[#allocation2 + $0xb0] sm:$0xff] }
 0x380   :  { %v2150_v7 = vmax.f32 %v2122_v15, 0.0  ;;  %v2151_v13 = vmax.f32 %v2123_v50, 0.0  ;;  %2180 = vst.msk [vmem:[#allocation2 + $0x60] sm:$0xff] %vm9137_vm11, %v2152_v53  ;;  %v7206_v9 = vmul.f32 %v7198_v21, %v7198_v21  ;;  %v7216_v26 = vmul.f32 %v7208_v3, %v7208_v3  ;;  %v7274_v47 = vld [vmem:[#allocation2 + $0xb1] sm:$0xff]  ;;  %v7288_v50 = vld [vmem:[#allocation2 + $0xc0] sm:$0xff] }
 0x381   :  { %v2148_v55 = vmax.f32 %v2120_v57, 0.0  ;;  %v2149_v0 = vmax.f32 %v2121_v24, 0.0  ;;  %2181 = vst.msk [vmem:[#allocation2 + $0x68] sm:$0xff] %vm9137_vm11, %v2153_v63  ;;  %v7228_v61 = vmul.f32 %v7218_v39, %v7218_v39  ;;  %v7242_v23 = vmul.f32 %v7234_v18, %v7234_v18  ;;  %v7298_v57 = vld [vmem:[#allocation2 + $0xc1] sm:$0xff] }
 0x382   :  { %v7059_v60 = vld [vmem:[#allocation2 + $0x1] sm:$0xff]  ;;  %2178 = vst.msk [vmem:[#allocation2 + $0x50] sm:$0xff] %vm9137_vm11, %v2150_v7  ;;  %2179 = vst.msk [vmem:[#allocation2 + $0x58] sm:$0xff] %vm9137_vm11, %v2151_v13  ;;  %v7252_v52 = vmul.f32 %v7244_v36, %v7244_v36  ;;  %v7262_v20 = vmul.f32 %v7254_v54, %v7254_v54  ;;  %v7272_v17 = vmul.f32 %v7264_v27, %v7264_v27  ;;  %v9113_v41 = vmov 0.0   ;;  %v7388_v7 = vld [vmem:[#allocation2 + $0xd0] sm:$0xff] }
 0x383   :  { %v7061_v1 = vld [vmem:[#allocation2] sm:$0xff]  ;;  %v7067_v32 = vmul.f32 %v7059_v60, %v7059_v60  ;;  %2176 = vst.msk [vmem:[#allocation2 + $0x40] sm:$0xff] %vm9137_vm11, %v2148_v55  ;;  %2177 = vst.msk [vmem:[#allocation2 + $0x48] sm:$0xff] %vm9137_vm11, %v2149_v0  ;;  %v7076_v44 = vld [vmem:[#allocation2 + $0x11] sm:$0xff]  ;;  %v7282_v15 = vmul.f32 %v7274_v47, %v7274_v47  ;;  %v7296_v53 = vmul.f32 %v7288_v50, %v7288_v50 }
 0x384   :  { %v7071_v14 = vmul.f32 %v7061_v1, %v7061_v1  ;;  %v7078_v28 = vld [vmem:[#allocation2 + $0x10] sm:$0xff]  ;;  %v7086_v34 = vmul.f32 %v7076_v44, %v7076_v44  ;;  %v7092_v43 = vld [vmem:[#allocation2 + $0x20] sm:$0xff]  ;;  %9145 = vst [vmem:[#allocation14_spill] sm:$0xff] %v7252_v52  ;;  %9146 = vst [vmem:[#allocation15_spill] sm:$0xff] %v7262_v20  ;;  %v7306_v24 = vmul.f32 %v7298_v57, %v7298_v57 }
 0x385   :  { %2316 = vrot.lane.b32.xlu1 %v7067_v32, %s5440_s21  ;;  %v7090_v40 = vmul.f32 %v7078_v28, %v7078_v28  ;;  %v7100_v59 = vmul.f32 %v7092_v43, %v7092_v43  ;;  %v7102_v22 = vld [vmem:[#allocation2 + $0x21] sm:$0xff]  ;;  %v7112_v33 = vld [vmem:[#allocation2 + $0x30] sm:$0xff]  ;;  %9147 = vst [vmem:[#allocation16_spill] sm:$0xff] %v7272_v17  ;;  %9148 = vst [vmem:[#allocation17_spill] sm:$0xff] %v7282_v15  ;;  %v7396_v13 = vmul.f32 %v7388_v7, %v7388_v7 }
 0x386   :  { %2232 = vrot.lane.b32.xlu0 %v7071_v14, %s5440_s21  ;;  %v7110_v29 = vmul.f32 %v7102_v22, %v7102_v22  ;;  %v7120_v30 = vmul.f32 %v7112_v33, %v7112_v33  ;;  %v7122_v35 = vld [vmem:[#allocation2 + $0x31] sm:$0xff]  ;;  %9149 = vst [vmem:[#allocation18_spill] sm:$0xff] %v7296_v53  ;;  %9150 = vst [vmem:[#allocation19_spill] sm:$0xff] %v7306_v24 }
 0x387   :  { %v7130_v25 = vmul.f32 %v7122_v35, %v7122_v35  ;;  %v7182_v46 = vld [vmem:[#allocation2 + $0x60] sm:$0xff]  ;;  %2954 = vst.msk [vmem:[#allocation3 + $0x8] sm:$0xff] %vm1310_vm6, %v9113_v41  ;;  %2953 = vst.msk [vmem:[#allocation3] sm:$0xff] %vm1310_vm6, %v9113_v41  ;;  %v7410_v55 = vld [vmem:[#allocation2 + $0xd1] sm:$0xff] }
 0x388   :  { %v7192_v19 = vmul.f32 %v7182_v46, %v7182_v46  ;;  %v7220_v48 = vld [vmem:[#allocation2 + $0x61] sm:$0xff]  ;;  %2955 = vst.msk [vmem:[#allocation3 + $0x10] sm:$0xff] %vm1310_vm6, %v9113_v41  ;;  %2956 = vst.msk [vmem:[#allocation3 + $0xc0] sm:$0xff] %vm1310_vm6, %v9113_v41 }
 0x389   :  { %2318 = vrot.lane.b32.xlu1 %v7086_v34, %s5440_s21  ;;  %v7152_v42 = vld [vmem:[#allocation2 + $0x50] sm:$0xff]  ;;  %v7232_v62 = vmul.f32 %v7220_v48, %v7220_v48  ;;  %2957 = vst.msk [vmem:[#allocation3 + $0xc8] sm:$0xff] %vm1310_vm6, %v9113_v41  ;;  %2958 = vst.msk [vmem:[#allocation3 + $0xd0] sm:$0xff] %vm1310_vm6, %v9113_v41 }
 0x38a   :  { %2234 = vrot.lane.b32.xlu0 %v7090_v40, %s5440_s21  ;;  %v7132_v45 = vld [vmem:[#allocation2 + $0x40] sm:$0xff]  ;;  %v7160_v6 = vmul.f32 %v7152_v42, %v7152_v42  ;;  %v7162_v11 = vld [vmem:[#allocation2 + $0x51] sm:$0xff]  ;;  %2960 = vst.msk [vmem:[#allocation3 + $0xa8] sm:$0xff] %vm1310_vm6, %v9113_v41  ;;  %2961 = vst.msk [vmem:[#allocation3 + $0xb0] sm:$0xff] %vm1310_vm6, %v9113_v41 }
 0x38b   :  { %v7140_v31 = vmul.f32 %v7132_v45, %v7132_v45  ;;  %v7142_v37 = vld [vmem:[#allocation2 + $0x41] sm:$0xff]  ;;  %v7170_v38 = vmul.f32 %v7162_v11, %v7162_v11  ;;  %2962 = vst.msk [vmem:[#allocation3 + $0xb8] sm:$0xff] %vm1310_vm6, %v9113_v41  ;;  %2963 = vst.msk [vmem:[#allocation3 + $0x168] sm:$0xff] %vm1310_vm6, %v9113_v41 }
 0x38c   :  { %v7150_v5 = vmul.f32 %v7142_v37, %v7142_v37  ;;  %2964 = vst.msk [vmem:[#allocation3 + $0x170] sm:$0xff] %vm1310_vm6, %v9113_v41  ;;  %2965 = vst.msk [vmem:[#allocation3 + $0x178] sm:$0xff] %vm1310_vm6, %v9113_v41 }
 0x38d   :  { %2236 = vrot.lane.b32.xlu1 %v7100_v59, %s5440_s21  ;;  %2967 = vst.msk [vmem:[#allocation3 + $0x18] sm:$0xff] %vm1310_vm6, %v9113_v41  ;;  %2968 = vst.msk [vmem:[#allocation3 + $0x30] sm:$0xff] %vm1310_vm6, %v9113_v41 }
 0x38e   :  { %2533 = vrot.lane.b32.xlu0 %v7090_v40, %s5440_s21  ;;  %2969 = vst.msk [vmem:[#allocation3 + $0x48] sm:$0xff] %vm1310_vm6, %v9113_v41  ;;  %2970 = vst.msk [vmem:[#allocation3 + $0x60] sm:$0xff] %vm1310_vm6, %v9113_v41 }
 0x38f   :  { %2971 = vst.msk [vmem:[#allocation3 + $0x78] sm:$0xff] %vm1310_vm6, %v9113_v41  ;;  %2972 = vst.msk [vmem:[#allocation3 + $0x90] sm:$0xff] %vm1310_vm6, %v9113_v41 }
 0x390   :  { %2973 = vst.msk [vmem:[#allocation3 + $0xd8] sm:$0xff] %vm1310_vm6, %v9113_v41  ;;  %2974 = vst.msk [vmem:[#allocation3 + $0xf0] sm:$0xff] %vm1310_vm6, %v9113_v41 }
 0x391   :  { %2535 = vrot.lane.b32.xlu1 %v7100_v59, %s5440_s21  ;;  %2975 = vst.msk [vmem:[#allocation3 + $0x108] sm:$0xff] %vm1310_vm6, %v9113_v41  ;;  %2976 = vst.msk [vmem:[#allocation3 + $0x120] sm:$0xff] %vm1310_vm6, %v9113_v41 }
 0x392   :  { %2320 = vrot.lane.b32.xlu0 %v7110_v29, %s5440_s21  ;;  %2977 = vst.msk [vmem:[#allocation3 + $0x138] sm:$0xff] %vm1310_vm6, %v9113_v41  ;;  %2978 = vst.msk [vmem:[#allocation3 + $0x150] sm:$0xff] %vm1310_vm6, %v9113_v41 }
 0x393   :  { %2979 = vst.msk [vmem:[#allocation3 + $0x28] sm:$0xff] %vm1310_vm6, %v9113_v41  ;;  %2980 = vst.msk [vmem:[#allocation3 + $0x40] sm:$0xff] %vm1310_vm6, %v9113_v41 }
 0x394   :  { %2981 = vst.msk [vmem:[#allocation3 + $0x58] sm:$0xff] %vm1310_vm6, %v9113_v41  ;;  %2982 = vst.msk [vmem:[#allocation3 + $0x70] sm:$0xff] %vm1310_vm6, %v9113_v41 }
 0x395   :  { %2238 = vrot.lane.b32.xlu1 %v7120_v30, %s5440_s21  ;;  %2983 = vst.msk [vmem:[#allocation3 + $0x88] sm:$0xff] %vm1310_vm6, %v9113_v41  ;;  %2984 = vst.msk [vmem:[#allocation3 + $0xa0] sm:$0xff] %vm1310_vm6, %v9113_v41 }
 0x396   :  { %2701 = vrot.lane.b32.xlu0 %v7086_v34, %s5440_s21  ;;  %2985 = vst.msk [vmem:[#allocation3 + $0xe8] sm:$0xff] %vm1310_vm6, %v9113_v41  ;;  %2986 = vst.msk [vmem:[#allocation3 + $0x100] sm:$0xff] %vm1310_vm6, %v9113_v41 }
 0x397   :  { %2987 = vst.msk [vmem:[#allocation3 + $0x118] sm:$0xff] %vm1310_vm6, %v9113_v41  ;;  %2988 = vst.msk [vmem:[#allocation3 + $0x130] sm:$0xff] %vm1310_vm6, %v9113_v41 }
 0x398   :  { %2989 = vst.msk [vmem:[#allocation3 + $0x148] sm:$0xff] %vm1310_vm6, %v9113_v41  ;;  %2990 = vst.msk [vmem:[#allocation3 + $0x160] sm:$0xff] %vm1310_vm6, %v9113_v41 }
 0x399   :  { %2537 = vrot.lane.b32.xlu1 %v7120_v30, %s5440_s21  ;;  %9151 = vst [vmem:[#allocation20_spill] sm:$0xff] %v7396_v13 }
 0x39a   :  { %2322 = vrot.lane.b32.xlu0 %v7130_v25, %s5440_s21 }
 0x39d   :  { %2240 = vrot.lane.b32.xlu1 %v7140_v31, %s5440_s21 }
 0x39e   :  { %2703 = vrot.lane.b32.xlu0 %v7110_v29, %s5440_s21 }
 0x3a1   :  { %2539 = vrot.lane.b32.xlu1 %v7140_v31, %s5440_s21 }
 0x3a2   :  { %2324 = vrot.lane.b32.xlu0 %v7150_v5, %s5440_s21 }
 0x3a5   :  { %2242 = vrot.lane.b32.xlu1 %v7160_v6, %s5440_s21 }
 0x3a6   :  { %2705 = vrot.lane.b32.xlu0 %v7130_v25, %s5440_s21 }
 0x3a9   :  { %2541 = vrot.lane.b32.xlu1 %v7160_v6, %s5440_s21 }
 0x3aa   :  { %2326 = vrot.lane.b32.xlu0 %v7170_v38, %s5440_s21 }
 0x3ad   :  { %2244 = vrot.lane.b32.xlu1 %v7180_v58, %s5440_s21 }
 0x3ae   :  { %2707 = vrot.lane.b32.xlu0 %v7150_v5, %s5440_s21 }
 0x3b1   :  { %2543 = vrot.lane.b32.xlu1 %v7192_v19, %s5440_s21 }
 0x3b2   :  { %2328 = vrot.lane.b32.xlu0 %v7196_v51, %s5440_s21 }
 0x3b5   :  { %2246 = vrot.lane.b32.xlu1 %v7206_v9, %s5440_s21 }
 0x3b6   :  { %2709 = vrot.lane.b32.xlu0 %v7170_v38, %s5440_s21 }
 0x3b9   :  { %2545 = vrot.lane.b32.xlu1 %v7206_v9, %s5440_s21 }
 0x3ba   :  { %2330 = vrot.lane.b32.xlu0 %v7216_v26, %s5440_s21 }
 0x3bd   :  { %2248 = vrot.lane.b32.xlu1 %v7228_v61, %s5440_s21 }
 0x3be   :  { %2711 = vrot.lane.b32.xlu0 %v7232_v62, %s5440_s21 }
 0x3c1   :  { %2547 = vrot.lane.b32.xlu1 %v7228_v61, %s5440_s21 }
 0x3c2   :  { %2332 = vrot.lane.b32.xlu0 %v7242_v23, %s5440_s21 }
 0x3c5   :  { %2250 = vrot.lane.b32.xlu1 %v7252_v52, %s5440_s21 }
 0x3c6   :  { %2713 = vrot.lane.b32.xlu0 %v7216_v26, %s5440_s21 }
 0x3c9   :  { %2549 = vrot.lane.b32.xlu1 %v7252_v52, %s5440_s21 }
 0x3ca   :  { %2334 = vrot.lane.b32.xlu0 %v7262_v20, %s5440_s21 }
 0x3cd   :  { %2252 = vrot.lane.b32.xlu1 %v7272_v17, %s5440_s21 }
 0x3ce   :  { %2715 = vrot.lane.b32.xlu0 %v7242_v23, %s5440_s21 }
 0x3d1   :  { %2551 = vrot.lane.b32.xlu1 %v7272_v17, %s5440_s21 }
 0x3d2   :  { %2336 = vrot.lane.b32.xlu0 %v7282_v15, %s5440_s21 }
 0x3d5   :  { %2388 = vrot.lane.b32.xlu1 %v7059_v60, %s5440_s21  ;;  %v7422_v60 = vmul.f32 %v7410_v55, %v7410_v55 }
 0x3d6   :  { %2717 = vrot.lane.b32.xlu0 %v7262_v20, %s5440_s21 }
 0x3d7   :  { %9152 = vst [vmem:[#allocation21_spill] sm:$0xff] %v7422_v60 }
 0x3d9   :  { %2254 = vrot.lane.b32.xlu1 %v7296_v53, %s5440_s21 }
 0x3da   :  { %2436 = vrot.lane.b32.xlu0 %v7061_v1, %s5440_s21 }
 0x3dd   :  { %2553 = vrot.lane.b32.xlu1 %v7296_v53, %s5440_s21 }
 0x3de   :  { %2338 = vrot.lane.b32.xlu0 %v7306_v24, %s5440_s21 }
 0x3e1   :  { %2719 = vrot.lane.b32.xlu1 %v7282_v15, %s5440_s21 }
 0x3e2   :  { %2605 = vrot.lane.b32.xlu0 %v7078_v28, %s5440_s21 }
 0x3e5   :  { %2438 = vrot.lane.b32.xlu1 %v7078_v28, %s5440_s21 }
 0x3e6   :  { %2390 = vrot.lane.b32.xlu0 %v7076_v44, %s5440_s21 }
 0x3e9   :  { %2555 = vrot.lane.b32.xlu1 %v7396_v13, %s5440_s21 }
 0x3ea   :  { %2773 = vrot.lane.b32.xlu0 %v7076_v44, %s5440_s21 }
 0x3ed   :  { %2721 = vrot.lane.b32.xlu1 %v7306_v24, %s5440_s21 }
 0x3ee   :  { %2607 = vrot.lane.b32.xlu0 %v7092_v43, %s5440_s21 }
 0x3f1   :  { %2440 = vrot.lane.b32.xlu1 %v7092_v43, %s5440_s21 }
 0x3f2   :  { %2392 = vrot.lane.b32.xlu0 %v7102_v22, %s5440_s21 }
 0x3f5   :  { %2609 = vrot.lane.b32.xlu1 %v7112_v33, %s5440_s21 }
 0x3f6   :  { %2775 = vrot.lane.b32.xlu0 %v7102_v22, %s5440_s21 }
 0x3f7   :  { %v7416_v0 = vpop.permute.xlu1 %2316 }
 0x3f8   :  { %v7418_v63 = vpop.permute.xlu0 %2232 }
 0x3f9   :  { %2394 = vrot.lane.b32.xlu1 %v7122_v35, %s5440_s21 }
 0x3fa   :  { %2723 = vrot.lane.b32.xlu0 %v7422_v60, %s5440_s21 }
 0x3fb   :  { %v7428_v1 = vpop.permute.xlu1 %2318 }
 0x3fc   :  { %v7430_v44 = vpop.permute.xlu0 %2234 }
 0x3fd   :  { %2777 = vrot.lane.b32.xlu1 %v7122_v35, %s5440_s21 }
 0x3fe   :  { %2442 = vrot.lane.b32.xlu0 %v7112_v33, %s5440_s21 }
 0x3ff   :  { %v7436_v28 = vpop.permute.xlu1 %2236 }
 0x400   :  { %v2534_v43 = vpop.permute.xlu0 %2533 }
 0x401   :  { %2396 = vrot.lane.b32.xlu1 %v7142_v37, %s5440_s21 }
 0x402   :  { %2611 = vrot.lane.b32.xlu0 %v7132_v45, %s5440_s21 }
 0x403   :  { %v7442_v22 = vpop.permute.xlu1 %2535 }
 0x404   :  { %v7444_v16 = vpop.permute.xlu0 %2320 }
 0x405   :  { %2779 = vrot.lane.b32.xlu1 %v7142_v37, %s5440_s21 }
 0x406   :  { %2444 = vrot.lane.b32.xlu0 %v7132_v45, %s5440_s21 }
 0x407   :  { %v7450_v33 = vpop.permute.xlu1 %2238 }
 0x408   :  { %v2702_v35 = vpop.permute.xlu0 %2701 }
 0x409   :  { %2398 = vrot.lane.b32.xlu1 %v7162_v11, %s5440_s21 }
 0x40a   :  { %2613 = vrot.lane.b32.xlu0 %v7152_v42, %s5440_s21 }
 0x40b   :  { %v7456_v41 = vpop.permute.xlu1 %2537 }
 0x40c   :  { %v7458_v10 = vpop.permute.xlu0 %2322 }
 0x40d   :  { %2781 = vrot.lane.b32.xlu1 %v7162_v11, %s5440_s21 }
 0x40e   :  { %2446 = vrot.lane.b32.xlu0 %v7152_v42, %s5440_s21 }
 0x40f   :  { %v7464_v45 = vpop.permute.xlu1 %2240 }
 0x410   :  { %v7466_v37 = vpop.permute.xlu0 %2703 }
 0x411   :  { %2400 = vrot.lane.b32.xlu1 %v7184_v2, %s5440_s21 }
 0x412   :  { %2615 = vrot.lane.b32.xlu0 %v7182_v46, %s5440_s21 }
 0x413   :  { %v7472_v12 = vpop.permute.xlu1 %2539 }
 0x414   :  { %v7474_v4 = vpop.permute.xlu0 %2324 }
 0x415   :  { %2783 = vrot.lane.b32.xlu1 %v7220_v48, %s5440_s21 }
 0x416   :  { %2448 = vrot.lane.b32.xlu0 %v7172_v49, %s5440_s21 }
 0x417   :  { %v7480_v42 = vpop.permute.xlu1 %2242 }
 0x418   :  { %v7482_v11 = vpop.permute.xlu0 %2705 }
 0x419   :  { %2402 = vrot.lane.b32.xlu1 %v7208_v3, %s5440_s21 }
 0x41a   :  { %2617 = vrot.lane.b32.xlu0 %v7198_v21, %s5440_s21 }
 0x41b   :  { %v7488_v46 = vpop.permute.xlu1 %2541 }
 0x41c   :  { %v7490_v2 = vpop.permute.xlu0 %2326 }
 0x41d   :  { %2785 = vrot.lane.b32.xlu1 %v7208_v3, %s5440_s21 }
 0x41e   :  { %2450 = vrot.lane.b32.xlu0 %v7198_v21, %s5440_s21 }
 0x41f   :  { %v7496_v49 = vpop.permute.xlu1 %2244 }
 0x420   :  { %v7498_v48 = vpop.permute.xlu0 %2707 }
 0x421   :  { %2404 = vrot.lane.b32.xlu1 %v7234_v18, %s5440_s21  ;;  %v7743_v52 = vadd.f32 %v7498_v48, %v7150_v5 }
 0x422   :  { %2619 = vrot.lane.b32.xlu0 %v7218_v39, %s5440_s21 }
 0x423   :  { %v7504_v8 = vpop.permute.xlu1 %2543 }
 0x424   :  { %v7506_v56 = vpop.permute.xlu0 %2328 }
 0x425   :  { %2787 = vrot.lane.b32.xlu1 %v7234_v18, %s5440_s21 }
 0x426   :  { %2452 = vrot.lane.b32.xlu0 %v7218_v39, %s5440_s21 }
 0x427   :  { %v7512_v21 = vpop.permute.xlu1 %2246 }
 0x428   :  { %v7514_v3 = vpop.permute.xlu0 %2709 }
 0x429   :  { %2406 = vrot.lane.b32.xlu1 %v7254_v54, %s5440_s21 }
 0x42a   :  { %2621 = vrot.lane.b32.xlu0 %v7244_v36, %s5440_s21 }
 0x42b   :  { %v7520_v60 = vpop.permute.xlu1 %2545 }
 0x42c   :  { %v7522_v13 = vpop.permute.xlu0 %2330 }
 0x42d   :  { %2789 = vrot.lane.b32.xlu1 %v7254_v54, %s5440_s21  ;;  %v7542_v54 = vadd.f32 %v7416_v0, %v7067_v32  ;;  %v7559_v32 = vadd.f32 %v2534_v43, %v7090_v40  ;;  %v7579_v0 = vadd.f32 %v2702_v35, %v7086_v34  ;;  %v7598_v35 = vadd.f32 %v7428_v1, %v7086_v34 }
 0x42e   :  { %2454 = vrot.lane.b32.xlu0 %v7244_v36, %s5440_s21  ;;  %v7546_v36 = vadd.f32 %v7418_v63, %v7071_v14 }
 0x42f   :  { %v7528_v39 = vpop.permute.xlu1 %2248 }
 0x430   :  { %9153 = vst [vmem:[#allocation22_spill] sm:$0xff] %v7528_v39  ;;  %v7530_v18 = vpop.permute.xlu0 %2711  ;;  %vm2364_vm13 = vcmp.gt.f32.partialorder %v7542_v54, %v7546_v36 }
 0x431   :  { %2408 = vrot.lane.b32.xlu1 %v7274_v47, %s5440_s21 }
 0x432   :  { %2623 = vrot.lane.b32.xlu0 %v7264_v27, %s5440_s21 }
 0x433   :  { %v7536_v24 = vpop.permute.xlu1 %2547 }
 0x434   :  { %v7538_v53 = vpop.permute.xlu0 %2332 }
 0x435   :  { %9154 = vst [vmem:[#allocation23_spill] sm:$0xff] %v7538_v53  ;;  %2791 = vrot.lane.b32.xlu1 %v7274_v47, %s5440_s21 }
 0x436   :  { %2456 = vrot.lane.b32.xlu0 %v7264_v27, %s5440_s21  ;;  %v7574_v27 = vsel %vm2364_vm13, %v7542_v54, %v7546_v36  ;;  %v5443_v36 = vmov -1.0  }
 0x437   :  { %v7552_v15 = vpop.permute.xlu1 %2250  ;;  %vm2581_vm14 = vcmp.gt.f32.partialorder %v7559_v32, %v7574_v27 }
 0x438   :  { %9155 = vst [vmem:[#allocation24_spill] sm:$0xff] %v7552_v15  ;;  %v7554_v17 = vpop.permute.xlu0 %2713  ;;  %v7594_v15 = vsel %vm2581_vm14, %v7559_v32, %v7574_v27 }
 0x439   :  { %2410 = vrot.lane.b32.xlu1 %v7298_v57, %s5440_s21  ;;  %vm2749_vm15 = vcmp.gt.f32.partialorder %v7579_v0, %v7594_v15 }
 0x43a   :  { %2625 = vrot.lane.b32.xlu0 %v7288_v50, %s5440_s21  ;;  %v7619_v34 = vsel %vm2749_vm15, %v7579_v0, %v7594_v15 }
 0x43b   :  { %v7565_v14 = vpop.permute.xlu1 %2549  ;;  %5380 = vrsqrt.f32 %v7619_v34  ;;  %vm2835_vm12 = vcmp.eq.f32.partialorder %v7619_v34, inf }
 0x43c   :  { %9156 = vst [vmem:[#allocation25_spill] sm:$0xff] %v7565_v14  ;;  %v7567_v47 = vpop.permute.xlu0 %2334 }
 0x43d   :  { %9157 = vst [vmem:[#allocation26_spill] sm:$0xff] %v7567_v47  ;;  %2793 = vrot.lane.b32.xlu1 %v7298_v57, %s5440_s21  ;;  %v7602_v57 = vadd.f32 %v7430_v44, %v7090_v40  ;;  %v7625_v40 = vadd.f32 %v7442_v22, %v7100_v59  ;;  %v7642_v22 = vadd.f32 %v7444_v16, %v7110_v29 }
 0x43e   :  { %2458 = vrot.lane.b32.xlu0 %v7288_v50, %s5440_s21  ;;  %v3015_v50 = vld [vmem:[#allocation3 + $0x8] sm:$0xff] }
 0x43f   :  { %v7585_v63 = vpop.permute.xlu1 %2252  ;;  %vm2365_vm0 = vcmp.gt.f32.partialorder %v7598_v35, %v7602_v57 }
 0x440   :  { %9158 = vst [vmem:[#allocation27_spill] sm:$0xff] %v7585_v63  ;;  %v7587_v43 = vpop.permute.xlu0 %2715  ;;  %v7636_v44 = vsel %vm2365_vm0, %v7598_v35, %v7602_v57 }
 0x441   :  { %9159 = vst [vmem:[#allocation28_spill] sm:$0xff] %v7587_v43  ;;  %2795 = vrot.lane.b32.xlu1 %v7410_v55, %s5440_s21  ;;  %vm2582_vm3 = vcmp.gt.f32.partialorder %v7625_v40, %v7636_v44  ;;  %v7751_v43 = vadd.f32 %v7464_v45, %v7140_v31  ;;  %v7776_v45 = vadd.f32 %v7488_v46, %v7160_v6 }
 0x442   :  { %2627 = vrot.lane.b32.xlu0 %v7388_v7, %s5440_s21  ;;  %v3027_v7 = vld [vmem:[#allocation3 + $0x9] sm:$0xff]  ;;  %v7660_v16 = vsel %vm2582_vm3, %v7625_v40, %v7636_v44 }
 0x443   :  { %v7610_v63 = vpop.permute.xlu1 %2551 }
 0x444   :  { %9160 = vst [vmem:[#allocation29_spill] sm:$0xff] %v7610_v63  ;;  %v7612_v47 = vpop.permute.xlu0 %2336 }
 0x445   :  { %9161 = vst [vmem:[#allocation30_spill] sm:$0xff] %v7612_v47  ;;  %v7651_v47 = vadd.f32 %v7436_v28, %v7100_v59 }
 0x446   :  { %3124 = vrot.lane.b32.xlu0 %v3015_v50, %s5437_s12  ;;  %v7646_v50 = vadd.f32 %v7466_v37, %v7110_v29  ;;  %v7666_v29 = vadd.f32 %v7456_v41, %v7120_v30 }
 0x447   :  { %v2389_v55 = vpop.permute.xlu1 %2388  ;;  %vm2366_vm4 = vcmp.gt.f32.partialorder %v7642_v22, %v7651_v47 }
 0x448   :  { %v7629_v1 = vpop.permute.xlu0 %2717  ;;  %vm2750_vm5 = vcmp.gt.f32.partialorder %v7646_v50, %v7660_v16  ;;  %v7679_v37 = vsel %vm2366_vm4, %v7642_v22, %v7651_v47  ;;  %v5381_v14 = vpop.eup %5380 }
 0x449   :  { %9162 = vst [vmem:[#allocation31_spill] sm:$0xff] %v7629_v1  ;;  %v7686_v41 = vsel %vm2750_vm5, %v7646_v50, %v7660_v16  ;;  %vm2583_vm7 = vcmp.gt.f32.partialorder %v7666_v29, %v7679_v37 }
 0x44a   :  { %3172 = vrot.lane.b32.xlu0 %v3027_v7, %s5442_s17  ;;  %v7692_v7 = vadd.f32 %v7458_v10, %v7130_v25  ;;  %5382 = vrsqrt.f32 %v7686_v41  ;;  %v7710_v10 = vsel %vm2583_vm7, %v7666_v29, %v7679_v37  ;;  %vm2842_vm2 = vcmp.eq.f32.partialorder %v7686_v41, inf }
 0x44b   :  { %v7653_v63 = vpop.permute.xlu1 %2254  ;;  %vm2844_vm11 = vcmp.eq.f32.partialorder %v7686_v41, 0.0  ;;  %v2845_v40 = vand.u32 2147483648, %v7686_v41 }
 0x44c   :  { %9163 = vst [vmem:[#allocation32_spill] sm:$0xff] %v7653_v63  ;;  %v2437_v1 = vpop.permute.xlu0 %2436  ;;  %v7696_v63 = vadd.f32 %v7482_v11, %v7130_v25  ;;  %v2834_v11 = vmul.f32 %v5381_v14, %v7619_v34  ;;  %v7739_v14 = vadd.f32 %v7474_v4, %v7150_v5 }
 0x44d   :  { %v2472_v39 = vsel %vm2364_vm13, %v2389_v55, %v2437_v1  ;;  %vm2837_vm13 = vcmp.eq.f32.partialorder %v7619_v34, 0.0  ;;  %v7801_v1 = vadd.f32 %v7490_v2, %v7170_v38 }
 0x44e   :  { %vm2751_vm9 = vcmp.gt.f32.partialorder %v7696_v63, %v7710_v10  ;;  %v2836_v5 = vsel %vm2835_vm12, %v7619_v34, %v2834_v11  ;;  %v7805_v11 = vadd.f32 %v7514_v3, %v7170_v38 }
 0x44f   :  { %v7670_v59 = vpop.permute.xlu1 %2553 }
 0x450   :  { %9164 = vst [vmem:[#allocation33_spill] sm:$0xff] %v7670_v59  ;;  %v7672_v28 = vpop.permute.xlu0 %2338 }
 0x451   :  { %9165 = vst [vmem:[#allocation34_spill] sm:$0xff] %v7672_v28  ;;  %v7700_v28 = vadd.f32 %v7450_v33, %v7120_v30  ;;  %v7716_v30 = vadd.f32 %v7472_v12, %v7140_v31  ;;  %v7733_v12 = vsel %vm2751_vm9, %v7696_v63, %v7710_v10  ;;  %v2838_v31 = vand.u32 2147483648, %v7619_v34 }
 0x452   :  { %5384 = vrsqrt.f32 %v7733_v12  ;;  %v2852_v37 = vand.u32 2147483648, %v7733_v12  ;;  %v7943_v63 = vadd.f32 %v7512_v21, %v7206_v9  ;;  %v3611_v21 = vld [vmem:[%s9109_s1 + $0x80] sm:$0xf] }
 0x453   :  { %v7703_v59 = vpop.permute.xlu1 %2719  ;;  %vm2367_vm8 = vcmp.gt.f32.partialorder %v7692_v7, %v7700_v28 }
 0x454   :  { %9166 = vst [vmem:[#allocation35_spill] sm:$0xff] %v7703_v59  ;;  %v2606_v20 = vpop.permute.xlu0 %2605  ;;  %v7726_v59 = vsel %vm2367_vm8, %v7692_v7, %v7700_v28 }
 0x455   :  { %vm2584_vm10 = vcmp.gt.f32.partialorder %v7716_v30, %v7726_v59  ;;  %v2641_v4 = vsel %vm2581_vm14, %v2606_v20, %v2472_v39  ;;  %vm2368_vm14 = vcmp.gt.f32.partialorder %v7739_v14, %v7751_v43  ;;  %v2839_v39 = vsel %vm2837_vm13, %v2838_v31, %v2836_v5 }
 0x456   :  { %v7765_v54 = vsel %vm2584_vm10, %v7716_v30, %v7726_v59  ;;  %v7788_v46 = vsel %vm2368_vm14, %v7739_v14, %v7751_v43 }
 0x457   :  { %v2439_v25 = vpop.permute.xlu1 %2438  ;;  %vm2752_vm12 = vcmp.gt.f32.partialorder %v7743_v52, %v7765_v54  ;;  %v5383_v0 = vpop.eup %5382 }
 0x458   :  { %v2391_v33 = vpop.permute.xlu0 %2390  ;;  %v7795_v55 = vsel %vm2752_vm12, %v7743_v52, %v7765_v54  ;;  %v2841_v31 = vmul.f32 %v5383_v0, %v7686_v41  ;;  %v3608_v52 = vld [vmem:[%s9109_s1 + $0x68] sm:$0xff] }
 0x459   :  { %5386 = vrsqrt.f32 %v7795_v55  ;;  %v2473_v38 = vsel %vm2365_vm0, %v2391_v33, %v2439_v25  ;;  %v2859_v30 = vand.u32 2147483648, %v7795_v55 }
 0x45b   :  { %v7757_v53 = vpop.permute.xlu1 %2555 }
 0x45c   :  { %v2774_v48 = vpop.permute.xlu0 %2773 }
 0x45d   :  { %v2809_v20 = vsel %vm2749_vm15, %v2774_v48, %v2641_v4  ;;  %v7810_v4 = vadd.f32 %v7480_v42, %v7160_v6  ;;  %v7825_v6 = vadd.f32 %v7504_v8, %v7192_v19 }
 0x45e   :  { %vm2917_vm1 = vcmp.ge.f32.partialorder %v2809_v20, 0.0  ;;  %v2843_v20 = vsel %vm2842_vm2, %v7686_v41, %v2841_v31 }
 0x45f   :  { %v2929_v32 = vsel %vm2917_vm1, 1.0, %v5443_v36  ;;  %v7781_v34 = vpop.permute.xlu1 %2721  ;;  %vm2585_vm1 = vcmp.gt.f32.partialorder %v7776_v45, %v7788_v46  ;;  %vm2369_vm15 = vcmp.gt.f32.partialorder %v7801_v1, %v7810_v4  ;;  %v5385_v19 = vpop.eup %5384  ;;  %v2846_v50 = vsel %vm2844_vm11, %v2845_v40, %v2843_v20 }
 0x460   :  { %v2941_v27 = vmul.f32 %v2929_v32, %v2839_v39  ;;  %v2608_v15 = vpop.permute.xlu0 %2607  ;;  %v7819_v2 = vsel %vm2585_vm1, %v7776_v45, %v7788_v46  ;;  %v7843_v35 = vsel %vm2369_vm15, %v7801_v1, %v7810_v4  ;;  %v7862_v39 = vadd.f32 %v7506_v56, %v7196_v51 }
 0x461   :  { %vm2753_vm13 = vcmp.gt.f32.partialorder %v7805_v11, %v7819_v2  ;;  %v2642_v42 = vsel %vm2582_vm3, %v2608_v15, %v2473_v38  ;;  %vm2586_vm2 = vcmp.gt.f32.partialorder %v7825_v6, %v7843_v35  ;;  %v7866_v32 = vadd.f32 %v7530_v18, %v7232_v62 }
 0x462   :  { %2991 = vst.msk [vmem:[#allocation3 + $0x20] sm:$0xff] %vm1310_vm6, %v2941_v27  ;;  %v7850_v57 = vsel %vm2753_vm13, %v7805_v11, %v7819_v2  ;;  %v7876_v56 = vadd.f32 %v7496_v49, %v7180_v58  ;;  %v2848_v27 = vmul.f32 %v5385_v19, %v7733_v12  ;;  %v7887_v41 = vsel %vm2586_vm2, %v7825_v6, %v7843_v35  ;;  %v3605_v11 = vld [vmem:[%s9109_s1 + $0x50] sm:$0xff] }
 0x463   :  { %v2441_v5 = vpop.permute.xlu1 %2440  ;;  %5388 = vrsqrt.f32 %v7850_v57  ;;  %v7895_v58 = vadd.f32 %v7520_v60, %v7206_v9  ;;  %vm2754_vm3 = vcmp.gt.f32.partialorder %v7866_v32, %v7887_v41  ;;  %v7962_v9 = vadd.f32 %v7536_v24, %v7228_v61  ;;  %v3610_v24 = vld [vmem:[%s9109_s1 + $0x78] sm:$0xff] }
 0x464   :  { %v2393_v48 = vpop.permute.xlu0 %2392  ;;  %vm2370_vm11 = vcmp.gt.f32.partialorder %v7862_v39, %v7876_v56  ;;  %v7924_v22 = vsel %vm2754_vm3, %v7866_v32, %v7887_v41  ;;  %v3602_v32 = vld [vmem:[%s9109_s1 + $0x38] sm:$0xff] }
 0x465   :  { %v2474_v49 = vsel %vm2366_vm4, %v2393_v48, %v2441_v5  ;;  %v7917_v47 = vsel %vm2370_vm11, %v7862_v39, %v7876_v56  ;;  %v7934_v5 = vadd.f32 %v7522_v13, %v7216_v26  ;;  %v7938_v48 = vadd.f32 %v7554_v17, %v7216_v26  ;;  %v9187_v56 = vld [vmem:[#allocation32_spill] sm:$0xff] }
 0x466   :  { %vm9138_vm4 = vcmp.gt.f32.partialorder %v7895_v58, %v7917_v47  ;;  %5390 = vrsqrt.f32 %v7924_v22 }
 0x467   :  { %v2610_v3 = vpop.permute.xlu1 %2609  ;;  %v7952_v26 = vsel %vm9138_vm4, %v7895_v58, %v7917_v47  ;;  %vm2858_vm4 = vcmp.eq.f32.partialorder %v7795_v55, 0.0 }
 0x468   :  { %v2776_v8 = vpop.permute.xlu0 %2775  ;;  %v2643_v60 = vsel %vm2583_vm7, %v2610_v3, %v2474_v49 }
 0x469   :  { %v2810_v44 = vsel %vm2750_vm5, %v2776_v8, %v2642_v42  ;;  %v7856_v25 = vld [vmem:[#allocation3 + $0x1f] sm:$0xff]  ;;  %vm2849_vm5 = vcmp.eq.f32.partialorder %v7733_v12, inf  ;;  %v5387_v42 = vpop.eup %5386 }
 0x46a   :  { %v3016_v33 = vld [vmem:[#allocation3 + $0x20] sm:$0xff]  ;;  %vm2918_vm0 = vcmp.ge.f32.partialorder %v2810_v44, 0.0  ;;  %3220 = vrot.lane.b32.xlu0 %v7856_v25, %s5444_s22  ;;  %v2850_v31 = vsel %vm2849_vm5, %v7733_v12, %v2848_v27  ;;  %v2855_v13 = vmul.f32 %v5387_v42, %v7795_v55  ;;  %vm2371_vm5 = vcmp.gt.f32.partialorder %v7934_v5, %v7943_v63  ;;  %v9167_v27 = vld [vmem:[#allocation23_spill] sm:$0xff] }
 0x46b   :  { %3126 = vrot.lane.b32.xlu1 %v3016_v33, %s5437_s12  ;;  %v2930_v16 = vsel %vm2918_vm0, 1.0, %v5443_v36  ;;  %v2395_v62 = vpop.permute.xlu1 %2394  ;;  %v7889_v15 = vld [vmem:[#allocation3 + $0x21] sm:$0xff]  ;;  %vm2851_vm0 = vcmp.eq.f32.partialorder %v7733_v12, 0.0  ;;  %v7993_v28 = vsel %vm2371_vm5, %v7934_v5, %v7943_v63  ;;  %v8013_v49 = vadd.f32 %v9167_v27, %v7242_v23 }
 0x46c   :  { %v2942_v51 = vmul.f32 %v2930_v16, %v2846_v50  ;;  %v7879_v18 = vpop.permute.xlu0 %2723  ;;  %v2853_v3 = vsel %vm2851_vm0, %v2852_v37, %v2850_v31  ;;  %vm2755_vm0 = vcmp.gt.f32.partialorder %v7938_v48, %v7952_v26 }
 0x46d   :  { %v8000_v59 = vsel %vm2755_vm0, %v7938_v48, %v7952_v26  ;;  %v3599_v48 = vld [vmem:[%s9109_s1 + $0x20] sm:$0xff] }
 0x46e   :  { %2992 = vst.msk [vmem:[#allocation3 + $0x38] sm:$0xff] %vm1310_vm6, %v2942_v51  ;;  %3268 = vrot.lane.b32.xlu0 %v3016_v33, %s5445_s24  ;;  %5392 = vrsqrt.f32 %v8000_v59  ;;  %v9188_v26 = vld [vmem:[#allocation20_spill] sm:$0xff] }
 0x46f   :  { %3174 = vrot.lane.b32.xlu1 %v7889_v15, %s5442_s17  ;;  %v2778_v0 = vpop.permute.xlu1 %2777 }
 0x470   :  { %v2443_v38 = vpop.permute.xlu0 %2442  ;;  %v2811_v29 = vsel %vm2751_vm9, %v2778_v0, %v2643_v60  ;;  %vm9139_vm9 = vcmask 1043456   ;;  %v5389_v51 = vpop.eup %5388  ;;  %v9168_v60 = vld [vmem:[#allocation28_spill] sm:$0xff] }
 0x471   :  { %vm2919_vm7 = vcmp.ge.f32.partialorder %v2811_v29, 0.0  ;;  %v2475_v40 = vsel %vm2367_vm8, %v2395_v62, %v2443_v38  ;;  %5259 = vmatprep.subr.msk.mxu1 %vm9139_vm9, %v3611_v21  ;;  %v3609_v62 = vld [vmem:[%s9109_s1 + $0x70] sm:$0xff]  ;;  %vm2588_vm8 = vcmp.gt.f32.partialorder %v7962_v9, %v7993_v28  ;;  %v8017_v0 = vadd.f32 %v9168_v60, %v7242_v23  ;;  %v9175_v60 = vld [vmem:[#allocation24_spill] sm:$0xff] }
 0x472   :  { %v2931_v20 = vsel %vm2919_vm7, 1.0, %v5443_v36  ;;  %vm2856_vm7 = vcmp.eq.f32.partialorder %v7795_v55, inf  ;;  %5260 = vmatpush3.msk.msra.mxu1 %vm9139_vm9, %v3611_v21  ;;  %v9169_v38 = vld [vmem:[#allocation22_spill] sm:$0xff] }
 0x473   :  { %v2943_v10 = vmul.f32 %v2931_v20, %v2853_v3  ;;  %v2397_v12 = vpop.permute.xlu1 %2396  ;;  %v2857_v50 = vsel %vm2856_vm7, %v7795_v55, %v2855_v13  ;;  %5261 = vmatprep.subr.mxu1 %v3610_v24  ;;  %v8029_v42 = vadd.f32 %v9169_v38, %v7228_v61  ;;  %v2862_v3 = vmul.f32 %v5389_v51, %v7850_v57  ;;  %v9170_v61 = vld [vmem:[#allocation14_spill] sm:$0xff]  ;;  %v3607_v13 = vld [vmem:[%s9109_s1 + $0x60] sm:$0xff]  ;;  %v5391_v43 = vpop.eup %5390 }
 0x474   :  { %v2612_v8 = vpop.permute.xlu0 %2611  ;;  %5262 = vmatpush3.msra.mxu1 %v3610_v24  ;;  %v2860_v54 = vsel %vm2858_vm4, %v2859_v30, %v2857_v50  ;;  %v8038_v55 = vsel %vm2588_vm8, %v7962_v9, %v7993_v28  ;;  %vm2863_vm7 = vcmp.eq.f32.partialorder %v7850_v57, inf  ;;  %v9173_v51 = vld [vmem:[#allocation26_spill] sm:$0xff]  ;;  %v9174_v30 = vld [vmem:[#allocation31_spill] sm:$0xff] }
 0x475   :  { %v7954_v17 = vld [vmem:[#allocation3 + $0x38] sm:$0xff]  ;;  %2993 = vst.msk [vmem:[#allocation3 + $0x50] sm:$0xff] %vm1310_vm6, %v2943_v10  ;;  %v2644_v44 = vsel %vm2584_vm10, %v2612_v8, %v2475_v40  ;;  %5263 = vmatprep.subr.mxu1 %v3609_v62  ;;  %v9171_v10 = vld [vmem:[#allocation25_spill] sm:$0xff]  ;;  %vm2756_vm4 = vcmp.gt.f32.partialorder %v8017_v0, %v8038_v55 }
 0x476   :  { %v7956_v19 = vld [vmem:[#allocation3 + $0x37] sm:$0xff]  ;;  %3270 = vrot.lane.b32.xlu0 %v7954_v17, %s5445_s24  ;;  %5264 = vmatpush3.msra.mxu1 %v3609_v62  ;;  %v8046_v8 = vadd.f32 %v9171_v10, %v9170_v61  ;;  %v8082_v45 = vsel %vm2756_vm4, %v8017_v0, %v8038_v55  ;;  %v9177_v10 = vld [vmem:[#allocation29_spill] sm:$0xff] }
 0x477   :  { %3222 = vrot.lane.b32.xlu1 %v7956_v19, %s5444_s22  ;;  %v2780_v33 = vpop.permute.xlu1 %2779  ;;  %5265 = vmatprep.subr.mxu1 %v3608_v52  ;;  %v8088_v50 = vld [vmem:[#allocation3 + $0x39] sm:$0xff]  ;;  %5394 = vrsqrt.f32 %v8082_v45  ;;  %vm2884_vm9 = vcmp.eq.f32.partialorder %v8082_v45, inf  ;;  %v2887_v63 = vand.u32 2147483648, %v8082_v45 }
 0x478   :  { %v2445_v16 = vpop.permute.xlu0 %2444  ;;  %v2812_v7 = vsel %vm2752_vm12, %v2780_v33, %v2644_v44  ;;  %vm2372_vm12 = vcmp.gt.f32.partialorder %v8013_v49, %v8029_v42  ;;  %5266 = vmatpush3.msra.mxu1 %v3608_v52  ;;  %v2864_v44 = vsel %vm2863_vm7, %v7850_v57, %v2862_v3  ;;  %v3606_v33 = vld [vmem:[%s9109_s1 + $0x58] sm:$0xff]  ;;  %v8112_v52 = vadd.f32 %v9175_v60, %v9170_v61  ;;  %v3604_v3 = vld [vmem:[%s9109_s1 + $0x48] sm:$0xff] }
 0x479   :  { %vm2920_vm10 = vcmp.ge.f32.partialorder %v2812_v7, 0.0  ;;  %v2476_v21 = vsel %vm2368_vm14, %v2397_v12, %v2445_v16  ;;  %5267 = vmatprep.subr.mxu1 %v3607_v13  ;;  %v8075_v14 = vsel %vm2372_vm12, %v8013_v49, %v8029_v42  ;;  %v2866_v12 = vand.u32 2147483648, %v7850_v57  ;;  %v9172_v16 = vld [vmem:[#allocation15_spill] sm:$0xff]  ;;  %v9176_v61 = vld [vmem:[#allocation16_spill] sm:$0xff] }
 0x47a   :  { %v2932_v31 = vsel %vm2920_vm10, 1.0, %v5443_v36  ;;  %vm2865_vm10 = vcmp.eq.f32.partialorder %v7850_v57, 0.0  ;;  %5268 = vmatpush3.msra.mxu1 %v3607_v13  ;;  %vm2589_vm14 = vcmp.gt.f32.partialorder %v8046_v8, %v8075_v14  ;;  %v8094_v7 = vadd.f32 %v9173_v51, %v9172_v16  ;;  %v9180_v51 = vld [vmem:[#allocation35_spill] sm:$0xff] }
 0x47b   :  { %3128 = vrot.lane.b32.xlu1 %v7954_v17, %s5437_s12  ;;  %v2944_v23 = vmul.f32 %v2932_v31, %v2860_v54  ;;  %v2399_v29 = vpop.permute.xlu1 %2398  ;;  %v8098_v62 = vadd.f32 %v9174_v30, %v9172_v16  ;;  %v2867_v2 = vsel %vm2865_vm10, %v2866_v12, %v2864_v44  ;;  %5269 = vmatprep.subr.mxu1 %v3606_v33  ;;  %vm2870_vm10 = vcmp.eq.f32.partialorder %v7924_v22, inf  ;;  %v5393_v1 = vpop.eup %5392  ;;  %v9179_v12 = vld [vmem:[#allocation30_spill] sm:$0xff] }
 0x47c   :  { %v2614_v37 = vpop.permute.xlu0 %2613  ;;  %v8040_v20 = vld [vmem:[#allocation3 + $0x50] sm:$0xff]  ;;  %5270 = vmatpush3.msra.mxu1 %v3606_v33  ;;  %v8121_v57 = vsel %vm2589_vm14, %v8046_v8, %v8075_v14  ;;  %v8132_v13 = vadd.f32 %v9177_v10, %v9176_v61 }
 0x47d   :  { %2994 = vst.msk [vmem:[#allocation3 + $0x68] sm:$0xff] %vm1310_vm6, %v2944_v23  ;;  %3130 = vrot.lane.b32.xlu0 %v8040_v20, %s5437_s12  ;;  %v2645_v24 = vsel %vm2585_vm1, %v2614_v37, %v2476_v21  ;;  %v2869_v23 = vmul.f32 %v5391_v43, %v7924_v22  ;;  %v8123_v37 = vld [vmem:[#allocation3 + $0x51] sm:$0xff]  ;;  %5271 = vmatprep.subr.mxu1 %v3605_v11  ;;  %v3603_v43 = vld [vmem:[%s9109_s1 + $0x40] sm:$0xff] }
 0x47e   :  { %vm2757_vm7 = vcmp.gt.f32.partialorder %v8098_v62, %v8121_v57  ;;  %5272 = vmatpush3.msra.mxu1 %v3605_v11  ;;  %v9182_v10 = vld [vmem:[#allocation18_spill] sm:$0xff] }
 0x47f   :  { %3316 = vrot.lane.b32.xlu1 %v7889_v15, %s5446_s8  ;;  %v2782_v40 = vpop.permute.xlu1 %2781  ;;  %v2871_v44 = vsel %vm2870_vm10, %v7924_v22, %v2869_v23  ;;  %5273 = vmatprep.subr.mxu1 %v3604_v3  ;;  %v8165_v6 = vsel %vm2757_vm7, %v8098_v62, %v8121_v57  ;;  %v2876_v23 = vmul.f32 %v5393_v1, %v8000_v59 }
 0x480   :  { %v2447_v15 = vpop.permute.xlu0 %2446  ;;  %v2813_v46 = vsel %vm2753_vm13, %v2782_v40, %v2645_v24  ;;  %vm2373_vm13 = vcmp.gt.f32.partialorder %v8094_v7, %v8112_v52  ;;  %5274 = vmatpush3.msra.mxu1 %v3604_v3  ;;  %5396 = vrsqrt.f32 %v8165_v6  ;;  %v2894_v49 = vand.u32 2147483648, %v8165_v6 }
 0x481   :  { %vm2921_vm1 = vcmp.ge.f32.partialorder %v2813_v46, 0.0  ;;  %3318 = vrot.lane.b32.xlu0 %v8088_v50, %s5446_s8  ;;  %v2477_v21 = vsel %vm2369_vm15, %v2399_v29, %v2447_v15  ;;  %v8158_v4 = vsel %vm2373_vm13, %v8094_v7, %v8112_v52  ;;  %v2873_v29 = vand.u32 2147483648, %v7924_v22  ;;  %v8171_v15 = vld [vmem:[#allocation3 + $0x4f] sm:$0xff]  ;;  %v9178_v46 = vld [vmem:[#allocation17_spill] sm:$0xff]  ;;  %5275 = vmatprep.subr.mxu1 %v3603_v43 }
 0x482   :  { %v2933_v27 = vsel %vm2921_vm1, 1.0, %v5443_v36  ;;  %vm2872_vm1 = vcmp.eq.f32.partialorder %v7924_v22, 0.0  ;;  %vm2590_vm15 = vcmp.gt.f32.partialorder %v8132_v13, %v8158_v4  ;;  %v8177_v16 = vadd.f32 %v9179_v12, %v9178_v46  ;;  %5276 = vmatpush3.msra.mxu1 %v3603_v43 }
 0x483   :  { %3176 = vrot.lane.b32.xlu1 %v8088_v50, %s5442_s17  ;;  %v2945_v54 = vmul.f32 %v2933_v27, %v2867_v2  ;;  %v2401_v31 = vpop.permute.xlu1 %2400  ;;  %v8181_v30 = vadd.f32 %v9180_v51, %v9178_v46  ;;  %v2874_v41 = vsel %vm2872_vm1, %v2873_v29, %v2871_v44  ;;  %v9181_v2 = vld [vmem:[#allocation27_spill] sm:$0xff]  ;;  %v8206_v22 = vsel %vm2590_vm15, %v8132_v13, %v8158_v4  ;;  %v9185_v44 = vld [vmem:[#allocation34_spill] sm:$0xff] }
 0x484   :  { %v2616_v38 = vpop.permute.xlu0 %2615  ;;  %v8195_v27 = vadd.f32 %v9181_v2, %v9176_v61  ;;  %v8208_v3 = vld [vmem:[#allocation3 + $0x67] sm:$0xff]  ;;  %5277 = vmatprep.subr.mxu1 %v3602_v32  ;;  %v3601_v61 = vld [vmem:[%s9109_s1 + $0x30] sm:$0xff]  ;;  %vm2877_vm1 = vcmp.eq.f32.partialorder %v8000_v59, inf  ;;  %v2880_v46 = vand.u32 2147483648, %v8000_v59  ;;  %v5395_v39 = vpop.eup %5394 }
 0x485   :  { %2995 = vst.msk [vmem:[#allocation3 + $0x80] sm:$0xff] %vm1310_vm6, %v2945_v54  ;;  %3178 = vrot.lane.b32.xlu0 %v8123_v37, %s5442_s17  ;;  %v2646_v24 = vsel %vm2586_vm2, %v2616_v38, %v2477_v21  ;;  %v9183_v21 = vld [vmem:[#allocation33_spill] sm:$0xff]  ;;  %vm2758_vm10 = vcmp.gt.f32.partialorder %v8181_v30, %v8206_v22  ;;  %5278 = vmatpush3.msra.mxu1 %v3602_v32 }
 0x486   :  { %5279 = vmatprep.subr.mxu1 %v3601_v61  ;;  %v3600_v51 = vld [vmem:[%s9109_s1 + $0x28] sm:$0xff] }
 0x487   :  { %3364 = vrot.lane.b32.xlu1 %v7956_v19, %s5447_s18  ;;  %v2784_v40 = vpop.permute.xlu1 %2783  ;;  %5280 = vmatpush3.msra.mxu1 %v3601_v61  ;;  %v8382_v42 = vld [vmem:[#allocation3 + $0x69] sm:$0xff] }
 0x488   :  { %v2449_v33 = vpop.permute.xlu0 %2448  ;;  %v2814_v35 = vsel %vm2754_vm3, %v2784_v40, %v2646_v24  ;;  %vm2374_vm3 = vcmp.gt.f32.partialorder %v8177_v16, %v8195_v27  ;;  %v8217_v24 = vadd.f32 %v9183_v21, %v9182_v10  ;;  %v9184_v40 = vld [vmem:[#allocation19_spill] sm:$0xff]  ;;  %5281 = vmatprep.subr.mxu1 %v3600_v51 }
 0x489   :  { %vm2922_vm2 = vcmp.ge.f32.partialorder %v2814_v35, 0.0  ;;  %3366 = vrot.lane.b32.xlu0 %v8171_v15, %s5447_s18  ;;  %v8228_v43 = vadd.f32 %v9185_v44, %v9184_v40  ;;  %v2478_v1 = vsel %vm2370_vm11, %v2401_v31, %v2449_v33  ;;  %v8244_v31 = vadd.f32 %v9187_v56, %v9182_v10  ;;  %5282 = vmatpush3.msra.mxu1 %v3600_v51  ;;  %v9189_v10 = vld [vmem:[#allocation21_spill] sm:$0xff] }
 0x48a   :  { %v2934_v11 = vsel %vm2922_vm2, 1.0, %v5443_v36  ;;  %vm9186_vm2 = vcmp.gt.f32.partialorder %v7895_v58, %v7917_v47  ;;  %v8251_v58 = vsel %vm2374_vm3, %v8177_v16, %v8195_v27  ;;  %v8258_v47 = vsel %vm2758_vm10, %v8181_v30, %v8206_v22  ;;  %5283 = vmatprep.subr.mxu1 %v3599_v48 }
 0x48b   :  { %3224 = vrot.lane.b32.xlu1 %v8171_v15, %s5444_s22  ;;  %v2946_v60 = vmul.f32 %v2934_v11, %v2874_v41  ;;  %v8198_v54 = vpop.permute.xlu1 %2402  ;;  %vm2591_vm11 = vcmp.gt.f32.partialorder %v8217_v24, %v8251_v58  ;;  %v8267_v32 = vadd.f32 %v7781_v34, %v9184_v40  ;;  %v8281_v34 = vadd.f32 %v7757_v53, %v9188_v26  ;;  %v8293_v53 = vld [vmem:[#allocation3 + $0x68] sm:$0xff] }
 0x48c   :  { %v2618_v38 = vpop.permute.xlu0 %2617  ;;  %5398 = vrsqrt.f32 %v8258_v47  ;;  %v8316_v21 = vadd.f32 %v7879_v18, %v9189_v10  ;;  %5284 = vmatpush3.msra.mxu1 %v3599_v48 }
 0x48d   :  { %2996 = vst.msk [vmem:[#allocation3 + $0x98] sm:$0xff] %vm1310_vm6, %v2946_v60  ;;  %3226 = vrot.lane.b32.xlu0 %v8208_v3, %s5444_s22  ;;  %v2647_v35 = vsel %vm9186_vm2, %v2618_v38, %v2478_v1  ;;  %v2883_v60 = vmul.f32 %v5395_v39, %v8082_v45  ;;  %v8291_v38 = vsel %vm2591_vm11, %v8217_v24, %v8251_v58  ;;  %v3021_v24 = vld [vmem:[#allocation3 + $0xc8] sm:$0xff] }
 0x48f   :  { %3412 = vrot.lane.b32.xlu1 %v7954_v17, %s5448_s25  ;;  %v2786_v29 = vpop.permute.xlu1 %2785  ;;  %v2878_v17 = vsel %vm2877_vm1, %v8000_v59, %v2876_v23  ;;  %vm2879_vm1 = vcmp.eq.f32.partialorder %v8000_v59, 0.0  ;;  %v3598_v23 = vld [vmem:[%s9109_s1 + $0x18] sm:$0xff]  ;;  %v2885_v1 = vsel %vm2884_vm9, %v8082_v45, %v2883_v60  ;;  %vm2886_vm9 = vcmp.eq.f32.partialorder %v8082_v45, 0.0 }
 0x490   :  { %v2451_v12 = vpop.permute.xlu0 %2450  ;;  %v2815_v33 = vsel %vm2755_vm0, %v2786_v29, %v2647_v35  ;;  %vm2375_vm0 = vcmp.gt.f32.partialorder %v8228_v43, %v8244_v31  ;;  %v2881_v41 = vsel %vm2879_vm1, %v2880_v46, %v2878_v17  ;;  %vm2759_vm1 = vcmp.gt.f32.partialorder %v8267_v32, %v8291_v38  ;;  %5285 = vmatprep.subr.mxu1 %v3598_v23  ;;  %v5397_v29 = vpop.eup %5396  ;;  %v8355_v46 = vld [vmem:[#allocation3 + $0x80] sm:$0xff] }
 0x491   :  { %vm2923_vm2 = vcmp.ge.f32.partialorder %v2815_v33, 0.0  ;;  %3414 = vrot.lane.b32.xlu0 %v8040_v20, %s5448_s25  ;;  %v8303_v61 = vsel %vm2375_vm0, %v8228_v43, %v8244_v31  ;;  %v2479_v40 = vsel %vm2371_vm5, %v8198_v54, %v2451_v12  ;;  %v8332_v18 = vsel %vm2759_vm1, %v8267_v32, %v8291_v38  ;;  %5286 = vmatpush3.msra.mxu1 %v3598_v23 }
 0x492   :  { %v2935_v59 = vsel %vm2923_vm2, 1.0, %v5443_v36  ;;  %vm2592_vm2 = vcmp.gt.f32.partialorder %v8281_v34, %v8303_v61  ;;  %v2888_v28 = vsel %vm2886_vm9, %v2887_v63, %v2885_v1  ;;  %5400 = vrsqrt.f32 %v8332_v18 }
 0x493   :  { %3272 = vrot.lane.b32.xlu1 %v8040_v20, %s5445_s24  ;;  %v2947_v11 = vmul.f32 %v2935_v59, %v2881_v41  ;;  %v2405_v2 = vpop.permute.xlu1 %2404  ;;  %v8343_v9 = vsel %vm2592_vm2, %v8281_v34, %v8303_v61  ;;  %v2890_v45 = vmul.f32 %v5397_v29, %v8165_v6 }
 0x494   :  { %v2620_v20 = vpop.permute.xlu0 %2619  ;;  %v3044_v1 = vld [vmem:[#allocation3 + $0x97] sm:$0xff] }
 0x495   :  { %2997 = vst.msk [vmem:[#allocation3 + $0xe0] sm:$0xff] %vm1310_vm6, %v2947_v11  ;;  %3132 = vrot.lane.b32.xlu0 %v8293_v53, %s5437_s12  ;;  %v8391_v11 = vld [vmem:[#allocation3 + $0x81] sm:$0xff]  ;;  %v3056_v61 = vld [vmem:[#allocation3 + $0x98] sm:$0xff] }
 0x497   :  { %3460 = vrot.lane.b32.xlu1 %v8088_v50, %s5449_s6  ;;  %v2648_v50 = vsel %vm2588_vm8, %v2620_v20, %v2479_v40  ;;  %v2788_v44 = vpop.permute.xlu1 %2787  ;;  %vm2760_vm8 = vcmp.gt.f32.partialorder %v8316_v21, %v8343_v9 }
 0x498   :  { %v2453_v35 = vpop.permute.xlu0 %2452  ;;  %v2816_v5 = vsel %vm2756_vm4, %v2788_v44, %v2648_v50  ;;  %v8362_v12 = vsel %vm2760_vm8, %v8316_v21, %v8343_v9  ;;  %vm2891_vm4 = vcmp.eq.f32.partialorder %v8165_v6, inf  ;;  %v2901_v50 = vand.u32 2147483648, %v8258_v47  ;;  %v8410_v44 = vld [vmem:[#allocation3 + $0x7f] sm:$0xff]  ;;  %v3033_v9 = vld [vmem:[#allocation3 + $0xc9] sm:$0xff] }
 0x499   :  { %vm2924_vm5 = vcmp.ge.f32.partialorder %v2816_v5, 0.0  ;;  %3320 = vrot.lane.b32.xlu0 %v8123_v37, %s5446_s8  ;;  %v2480_v51 = vsel %vm2372_vm12, %v2405_v2, %v2453_v35  ;;  %v2892_v33 = vsel %vm2891_vm4, %v8165_v6, %v2890_v45  ;;  %v5399_v26 = vpop.eup %5398  ;;  %5402 = vrsqrt.f32 %v8362_v12 }
 0x49a   :  { %v2936_v0 = vsel %vm2924_vm5, 1.0, %v5443_v36  ;;  %vm2893_vm12 = vcmp.eq.f32.partialorder %v8165_v6, 0.0  ;;  %v2897_v57 = vmul.f32 %v5399_v26, %v8258_v47  ;;  %v2915_v45 = vand.u32 2147483648, %v8362_v12 }
 0x49b   :  { %3274 = vrot.lane.b32.xlu1 %v8293_v53, %s5445_s24  ;;  %v2948_v55 = vmul.f32 %v2936_v0, %v2888_v28  ;;  %v2407_v54 = vpop.permute.xlu1 %2406  ;;  %v2895_v8 = vsel %vm2893_vm12, %v2894_v49, %v2892_v33  ;;  %v2908_v0 = vand.u32 2147483648, %v8332_v18  ;;  %v3093_v33 = vld [vmem:[#allocation3 + $0xb0] sm:$0xff]  ;;  %vm3520_vm5 = vcmask 293888  }
 0x49c   :  { %v2622_v17 = vpop.permute.xlu0 %2621  ;;  %v3022_v21 = vld [vmem:[#allocation3 + $0xe0] sm:$0xff]  ;;  %vm3546_vm4 = vcmask 490496   ;;  %vm3559_vm12 = vcmask 588800  }
 0x49d   :  { %2998 = vst.msk [vmem:[#allocation3 + $0xf8] sm:$0xff] %vm1310_vm6, %v2948_v55  ;;  %3134 = vrot.lane.b32.xlu0 %v8355_v46, %s5437_s12  ;;  %v2649_v39 = vsel %vm2589_vm14, %v2622_v17, %v2480_v51  ;;  %vm2898_vm14 = vcmp.eq.f32.partialorder %v8258_v47, inf  ;;  %v3081_v51 = vld [vmem:[#allocation3 + $0xaf] sm:$0xff] }
 0x49e   :  { %v2899_v60 = vsel %vm2898_vm14, %v8258_v47, %v2897_v57  ;;  %vm3585_vm14 = vcmask 785408  }
 0x49f   :  { %3462 = vrot.lane.b32.xlu1 %v8123_v37, %s5449_s6  ;;  %v2790_v56 = vpop.permute.xlu1 %2789  ;;  %v5401_v10 = vpop.eup %5400 }
 0x4a0   :  { %v2455_v48 = vpop.permute.xlu0 %2454  ;;  %v2817_v37 = vsel %vm2757_vm7, %v2790_v56, %v2649_v39  ;;  %v2904_v22 = vmul.f32 %v5401_v10, %v8332_v18  ;;  %v8471_v39 = vld [vmem:[#allocation3 + $0xdf] sm:$0xff] }
 0x4a1   :  { %vm2925_vm9 = vcmp.ge.f32.partialorder %v2817_v37, 0.0  ;;  %3322 = vrot.lane.b32.xlu0 %v8382_v42, %s5446_s8  ;;  %v2481_v6 = vsel %vm2373_vm13, %v2407_v54, %v2455_v48  ;;  %vm2900_vm13 = vcmp.eq.f32.partialorder %v8258_v47, 0.0  ;;  %v3105_v37 = vld [vmem:[#allocation3 + $0xb1] sm:$0xff] }
 0x4a2   :  { %v2937_v14 = vsel %vm2925_vm9, 1.0, %v5443_v36  ;;  %v2902_v7 = vsel %vm2900_vm13, %v2901_v50, %v2899_v60  ;;  %vm3572_vm9 = vcmask 687104   ;;  %vm3612_vm13 = vcmask 883712  }
 0x4a3   :  { %3180 = vrot.lane.b32.xlu1 %v8382_v42, %s5442_s17  ;;  %v2949_v41 = vmul.f32 %v2937_v14, %v2895_v8  ;;  %v2409_v59 = vpop.permute.xlu1 %2408 }
 0x4a4   :  { %v2624_v62 = vpop.permute.xlu0 %2623  ;;  %v8476_v56 = vld [vmem:[#allocation3 + $0xf7] sm:$0xff] }
 0x4a5   :  { %2999 = vst.msk [vmem:[#allocation3 + $0x110] sm:$0xff] %vm1310_vm6, %v2949_v41  ;;  %3182 = vrot.lane.b32.xlu0 %v8391_v11, %s5442_s17  ;;  %v2650_v2 = vsel %vm2590_vm15, %v2624_v62, %v2481_v6  ;;  %vm2905_vm15 = vcmp.eq.f32.partialorder %v8332_v18, inf  ;;  %v3023_v48 = vld [vmem:[#allocation3 + $0xf8] sm:$0xff] }
 0x4a6   :  { %v5403_v35 = vpop.eup %5402  ;;  %v2906_v63 = vsel %vm2905_vm15, %v8332_v18, %v2904_v22  ;;  %v3035_v14 = vld [vmem:[#allocation3 + $0xf9] sm:$0xff] }
 0x4a7   :  { %3368 = vrot.lane.b32.xlu1 %v8208_v3, %s5447_s18  ;;  %v2792_v20 = vpop.permute.xlu1 %2791  ;;  %v2911_v55 = vmul.f32 %v5403_v35, %v8362_v12 }
 0x4a8   :  { %v2457_v23 = vpop.permute.xlu0 %2456  ;;  %v2818_v40 = vsel %vm2758_vm10, %v2792_v20, %v2650_v2 }
 0x4a9   :  { %vm2926_vm7 = vcmp.ge.f32.partialorder %v2818_v40, 0.0  ;;  %3370 = vrot.lane.b32.xlu0 %v8410_v44, %s5447_s18  ;;  %v2482_v47 = vsel %vm2374_vm3, %v2409_v59, %v2457_v23  ;;  %vm2907_vm3 = vcmp.eq.f32.partialorder %v8332_v18, 0.0 }
 0x4aa   :  { %v2938_v52 = vsel %vm2926_vm7, 1.0, %v5443_v36  ;;  %v2909_v16 = vsel %vm2907_vm3, %v2908_v0, %v2906_v63 }
 0x4ab   :  { %3228 = vrot.lane.b32.xlu1 %v8410_v44, %s5444_s22  ;;  %v2950_v13 = vmul.f32 %v2938_v52, %v2902_v7  ;;  %v2411_v4 = vpop.permute.xlu1 %2410 }
 0x4ac   :  { %v2626_v30 = vpop.permute.xlu0 %2625  ;;  %v3036_v62 = vld [vmem:[#allocation3 + $0x111] sm:$0xff] }
 0x4ad   :  { %3000 = vst.msk [vmem:[#allocation3 + $0x128] sm:$0xff] %vm1310_vm6, %v2950_v13  ;;  %3230 = vrot.lane.b32.xlu0 %v3044_v1, %s5444_s22  ;;  %v2651_v29 = vsel %vm2591_vm11, %v2626_v30, %v2482_v47  ;;  %vm2912_vm11 = vcmp.eq.f32.partialorder %v8362_v12, inf  ;;  %v8496_v6 = vld [vmem:[#allocation3 + $0x10f] sm:$0xff] }
 0x4ae   :  { %v2913_v54 = vsel %vm2912_vm11, %v8362_v12, %v2911_v55 }
 0x4af   :  { %3416 = vrot.lane.b32.xlu1 %v8293_v53, %s5448_s25  ;;  %v2794_v5 = vpop.permute.xlu1 %2793 }
 0x4b0   :  { %v2459_v28 = vpop.permute.xlu0 %2458  ;;  %v2819_v53 = vsel %vm2759_vm1, %v2794_v5, %v2651_v29 }
 0x4b1   :  { %vm2927_vm10 = vcmp.ge.f32.partialorder %v2819_v53, 0.0  ;;  %3418 = vrot.lane.b32.xlu0 %v8355_v46, %s5448_s25  ;;  %v2483_v32 = vsel %vm2375_vm0, %v2411_v4, %v2459_v28  ;;  %vm2914_vm0 = vcmp.eq.f32.partialorder %v8362_v12, 0.0  ;;  %v3068_v12 = vld [vmem:[#allocation3 + $0x99] sm:$0xff]  ;;  %v3003_v4 = vld [vmem:[#allocation3 + $0x7] sm:$0xff] }
 0x4b2   :  { %v2939_v27 = vsel %vm2927_vm10, 1.0, %v5443_v36  ;;  %v2916_v43 = vsel %vm2914_vm0, %v2915_v45, %v2913_v54 }
 0x4b3   :  { %3276 = vrot.lane.b32.xlu1 %v8355_v46, %s5445_s24  ;;  %v2951_v58 = vmul.f32 %v2939_v27, %v2909_v16  ;;  %v2796_v38 = vpop.permute.xlu1 %2795 }
 0x4b4   :  { %v2628_v18 = vpop.permute.xlu0 %2627  ;;  %v8504_v60 = vld [vmem:[#allocation3 + $0x127] sm:$0xff] }
 0x4b5   :  { %v2652_v17 = vsel %vm2592_vm2, %v2628_v18, %v2483_v32  ;;  %3001 = vst.msk [vmem:[#allocation3 + $0x140] sm:$0xff] %vm1310_vm6, %v2951_v58  ;;  %3136 = vrot.lane.b32.xlu0 %v3021_v24, %s5437_s12  ;;  %v3025_v7 = vld [vmem:[#allocation3 + $0x128] sm:$0xff]  ;;  %vm9190_vm2 = vcmask 195584  }
 0x4b6   :  { %v2820_v46 = vsel %vm2760_vm8, %v2796_v38, %v2652_v17  ;;  %v3037_v63 = vld [vmem:[#allocation3 + $0x129] sm:$0xff]  ;;  %vm3533_vm8 = vcmask 392192   ;;  %vm9191_vm7 = vmmov %vm9190_vm2 }
 0x4b7   :  { %3464 = vrot.lane.b32.xlu1 %v8382_v42, %s5449_s6  ;;  %vm2928_vm1 = vcmp.ge.f32.partialorder %v2820_v46, 0.0  ;;  %v3024_v42 = vld [vmem:[#allocation3 + $0x110] sm:$0xff]  ;;  %vm9192_vm15 = vmmov %vm9190_vm2 }
 0x4b8   :  { %v2940_v31 = vsel %vm2928_vm1, 1.0, %v5443_v36  ;;  %v3034_v36 = vld [vmem:[#allocation3 + $0xe1] sm:$0xff]  ;;  %v3125_v26 = vpop.permute.xlu0 %3124  ;;  %vm9193_vm3 = vmmov %vm9190_vm2 }
 0x4b9   :  { %v2952_v34 = vmul.f32 %v2940_v31, %v2916_v43  ;;  %3324 = vrot.lane.b32.xlu0 %v8391_v11, %s5446_s8  ;;  %v3496_v35 = vsel %vm1310_vm6, %v3003_v4, %v3125_v26  ;;  %vm9194_vm10 = vmmov %vm9190_vm2 }
 0x4ba   :  { %vm9195_vm11 = vmmov %vm9190_vm2 }
 0x4bb   :  { %3278 = vrot.lane.b32.xlu1 %v3056_v61, %s5445_s24  ;;  %3002 = vst.msk [vmem:[#allocation3 + $0x158] sm:$0xff] %vm1310_vm6, %v2952_v34  ;;  %vm9196_vm0 = vmmov %vm9190_vm2 }
 0x4bc   :  { %v3173_v49 = vpop.permute.xlu0 %3172  ;;  %v3038_v16 = vld [vmem:[#allocation3 + $0x141] sm:$0xff]  ;;  %vm9197_vm1 = vmmov %vm9196_vm0 }
 0x4bd   :  { %3138 = vrot.lane.b32.xlu0 %v3022_v21, %s5437_s12  ;;  %v3508_v5 = vsel %vm9190_vm2, %v3496_v35, %v3173_v49  ;;  %v8547_v17 = vld [vmem:[#allocation3 + $0x13f] sm:$0xff]  ;;  %vm9198_vm2 = vmmov %vm9196_vm0 }
 0x4bf   :  { %3466 = vrot.lane.b32.xlu1 %v8391_v11, %s5449_s6 }
 0x4c1   :  { %3326 = vrot.lane.b32.xlu0 %v3068_v12, %s5446_s8 }
 0x4c2   :  { %v3050_v34 = vld [vmem:[#allocation3 + $0x157] sm:$0xff] }
 0x4c3   :  { %3184 = vrot.lane.b32.xlu1 %v3033_v9, %s5442_s17  ;;  %v3062_v26 = vld [vmem:[#allocation3 + $0x158] sm:$0xff] }
 0x4c5   :  { %3186 = vrot.lane.b32.xlu0 %v3034_v36, %s5442_s17 }
 0x4c7   :  { %3372 = vrot.lane.b32.xlu1 %v3044_v1, %s5447_s18  ;;  %v3026_v1 = vld [vmem:[#allocation3 + $0x140] sm:$0xff] }
 0x4c9   :  { %3374 = vrot.lane.b32.xlu0 %v3081_v51, %s5447_s18 }
 0x4cb   :  { %3232 = vrot.lane.b32.xlu1 %v8471_v39, %s5444_s22 }
 0x4cd   :  { %3234 = vrot.lane.b32.xlu0 %v8476_v56, %s5444_s22 }
 0x4cf   :  { %3420 = vrot.lane.b32.xlu1 %v3056_v61, %s5448_s25 }
 0x4d1   :  { %3422 = vrot.lane.b32.xlu0 %v3093_v33, %s5448_s25 }
 0x4d3   :  { %3280 = vrot.lane.b32.xlu1 %v3022_v21, %s5445_s24 }
 0x4d5   :  { %3140 = vrot.lane.b32.xlu0 %v3023_v48, %s5437_s12 }
 0x4d7   :  { %3468 = vrot.lane.b32.xlu1 %v3068_v12, %s5449_s6 }
 0x4d9   :  { %3328 = vrot.lane.b32.xlu0 %v3034_v36, %s5446_s8 }
 0x4db   :  { %3282 = vrot.lane.b32.xlu1 %v3023_v48, %s5445_s24 }
 0x4dc   :  { %v3221_v41 = vpop.permute.xlu0 %3220 }
 0x4dd   :  { %v8487_v8 = vpop.permute.xlu1 %3126  ;;  %3142 = vrot.lane.b32.xlu0 %v3024_v42, %s5437_s12  ;;  %v3521_v28 = vsel %vm3520_vm5, %v3508_v5, %v3221_v41  ;;  %v3087_v41 = vld [vmem:[#allocation3 + $0x16f] sm:$0xff] }
 0x4de   :  { %v3497_v58 = vsel %vm1310_vm6, %v7856_v25, %v8487_v8 }
 0x4df   :  { %3470 = vrot.lane.b32.xlu1 %v3105_v37, %s5449_s6 }
 0x4e0   :  { %v3269_v57 = vpop.permute.xlu0 %3268 }
 0x4e1   :  { %3330 = vrot.lane.b32.xlu0 %v3035_v14, %s5446_s8  ;;  %v3175_v59 = vpop.permute.xlu1 %3174  ;;  %v3534_v55 = vsel %vm3533_vm8, %v3521_v28, %v3269_v57 }
 0x4e2   :  { %v3509_v54 = vsel %vm9191_vm7, %v3497_v58, %v3175_v59  ;;  %vm9199_vm7 = vmmov %vm9196_vm0 }
 0x4e3   :  { %3188 = vrot.lane.b32.xlu1 %v3035_v14, %s5442_s17 }
 0x4e5   :  { %3190 = vrot.lane.b32.xlu0 %v3036_v62, %s5442_s17 }
 0x4e7   :  { %3376 = vrot.lane.b32.xlu1 %v8476_v56, %s5447_s18 }
 0x4e8   :  { %v3271_v2 = vpop.permute.xlu0 %3270 }
 0x4e9   :  { %v3223_v11 = vpop.permute.xlu1 %3222  ;;  %3378 = vrot.lane.b32.xlu0 %v8496_v6, %s5447_s18 }
 0x4ea   :  { %v3522_v46 = vsel %vm3520_vm5, %v3509_v54, %v3223_v11 }
 0x4eb   :  { %3236 = vrot.lane.b32.xlu1 %v8496_v6, %s5444_s22  ;;  %v3535_v31 = vsel %vm3533_vm8, %v3522_v46, %v3271_v2  ;;  %v3099_v2 = vld [vmem:[#allocation3 + $0x170] sm:$0xff] }
 0x4ed   :  { %v8502_v20 = vpop.permute.xlu1 %3128  ;;  %3238 = vrot.lane.b32.xlu0 %v8504_v60, %s5444_s22 }
 0x4ee   :  { %v3498_v57 = vsel %vm1310_vm6, %v7956_v19, %v8502_v20  ;;  %v3111_v20 = vld [vmem:[#allocation3 + $0x171] sm:$0xff] }
 0x4ef   :  { %3424 = vrot.lane.b32.xlu1 %v3023_v48, %s5448_s25  ;;  %v8509_v10 = vpop.permute.xlu0 %3130 }
 0x4f0   :  { %v3499_v35 = vsel %vm1310_vm6, %v8171_v15, %v8509_v10 }
 0x4f1   :  { %v3317_v23 = vpop.permute.xlu1 %3316  ;;  %3426 = vrot.lane.b32.xlu0 %v3024_v42, %s5448_s25 }
 0x4f2   :  { %v3547_v27 = vsel %vm3546_vm4, %v3534_v55, %v3317_v23 }
 0x4f3   :  { %3284 = vrot.lane.b32.xlu1 %v3024_v42, %s5445_s24  ;;  %v3319_v50 = vpop.permute.xlu0 %3318 }
 0x4f4   :  { %v3548_v61 = vsel %vm3546_vm4, %v3535_v31, %v3319_v50 }
 0x4f5   :  { %v8513_v40 = vpop.permute.xlu1 %3176  ;;  %3144 = vrot.lane.b32.xlu0 %v3025_v7, %s5437_s12 }
 0x4f6   :  { %v3510_v11 = vsel %vm9192_vm15, %v3498_v57, %v8513_v40  ;;  %vm9200_vm15 = vmmov %vm9196_vm0 }
 0x4f7   :  { %3472 = vrot.lane.b32.xlu1 %v3035_v14, %s5449_s6  ;;  %v8517_v13 = vpop.permute.xlu0 %3178  ;;  %v3074_v14 = vld [vmem:[#allocation3 + $0x159] sm:$0xff] }
 0x4f9   :  { %v3365_v52 = vpop.permute.xlu1 %3364  ;;  %3332 = vrot.lane.b32.xlu0 %v3036_v62, %s5446_s8 }
 0x4fa   :  { %v3560_v24 = vsel %vm3559_vm12, %v3547_v27, %v3365_v52 }
 0x4fb   :  { %3286 = vrot.lane.b32.xlu1 %v3025_v7, %s5445_s24  ;;  %v3367_v22 = vpop.permute.xlu0 %3366 }
 0x4fc   :  { %v3561_v21 = vsel %vm3559_vm12, %v3548_v61, %v3367_v22 }
 0x4fd   :  { %v8521_v30 = vpop.permute.xlu1 %3224  ;;  %3146 = vrot.lane.b32.xlu0 %v3026_v1, %s5437_s12 }
 0x4fe   :  { %v3523_v23 = vsel %vm3520_vm5, %v3510_v11, %v8521_v30 }
 0x4ff   :  { %3474 = vrot.lane.b32.xlu1 %v3036_v62, %s5449_s6  ;;  %v8526_v29 = vpop.permute.xlu0 %3226 }
 0x501   :  { %v3413_v47 = vpop.permute.xlu1 %3412  ;;  %3334 = vrot.lane.b32.xlu0 %v3037_v63, %s5446_s8 }
 0x502   :  { %v3573_v32 = vsel %vm3572_vm9, %v3560_v24, %v3413_v47  ;;  %v3511_v47 = vsel %vm9193_vm3, %v3499_v35, %v8517_v13  ;;  %vm9201_vm3 = vmmov %vm9196_vm0 }
 0x503   :  { %3192 = vrot.lane.b32.xlu1 %v3037_v63, %s5442_s17  ;;  %v3415_v0 = vpop.permute.xlu0 %3414  ;;  %v3524_v5 = vsel %vm3520_vm5, %v3511_v47, %v8526_v29 }
 0x504   :  { %v3574_v9 = vsel %vm3572_vm9, %v3561_v21, %v3415_v0 }
 0x505   :  { %v8532_v53 = vpop.permute.xlu1 %3272  ;;  %3194 = vrot.lane.b32.xlu0 %v3038_v16, %s5442_s17 }
 0x506   :  { %v3536_v52 = vsel %vm3533_vm8, %v3523_v23, %v8532_v53 }
 0x507   :  { %3380 = vrot.lane.b32.xlu1 %v8504_v60, %s5447_s18  ;;  %v8544_v18 = vpop.permute.xlu0 %3132 }
 0x508   :  { %v3500_v46 = vsel %vm1310_vm6, %v8208_v3, %v8544_v18 }
 0x509   :  { %v3461_v38 = vpop.permute.xlu1 %3460  ;;  %3382 = vrot.lane.b32.xlu0 %v8547_v17, %s5447_s18 }
 0x50a   :  { %v3586_v45 = vsel %vm3585_vm14, %v3573_v32, %v3461_v38 }
 0x50b   :  { %3240 = vrot.lane.b32.xlu1 %v8547_v17, %s5444_s22  ;;  %5287 = vmatprep.mubr.msk.f32.mxu1 %vm3612_vm13, %v3586_v45  ;;  %v3321_v43 = vpop.permute.xlu0 %3320 }
 0x50c   :  { %v3549_v4 = vsel %vm3546_vm4, %v3536_v52, %v3321_v43 }
 0x50d   :  { %v3275_v25 = vpop.permute.xlu1 %3274  ;;  %3242 = vrot.lane.b32.xlu0 %v3050_v34, %s5444_s22 }
 0x50e   :  { %v3537_v53 = vsel %vm3533_vm8, %v3524_v5, %v3275_v25 }
 0x50f   :  { %3428 = vrot.lane.b32.xlu1 %v3025_v7, %s5448_s25  ;;  %v8562_v36 = vpop.permute.xlu0 %3134 }
 0x510   :  { %v3501_v3 = vsel %vm1310_vm6, %v8410_v44, %v8562_v36 }
 0x511   :  { %v3463_v12 = vpop.permute.xlu1 %3462  ;;  %3430 = vrot.lane.b32.xlu0 %v3026_v1, %s5448_s25 }
 0x512   :  { %v3587_v51 = vsel %vm3585_vm14, %v3574_v9, %v3463_v12 }
 0x513   :  { %3288 = vrot.lane.b32.xlu1 %v3026_v1, %s5445_s24  ;;  %5288 = vmatmul.mubr.msk.f32.vlgmr.msra.gmra.mxu1 %vm3612_vm13, %v3587_v51  ;;  %v3323_v48 = vpop.permute.xlu0 %3322 }
 0x514   :  { %v3550_v0 = vsel %vm3546_vm4, %v3537_v53, %v3323_v48 }
 0x515   :  { %v3181_v33 = vpop.permute.xlu1 %3180  ;;  %3290 = vrot.lane.b32.xlu0 %v3062_v26, %s5445_s24 }
 0x516   :  { %v3512_v25 = vsel %vm9194_vm10, %v3500_v46, %v3181_v33  ;;  %vm9209_vm10 = vmmov %vm9196_vm0 }
 0x517   :  { %3476 = vrot.lane.b32.xlu1 %v3037_v63, %s5449_s6  ;;  %v8570_v49 = vpop.permute.xlu0 %3182 }
 0x518   :  { %v3513_v18 = vsel %vm9195_vm11, %v3501_v3, %v8570_v49  ;;  %vm9210_vm11 = vmmov %vm9196_vm0 }
 0x519   :  { %v3369_v37 = vpop.permute.xlu1 %3368  ;;  %3478 = vrot.lane.b32.xlu0 %v3038_v16, %s5449_s6 }
 0x51a   :  { %v3562_v19 = vsel %vm3559_vm12, %v3549_v4, %v3369_v37 }
 0x51b   :  { %3336 = vrot.lane.b32.xlu1 %v3038_v16, %s5446_s8  ;;  %v3371_v8 = vpop.permute.xlu0 %3370 }
 0x51c   :  { %v3563_v55 = vsel %vm3559_vm12, %v3550_v0, %v3371_v8 }
 0x51d   :  { %v3229_v42 = vpop.permute.xlu1 %3228  ;;  %3384 = vrot.lane.b32.xlu0 %v3050_v34, %s5447_s18 }
 0x51e   :  { %v3525_v43 = vsel %vm3520_vm5, %v3512_v25, %v3229_v42 }
 0x51f   :  { %3338 = vrot.lane.b32.xlu1 %v3074_v14, %s5446_s8  ;;  %v3231_v62 = vpop.permute.xlu0 %3230 }
 0x520   :  { %v3526_v33 = vsel %vm3520_vm5, %v3513_v18, %v3231_v62 }
 0x521   :  { %v3417_v59 = vpop.permute.xlu1 %3416  ;;  %3432 = vrot.lane.b32.xlu0 %v3062_v26, %s5448_s25 }
 0x522   :  { %v3575_v40 = vsel %vm3572_vm9, %v3562_v19, %v3417_v59 }
 0x523   :  { %3386 = vrot.lane.b32.xlu1 %v3087_v41, %s5447_s18  ;;  %v3419_v7 = vpop.permute.xlu0 %3418 }
 0x524   :  { %v3576_v15 = vsel %vm3572_vm9, %v3563_v55, %v3419_v7  ;;  %v3009_v7 = vld [vmem:[#allocation3 + $0xc7] sm:$0xff] }
 0x525   :  { %v3277_v50 = vpop.permute.xlu1 %3276  ;;  %3480 = vrot.lane.b32.xlu0 %v3074_v14, %s5449_s6 }
 0x526   :  { %v3538_v61 = vsel %vm3533_vm8, %v3525_v43, %v3277_v50 }
 0x527   :  { %3434 = vrot.lane.b32.xlu1 %v3099_v2, %s5448_s25  ;;  %v3137_v1 = vpop.permute.xlu0 %3136 }
 0x528   :  { %v3502_v19 = vsel %vm1310_vm6, %v3009_v7, %v3137_v1 }
 0x529   :  { %v3465_v22 = vpop.permute.xlu1 %3464 }
 0x52a   :  { %v3588_v30 = vsel %vm3585_vm14, %v3575_v40, %v3465_v22 }
 0x52b   :  { %3482 = vrot.lane.b32.xlu1 %v3111_v20, %s5449_s6  ;;  %5290 = vmatprep.mubr.msk.f32.mxu1 %vm3612_vm13, %v3588_v30  ;;  %v3325_v28 = vpop.permute.xlu0 %3324  ;;  %s5451_s6 = smov [#allocation6]  }
 0x52c   :  { %v3551_v21 = vsel %vm3546_vm4, %v3538_v61, %v3325_v28  ;;  %s4878_s12 = sshll.u32 %s5451_s6, 4  ;;  %s4879_s12 = int_to_ptr.vmem [resolvable:$true] %s4878_s12 }
 0x52d   :  { %v3279_v63 = vpop.permute.xlu1 %3278  ;;  %s5410_s17 = scalar_lea.vmem %s4879_s12, 32  ;;  %p5415_p1 = scmp.lt.s32.totalorder %s4879_s12, %s4879_s12 }
 0x52e   :  { %v3539_v8 = vsel %vm3533_vm8, %v3526_v33, %v3279_v63  ;;  %p5411_p0 = scmp.ne.s32.totalorder %s4879_s12, %s5410_s17  ;;  %p5416_p2 = scmp.lt.s32.totalorder %s5410_s17, %s5410_s17 }
 0x52f   :  { %v3139_v16 = vpop.permute.xlu0 %3138 }
 0x530   :  { %v3503_v1 = vsel %vm1310_vm6, %v8471_v39, %v3139_v16  ;;  %p5417_p3 = por %p5416_p2, %p5415_p1 }
 0x531   :  { %v3467_v10 = vpop.permute.xlu1 %3466 }
 0x532   :  { %v3589_v27 = vsel %vm3585_vm14, %v3576_v15, %v3467_v10  ;;  %p5418_p4 = pnand %p5417_p3, %p5411_p0 }
 0x533   :  { %5291 = vmatmul.mubr.msk.f32.gmra.mxu1 %vm3612_vm13, %v3589_v27  ;;  %v3327_v24 = vpop.permute.xlu0 %3326 }
 0x534   :  { %v3552_v14 = vsel %vm3546_vm4, %v3539_v8, %v3327_v24 }
 0x535   :  { %v3185_v13 = vpop.permute.xlu1 %3184 }
 0x536   :  { %v3514_v20 = vsel %vm9196_vm0, %v3502_v19, %v3185_v13 }
 0x537   :  { %v3187_v29 = vpop.permute.xlu0 %3186 }
 0x538   :  { %v3515_v55 = vsel %vm9197_vm1, %v3503_v1, %v3187_v29  ;;  %vm9211_vm1 = vmmov %vm9196_vm0 }
 0x539   :  { %v3373_v58 = vpop.permute.xlu1 %3372 }
 0x53a   :  { %v3564_v9 = vsel %vm3559_vm12, %v3551_v21, %v3373_v58 }
 0x53b   :  { %v3375_v38 = vpop.permute.xlu0 %3374 }
 0x53c   :  { %v3565_v41 = vsel %vm3559_vm12, %v3552_v14, %v3375_v38 }
 0x53d   :  { %v3233_v32 = vpop.permute.xlu1 %3232 }
 0x53e   :  { %v3527_v40 = vsel %vm3520_vm5, %v3514_v20, %v3233_v32 }
 0x53f   :  { %v3235_v45 = vpop.permute.xlu0 %3234 }
 0x540   :  { %v3528_v15 = vsel %vm3520_vm5, %v3515_v55, %v3235_v45 }
 0x541   :  { %v3421_v54 = vpop.permute.xlu1 %3420 }
 0x542   :  { %v3577_v12 = vsel %vm3572_vm9, %v3564_v9, %v3421_v54 }
 0x543   :  { %v3423_v34 = vpop.permute.xlu0 %3422 }
 0x544   :  { %v3578_v59 = vsel %vm3572_vm9, %v3565_v41, %v3423_v34 }
 0x545   :  { %v3281_v31 = vpop.permute.xlu1 %3280 }
 0x546   :  { %v3540_v35 = vsel %vm3533_vm8, %v3527_v40, %v3281_v31 }
 0x547   :  { %v3141_v48 = vpop.permute.xlu0 %3140 }
 0x548   :  { %v3504_v61 = vsel %vm1310_vm6, %v8476_v56, %v3141_v48 }
 0x549   :  { %v3469_v51 = vpop.permute.xlu1 %3468 }
 0x54a   :  { %v3590_v26 = vsel %vm3585_vm14, %v3577_v12, %v3469_v51 }
 0x54b   :  { %5293 = vmatprep.mubr.msk.f32.mxu1 %vm3612_vm13, %v3590_v26  ;;  %v3329_v42 = vpop.permute.xlu0 %3328 }
 0x54c   :  { %v3553_v47 = vsel %vm3546_vm4, %v3540_v35, %v3329_v42 }
 0x54d   :  { %v3283_v37 = vpop.permute.xlu1 %3282 }
 0x54e   :  { %v3541_v13 = vsel %vm3533_vm8, %v3528_v15, %v3283_v37 }
 0x54f   :  { %v3143_v11 = vpop.permute.xlu0 %3142 }
 0x550   :  { %v3505_v3 = vsel %vm1310_vm6, %v8496_v6, %v3143_v11 }
 0x551   :  { %v3471_v57 = vpop.permute.xlu1 %3470 }
 0x552   :  { %v3591_v44 = vsel %vm3585_vm14, %v3578_v59, %v3471_v57 }
 0x553   :  { %5294 = vmatmul.mubr.msk.f32.gmra.mxu1 %vm3612_vm13, %v3591_v44  ;;  %v3331_v49 = vpop.permute.xlu0 %3330 }
 0x554   :  { %v3554_v24 = vsel %vm3546_vm4, %v3541_v13, %v3331_v49 }
 0x555   :  { %v3189_v36 = vpop.permute.xlu1 %3188 }
 0x556   :  { %v3516_v21 = vsel %vm9198_vm2, %v3504_v61, %v3189_v36  ;;  %vm9212_vm2 = vmmov %vm9196_vm0 }
 0x557   :  { %v3191_v62 = vpop.permute.xlu0 %3190 }
 0x558   :  { %v3517_v33 = vsel %vm9199_vm7, %v3505_v3, %v3191_v62  ;;  %vm9213_vm7 = vmmov %vm9196_vm0 }
 0x559   :  { %v3377_v2 = vpop.permute.xlu1 %3376 }
 0x55a   :  { %v3566_v5 = vsel %vm3559_vm12, %v3553_v47, %v3377_v2 }
 0x55b   :  { %v3379_v50 = vpop.permute.xlu0 %3378 }
 0x55c   :  { %v3567_v58 = vsel %vm3559_vm12, %v3554_v24, %v3379_v50 }
 0x55d   :  { %v3237_v23 = vpop.permute.xlu1 %3236 }
 0x55e   :  { %v3529_v9 = vsel %vm3520_vm5, %v3516_v21, %v3237_v23  ;;  %v9207_v21 = vmov 0.0  }
 0x55f   :  { %v3239_v4 = vpop.permute.xlu0 %3238 }
 0x560   :  { %v3530_v42 = vsel %vm3520_vm5, %v3517_v33, %v3239_v4 }
 0x561   :  { %v3425_v52 = vpop.permute.xlu1 %3424 }
 0x562   :  { %v3579_v63 = vsel %vm3572_vm9, %v3566_v5, %v3425_v52 }
 0x563   :  { %v3427_v30 = vpop.permute.xlu0 %3426 }
 0x564   :  { %v3580_v32 = vsel %vm3572_vm9, %v3567_v58, %v3427_v30 }
 0x565   :  { %v3285_v22 = vpop.permute.xlu1 %3284 }
 0x566   :  { %v3542_v26 = vsel %vm3533_vm8, %v3529_v9, %v3285_v22 }
 0x567   :  { %v3145_v53 = vpop.permute.xlu0 %3144 }
 0x568   :  { %v3506_v62 = vsel %vm1310_vm6, %v8504_v60, %v3145_v53 }
 0x569   :  { %v3473_v28 = vpop.permute.xlu1 %3472 }
 0x56a   :  { %v3592_v0 = vsel %vm3585_vm14, %v3579_v63, %v3473_v28 }
 0x56b   :  { %5296 = vmatprep.mubr.msk.f32.mxu1 %vm3612_vm13, %v3592_v0  ;;  %v3333_v27 = vpop.permute.xlu0 %3332 }
 0x56c   :  { %v3555_v18 = vsel %vm3546_vm4, %v3542_v26, %v3333_v27 }
 0x56d   :  { %v3287_v10 = vpop.permute.xlu1 %3286 }
 0x56e   :  { %v3543_v14 = vsel %vm3533_vm8, %v3530_v42, %v3287_v10 }
 0x56f   :  { %v3147_v54 = vpop.permute.xlu0 %3146 }
 0x570   :  { %v3507_v19 = vsel %vm1310_vm6, %v8547_v17, %v3147_v54 }
 0x571   :  { %v3475_v38 = vpop.permute.xlu1 %3474 }
 0x572   :  { %v3593_v39 = vsel %vm3585_vm14, %v3580_v32, %v3475_v38 }
 0x573   :  { %5297 = vmatmul.mubr.msk.f32.gmra.mxu1 %vm3612_vm13, %v3593_v39  ;;  %v3335_v29 = vpop.permute.xlu0 %3334 }
 0x574   :  { %v3556_v59 = vsel %vm3546_vm4, %v3543_v14, %v3335_v29  ;;  %v4099_v29 = vld [vmem:[%s9109_s1 + $0x90] sm:$0xff] }
 0x575   :  { %v3193_v16 = vpop.permute.xlu1 %3192 }
 0x576   :  { %v3518_v23 = vsel %vm9200_vm15, %v3506_v62, %v3193_v16  ;;  %v4100_v16 = vld [vmem:[%s9109_s1 + $0x98] sm:$0xff]  ;;  %vm9214_vm15 = vmmov %vm9196_vm0 }
 0x577   :  { %v3195_v45 = vpop.permute.xlu0 %3194  ;;  %5305 = vmatprep.subr.mxu1 %v4100_v16 }
 0x578   :  { %v3519_v40 = vsel %vm9201_vm3, %v3507_v19, %v3195_v45  ;;  %5306 = vmatpush3.msra.mxu1 %v4100_v16  ;;  %v4098_v45 = vld [vmem:[%s9109_s1 + $0x88] sm:$0xff]  ;;  %vm9215_vm3 = vmmov %vm9196_vm0 }
 0x579   :  { %v3381_v46 = vpop.permute.xlu1 %3380  ;;  %5307 = vmatprep.subr.mxu1 %v4099_v29 }
 0x57a   :  { %v3568_v37 = vsel %vm3559_vm12, %v3555_v18, %v3381_v46  ;;  %5308 = vmatpush3.msra.mxu1 %v4099_v29 }
 0x57b   :  { %v3383_v43 = vpop.permute.xlu0 %3382  ;;  %5309 = vmatprep.subr.mxu1 %v4098_v45 }
 0x57c   :  { %v3569_v6 = vsel %vm3559_vm12, %v3556_v59, %v3383_v43  ;;  %5310 = vmatpush3.msra.mxu1 %v4098_v45 }
 0x57d   :  { %v3241_v25 = vpop.permute.xlu1 %3240  ;;  %5339 = vmatprep.subr.mxu1 %v9207_v21 }
 0x57e   :  { %v3531_v50 = vsel %vm3520_vm5, %v3518_v23, %v3241_v25 }
 0x57f   :  { %v3243_v34 = vpop.permute.xlu0 %3242 }
 0x580   :  { %v3532_v30 = vsel %vm3520_vm5, %v3519_v40, %v3243_v34  ;;  %vm9202_vm5 = vmmov %vm9196_vm0 }
 0x581   :  { %v3429_v31 = vpop.permute.xlu1 %3428 }
 0x582   :  { %v3581_v56 = vsel %vm3572_vm9, %v3568_v37, %v3429_v31 }
 0x583   :  { %v3431_v51 = vpop.permute.xlu0 %3430 }
 0x584   :  { %v3582_v57 = vsel %vm3572_vm9, %v3569_v6, %v3431_v51 }
 0x585   :  { %v3289_v12 = vpop.permute.xlu1 %3288 }
 0x586   :  { %v3544_v4 = vsel %vm3533_vm8, %v3531_v50, %v3289_v12 }
 0x587   :  { %v3291_v8 = vpop.permute.xlu0 %3290 }
 0x588   :  { %v3545_v5 = vsel %vm3533_vm8, %v3532_v30, %v3291_v8  ;;  %vm9203_vm8 = vmmov %vm9196_vm0 }
 0x589   :  { %v3477_v48 = vpop.permute.xlu1 %3476 }
 0x58a   :  { %v3594_v41 = vsel %vm3585_vm14, %v3581_v56, %v3477_v48 }
 0x58b   :  { %5299 = vmatprep.mubr.msk.f32.mxu1 %vm3612_vm13, %v3594_v41  ;;  %v3479_v44 = vpop.permute.xlu0 %3478 }
 0x58c   :  { %v3595_v36 = vsel %vm3585_vm14, %v3582_v57, %v3479_v44 }
 0x58d   :  { %v3337_v11 = vpop.permute.xlu1 %3336  ;;  %5300 = vmatmul.mubr.msk.f32.gmra.mxu1 %vm3612_vm13, %v3595_v36 }
 0x58e   :  { %v3557_v20 = vsel %vm3546_vm4, %v3544_v4, %v3337_v11 }
 0x58f   :  { %v3385_v2 = vpop.permute.xlu0 %3384 }
 0x590   :  { %v3570_v22 = vsel %vm3559_vm12, %v3557_v20, %v3385_v2 }
 0x591   :  { %v3339_v49 = vpop.permute.xlu1 %3338 }
 0x592   :  { %v3558_v28 = vsel %vm3546_vm4, %v3545_v5, %v3339_v49  ;;  %vm9204_vm4 = vmmov %vm9196_vm0 }
 0x593   :  { %v3433_v52 = vpop.permute.xlu0 %3432 }
 0x594   :  { %v3583_v60 = vsel %vm3572_vm9, %v3570_v22, %v3433_v52 }
 0x595   :  { %v3387_v7 = vpop.permute.xlu1 %3386 }
 0x596   :  { %v3571_v17 = vsel %vm3559_vm12, %v3558_v28, %v3387_v7  ;;  %vm9205_vm12 = vmmov %vm9196_vm0 }
 0x597   :  { %v3481_v47 = vpop.permute.xlu0 %3480 }
 0x598   :  { %v3596_v63 = vsel %vm3585_vm14, %v3583_v60, %v3481_v47 }
 0x599   :  { %v3435_v35 = vpop.permute.xlu1 %3434  ;;  %5302 = vmatprep.mubr.msk.f32.mxu1 %vm3612_vm13, %v3596_v63 }
 0x59a   :  { %v3584_v53 = vsel %vm3572_vm9, %v3571_v17, %v3435_v35  ;;  %vm9206_vm9 = vmmov %vm9196_vm0 }
 0x59d   :  { %v3483_v0 = vpop.permute.xlu1 %3482 }
 0x59e   :  { %v3597_v1 = vsel %vm3585_vm14, %v3584_v53, %v3483_v0  ;;  %vm4081_vm14 = vcmask 189440  }
 0x59f   :  { %5303 = vmatmul.mubr.msk.f32.gmra.mxu1 %vm3612_vm13, %v3597_v1  ;;  %vm9208_vm13 = vmmov %vm9196_vm0  ;;  %4082 = vst.msk [vmem:[#allocation5 + $0x6] sm:$0x3] %vm4081_vm14, %v9207_v21 }
 0x5a0   :  { %4083 = vst.msk [vmem:[#allocation5 + $0xe] sm:$0x3] %vm4081_vm14, %v9207_v21  ;;  %4084 = vst.msk [vmem:[#allocation5 + $0x16] sm:$0x3] %vm4081_vm14, %v9207_v21 }
 0x5a1   :  { %4085 = vst.msk [vmem:[#allocation5 + $0x1e] sm:$0x3] %vm4081_vm14, %v9207_v21  ;;  %4086 = vst.msk [vmem:[#allocation5 + $0x26] sm:$0x3] %vm4081_vm14, %v9207_v21 }
 0x5a2   :  { %4087 = vst.msk [vmem:[#allocation5 + $0x2e] sm:$0x3] %vm4081_vm14, %v9207_v21  ;;  %4088 = vst.msk [vmem:[#allocation5 + $0x36] sm:$0x3] %vm4081_vm14, %v9207_v21 }
 0x5a3   :  { %4089 = vst.msk [vmem:[#allocation5 + $0x3e] sm:$0x3] %vm4081_vm14, %v9207_v21  ;;  %vm9221_vm14 = vmmov %vm9196_vm0 }
 0x5d3   :  { %v8690_v55 = vpop.f32.mrf.mxu1 }
 0x5d4   :  { %v3781_v58 = vsel %vm9203_vm8, %v8690_v55, 0.0  ;;  %vm9217_vm8 = vmmov %vm9196_vm0 }
 0x5d5   :  { %v8692_v15 = vpop.f32.mrf.mxu1 }
 0x5d6   :  { %v3780_v13 = vsel %vm9202_vm5, %v8692_v15, 0.0  ;;  %vm9216_vm5 = vmmov %vm9196_vm0 }
 0x5d7   :  { %v3782_v38 = vadd.f32 %v3781_v58, %v3780_v13 }
 0x5f3   :  { %v8694_v10 = vpop.f32.mrf.mxu1 }
 0x5f4   :  { %v3785_v25 = vsel %vm9205_vm12, %v8694_v10, 0.0  ;;  %vm9219_vm12 = vmmov %vm9196_vm0 }
 0x5f5   :  { %v8696_v27 = vpop.f32.mrf.mxu1 }
 0x5f6   :  { %v3783_v32 = vsel %vm9204_vm4, %v8696_v27, 0.0  ;;  %vm9218_vm4 = vmmov %vm9196_vm0 }
 0x5f7   :  { %v3784_v54 = vadd.f32 %v3783_v32, %v3782_v38 }
 0x5f9   :  { %v3786_v31 = vadd.f32 %v3785_v25, %v3784_v54 }
 0x613   :  { %v8700_v24 = vpop.f32.mrf.mxu1 }
 0x614   :  { %v3789_v12 = vsel %vm9208_vm13, %v8700_v24, 0.0  ;;  %vm9222_vm13 = vmmov %vm9196_vm0 }
 0x615   :  { %v8706_v39 = vpop.f32.mrf.mxu1 }
 0x616   :  { %v3787_v43 = vsel %vm9206_vm9, %v8706_v39, 0.0  ;;  %vm9220_vm9 = vmmov %vm9196_vm0 }
 0x617   :  { %v3788_v34 = vadd.f32 %v3787_v43, %v3786_v31 }
 0x619   :  { %v3790_v26 = vadd.f32 %v3789_v12, %v3788_v34 }
 0x633   :  { %v8714_v46 = vpop.f32.mrf.mxu1 }
 0x634   :  { %v3793_v33 = vsel %vm9210_vm11, %v8714_v46, 0.0  ;;  %vm9224_vm11 = vmmov %vm9196_vm0 }
 0x635   :  { %v3749_v61 = vpop.f32.mrf.mxu1 }
 0x636   :  { %v3791_v51 = vsel %vm9209_vm10, %v3749_v61, 0.0  ;;  %vm9223_vm10 = vmmov %vm9196_vm0 }
 0x637   :  { %v3792_v3 = vadd.f32 %v3791_v51, %v3790_v26 }
 0x639   :  { %v3794_v42 = vadd.f32 %v3793_v33, %v3792_v3 }
 0x64d   :  { %v8724_v9 = vpop.f32.mrf.mxu1 }
 0x64e   :  { %v3797_v8 = vsel %vm9211_vm1, %v8724_v9, 0.0  ;;  %vm9225_vm1 = vmmov %vm9196_vm0 }
 0x64f   :  { %v3759_v18 = vpop.f32.mrf.mxu1 }
 0x650   :  { %v3795_v37 = vsel %vm9196_vm0, %v3759_v18, 0.0 }
 0x651   :  { %v3796_v56 = vadd.f32 %v3795_v37, %v3794_v42 }
 0x653   :  { %v3798_v41 = vadd.f32 %v3797_v8, %v3796_v56 }
 0x65f   :  { %v5304_v48 = vpop.f32.mrf.mxu1 }
 0x660   :  { %v3801_v57 = vsel %vm9213_vm7, %v5304_v48, 0.0  ;;  %vm9227_vm7 = vmmov %vm9196_vm0 }
 0x661   :  { %v3769_v14 = vpop.f32.mrf.mxu1 }
 0x662   :  { %v3799_v59 = vsel %vm9212_vm2, %v3769_v14, 0.0  ;;  %vm9226_vm2 = vmmov %vm9196_vm0 }
 0x663   :  { %v3800_v6 = vadd.f32 %v3799_v59, %v3798_v41 }
 0x665   :  { %v3802_v11 = vadd.f32 %v3801_v57, %v3800_v6 }
 0x667   :  { %v3803_v44 = vrot.slane %v3802_v11, 4 }
 0x669   :  { %v3804_v36 = vadd.f32 %v3803_v44, %v3802_v11 }
 0x66b   :  { %v3805_v49 = vrot.slane %v3804_v36, 2 }
 0x66d   :  { %v3806_v2 = vadd.f32 %v3805_v49, %v3804_v36 }
 0x66f   :  { %v3807_v62 = vrot.slane %v3806_v2, 1 }
 0x671   :  { %v3808_v23 = vadd.f32 %v3807_v62, %v3806_v2 }
 0x673   :  { %v3809_v50 = vmul.f32 0.010416667, %v3808_v23 }
 0x675   :  { %v3810_v7 = vsub.f32 %v8692_v15, %v3809_v50  ;;  %v3811_v52 = vsub.f32 %v8690_v55, %v3809_v50  ;;  %v3812_v4 = vsub.f32 %v8696_v27, %v3809_v50  ;;  %v3813_v19 = vsub.f32 %v8694_v10, %v3809_v50 }
 0x676   :  { %v3814_v22 = vsub.f32 %v8706_v39, %v3809_v50  ;;  %v3815_v60 = vsub.f32 %v8700_v24, %v3809_v50  ;;  %v3816_v28 = vsub.f32 %v3749_v61, %v3809_v50  ;;  %v3817_v1 = vsub.f32 %v8714_v46, %v3809_v50 }
 0x677   :  { %v3822_v20 = vmul.f32 %v3810_v7, %v8692_v15  ;;  %v3823_v40 = vmul.f32 %v8690_v55, %v3811_v52  ;;  %v3824_v30 = vmul.f32 %v3812_v4, %v8696_v27  ;;  %v3825_v35 = vmul.f32 %v8694_v10, %v3813_v19 }
 0x678   :  { %v3826_v17 = vmul.f32 %v3814_v22, %v8706_v39  ;;  %v3827_v55 = vmul.f32 %v8700_v24, %v3815_v60  ;;  %v3818_v13 = vsub.f32 %v3759_v18, %v3809_v50  ;;  %v3828_v10 = vmul.f32 %v3816_v28, %v3749_v61 }
 0x679   :  { %v3834_v47 = vsel %vm9214_vm15, %v3822_v20, 0.0  ;;  %v3835_v5 = vsel %vm9215_vm3, %v3823_v40, 0.0  ;;  %v3837_v53 = vsel %vm9216_vm5, %v3824_v30, 0.0  ;;  %v3839_v15 = vsel %vm9217_vm8, %v3825_v35, 0.0  ;;  %vm9228_vm15 = vmmov %vm9196_vm0 }
 0x67a   :  { %v3836_v63 = vadd.f32 %v3835_v5, %v3834_v47  ;;  %v3841_v58 = vsel %vm9218_vm4, %v3826_v17, 0.0  ;;  %v3819_v38 = vsub.f32 %v8724_v9, %v3809_v50  ;;  %v3829_v54 = vmul.f32 %v8714_v46, %v3817_v1  ;;  %vm9229_vm3 = vmmov %vm9196_vm0 }
 0x67b   :  { %v3843_v39 = vsel %vm9219_vm12, %v3827_v55, 0.0  ;;  %v3820_v29 = vsub.f32 %v3769_v14, %v3809_v50  ;;  %v3830_v45 = vmul.f32 %v3818_v13, %v3759_v18  ;;  %v3845_v25 = vsel %vm9220_vm9, %v3828_v10, 0.0  ;;  %vm9230_vm5 = vmmov %vm9196_vm0 }
 0x67c   :  { %v3838_v0 = vadd.f32 %v3837_v53, %v3836_v63  ;;  %v3821_v43 = vsub.f32 %v5304_v48, %v3809_v50  ;;  %v3831_v31 = vmul.f32 %v8724_v9, %v3819_v38  ;;  %v3847_v34 = vsel %vm9221_vm14, %v3829_v54, 0.0  ;;  %v5099_v63 = vld [vmem:[%s9110_s2 + $0x3] ss:$0 sm:$0xff]  ;;  %vm9231_vm8 = vmmov %vm9196_vm0 }
 0x67d   :  { %v3832_v12 = vmul.f32 %v3820_v29, %v3769_v14  ;;  %v3849_v51 = vsel %vm9222_vm13, %v3830_v45, 0.0  ;;  %vm9232_vm4 = vmmov %vm9196_vm0 }
 0x67e   :  { %v3840_v27 = vadd.f32 %v3839_v15, %v3838_v0  ;;  %v3833_v3 = vmul.f32 %v5304_v48, %v3821_v43  ;;  %v3851_v46 = vsel %vm9223_vm10, %v3831_v31, 0.0  ;;  %v5098_v48 = vld [vmem:[%s9110_s2 + $0x2] ss:$0 sm:$0xff]  ;;  %vm9233_vm12 = vmmov %vm9196_vm0  ;;  %vm4072_vm10 = vcmask 193536  }
 0x67f   :  { %v3853_v37 = vsel %vm9224_vm11, %v3832_v12, 0.0  ;;  %vm9234_vm9 = vmmov %vm9196_vm0 }
 0x680   :  { %v3842_v32 = vadd.f32 %v3841_v58, %v3840_v27  ;;  %v3855_v42 = vsel %vm9196_vm0, %v3833_v3, 0.0  ;;  %vm9235_vm14 = vmmov %vm9196_vm0 }
 0x681   :  { %vm9236_vm13 = vmmov %vm9196_vm0 }
 0x682   :  { %v3844_v16 = vadd.f32 %v3843_v39, %v3842_v32  ;;  %vm9237_vm11 = vmmov %vm9196_vm0 }
 0x684   :  { %v3846_v24 = vadd.f32 %v3845_v25, %v3844_v16 }
 0x686   :  { %v3848_v61 = vadd.f32 %v3847_v34, %v3846_v24 }
 0x688   :  { %v3850_v26 = vadd.f32 %v3849_v51, %v3848_v61 }
 0x68a   :  { %v3852_v33 = vadd.f32 %v3851_v46, %v3850_v26 }
 0x68c   :  { %v3854_v18 = vadd.f32 %v3853_v37, %v3852_v33 }
 0x68e   :  { %v3856_v56 = vadd.f32 %v3855_v42, %v3854_v18 }
 0x690   :  { %v3857_v8 = vrot.slane %v3856_v56, 4 }
 0x692   :  { %v3858_v41 = vadd.f32 %v3857_v8, %v3856_v56 }
 0x694   :  { %v3859_v9 = vrot.slane %v3858_v41, 2 }
 0x696   :  { %v3860_v59 = vadd.f32 %v3859_v9, %v3858_v41 }
 0x698   :  { %v3861_v6 = vrot.slane %v3860_v59, 1 }
 0x69a   :  { %v3862_v57 = vadd.f32 %v3861_v6, %v3860_v59 }
 0x69c   :  { %v3863_v14 = vmul.f32 0.010416667, %v3862_v57 }
 0x69e   :  { %v3864_v11 = vadd.f32 1e-05, %v3863_v14 }
 0x6a0   :  { %5404 = vrsqrt.f32 %v3864_v11 }
 0x6ad   :  { %v5405_v44 = vpop.eup %5404 }
 0x6ae   :  { %v3866_v36 = vmul.f32 %v5405_v44, %v3810_v7  ;;  %v3867_v49 = vmul.f32 %v5405_v44, %v3811_v52  ;;  %v3868_v2 = vmul.f32 %v5405_v44, %v3812_v4  ;;  %v3869_v62 = vmul.f32 %v5405_v44, %v3813_v19 }
 0x6af   :  { %v3870_v23 = vmul.f32 %v5405_v44, %v3814_v22  ;;  %v3871_v50 = vmul.f32 %v5405_v44, %v3815_v60  ;;  %v3872_v20 = vmul.f32 %v5405_v44, %v3816_v28  ;;  %v3873_v40 = vmul.f32 %v5405_v44, %v3817_v1 }
 0x6b0   :  { %v3874_v30 = vmul.f32 %v5405_v44, %v3818_v13  ;;  %v3875_v35 = vmul.f32 %v5405_v44, %v3819_v38  ;;  %v3876_v47 = vmul.f32 %v5405_v44, %v3820_v29  ;;  %v3877_v5 = vmul.f32 %v5405_v44, %v3821_v43 }
 0x6b1   :  { %v3882_v17 = vmul.f32 %v5098_v48, %v3866_v36  ;;  %v3883_v53 = vmul.f32 %v5098_v48, %v3867_v49  ;;  %v3884_v0 = vmul.f32 %v5098_v48, %v3868_v2  ;;  %v3885_v55 = vmul.f32 %v5098_v48, %v3869_v62 }
 0x6b2   :  { %v3886_v7 = vmul.f32 %v5098_v48, %v3870_v23  ;;  %v3887_v52 = vmul.f32 %v5098_v48, %v3871_v50  ;;  %v3888_v4 = vmul.f32 %v5098_v48, %v3872_v20  ;;  %v3889_v19 = vmul.f32 %v5098_v48, %v3873_v40 }
 0x6b3   :  { %v3890_v22 = vmul.f32 %v5098_v48, %v3874_v30  ;;  %v3891_v60 = vmul.f32 %v5098_v48, %v3875_v35  ;;  %v3892_v28 = vmul.f32 %v5098_v48, %v3876_v47  ;;  %v3893_v1 = vmul.f32 %v5098_v48, %v3877_v5 }
 0x6b4   :  { %v3898_v15 = vadd.f32 %v5099_v63, %v3882_v17  ;;  %v3899_v27 = vadd.f32 %v5099_v63, %v3883_v53  ;;  %v3900_v13 = vadd.f32 %v5099_v63, %v3884_v0  ;;  %v3901_v10 = vadd.f32 %v5099_v63, %v3885_v55 }
 0x6b5   :  { %v3902_v58 = vadd.f32 %v5099_v63, %v3886_v7  ;;  %v3903_v32 = vadd.f32 %v5099_v63, %v3887_v52  ;;  %v3904_v38 = vadd.f32 %v5099_v63, %v3888_v4  ;;  %v3905_v54 = vadd.f32 %v5099_v63, %v3889_v19 }
 0x6b6   :  { %v3906_v39 = vadd.f32 %v5099_v63, %v3890_v22  ;;  %v3907_v16 = vadd.f32 %v5099_v63, %v3891_v60  ;;  %v3908_v29 = vadd.f32 %v5099_v63, %v3892_v28  ;;  %v3909_v45 = vadd.f32 %v5099_v63, %v3893_v1 }
 0x6b7   :  { %v3910_v25 = vmax.f32 %v3898_v15, 0.0  ;;  %v3911_v24 = vmax.f32 %v3899_v27, 0.0  ;;  %v3912_v43 = vmax.f32 %v3900_v13, 0.0  ;;  %v3913_v31 = vmax.f32 %v3901_v10, 0.0 }
 0x6b8   :  { %v3914_v34 = vmax.f32 %v3902_v58, 0.0  ;;  %v3915_v61 = vmax.f32 %v3903_v32, 0.0  ;;  %v3916_v12 = vmax.f32 %v3904_v38, 0.0  ;;  %v3917_v51 = vmax.f32 %v3905_v54, 0.0 }
 0x6b9   :  { %v3918_v26 = vmax.f32 %v3906_v39, 0.0  ;;  %v3919_v3 = vmax.f32 %v3907_v16, 0.0  ;;  %v3920_v46 = vmax.f32 %v3908_v29, 0.0  ;;  %v3921_v33 = vmax.f32 %v3909_v45, 0.0  ;;  %3922 = vst.msk [vmem:[#allocation4] sm:$0xff] %vm9225_vm1, %v3910_v25  ;;  %vm9238_vm1 = vmmov %vm9196_vm0 }
 0x6ba   :  { %3923 = vst.msk [vmem:[#allocation4 + $0x8] sm:$0xff] %vm9226_vm2, %v3911_v24  ;;  %vm9239_vm2 = vmmov %vm9196_vm0 }
 0x6bb   :  { %3924 = vst.msk [vmem:[#allocation4 + $0x10] sm:$0xff] %vm9227_vm7, %v3912_v43  ;;  %vm9240_vm7 = vmmov %vm9196_vm0 }
 0x6bc   :  { %3925 = vst.msk [vmem:[#allocation4 + $0x18] sm:$0xff] %vm9228_vm15, %v3913_v31  ;;  %vm9241_vm15 = vmmov %vm9196_vm0 }
 0x6bd   :  { %3926 = vst.msk [vmem:[#allocation4 + $0x20] sm:$0xff] %vm9229_vm3, %v3914_v34  ;;  %vm9242_vm3 = vmmov %vm9196_vm0 }
 0x6be   :  { %3927 = vst.msk [vmem:[#allocation4 + $0x28] sm:$0xff] %vm9230_vm5, %v3915_v61  ;;  %vm9243_vm5 = vmmov %vm9196_vm0 }
 0x6bf   :  { %3928 = vst.msk [vmem:[#allocation4 + $0x30] sm:$0xff] %vm9231_vm8, %v3916_v12  ;;  %vm9244_vm8 = vcmask 1043456  }
 0x6c0   :  { %3929 = vst.msk [vmem:[#allocation4 + $0x38] sm:$0xff] %vm9232_vm4, %v3917_v51  ;;  %v3934_v37 = vld [vmem:[#allocation4] sm:$0x3f]  ;;  %vm9245_vm4 = vmmov %vm9244_vm8 }
 0x6c1   :  { %3930 = vst.msk [vmem:[#allocation4 + $0x40] sm:$0xff] %vm9233_vm12, %v3918_v26  ;;  %v3942_v18 = vld [vmem:[#allocation4 + $0x1] sm:$0x3f]  ;;  %v3975_v6 = vld [vmem:[#allocation4 + $0x8] sm:$0x3f] }
 0x6c2   :  { %3931 = vst.msk [vmem:[#allocation4 + $0x48] sm:$0xff] %vm9234_vm9, %v3919_v3  ;;  %v3950_v42 = vmax.f32 %v3934_v37, %v3942_v18  ;;  %v3958_v41 = vld [vmem:[#allocation4 + $0x2] sm:$0x3f]  ;;  %v3935_v14 = vld [vmem:[#allocation4 + $0x8] sm:$0x3f] }
 0x6c3   :  { %3932 = vst.msk [vmem:[#allocation4 + $0x50] sm:$0xff] %vm9235_vm14, %v3920_v46  ;;  %v3943_v11 = vld [vmem:[#allocation4 + $0x9] sm:$0x3f]  ;;  %v3936_v20 = vld [vmem:[#allocation4 + $0x10] sm:$0x3f] }
 0x6c4   :  { %3933 = vst.msk [vmem:[#allocation4 + $0x58] sm:$0xff] %vm9236_vm13, %v3921_v33  ;;  %v3966_v9 = vmax.f32 %v3950_v42, %v3958_v41  ;;  %v3991_v44 = vld [vmem:[#allocation4 + $0x9] sm:$0x3f]  ;;  %v3951_v48 = vmax.f32 %v3935_v14, %v3943_v11  ;;  %v3944_v40 = vld [vmem:[#allocation4 + $0x11] sm:$0x3f] }
 0x6c5   :  { %v3959_v2 = vld [vmem:[#allocation4 + $0xa] sm:$0x3f]  ;;  %v3976_v35 = vld [vmem:[#allocation4 + $0x10] sm:$0x3f]  ;;  %v3952_v47 = vmax.f32 %v3936_v20, %v3944_v40  ;;  %v3937_v52 = vld [vmem:[#allocation4 + $0x18] sm:$0x3f] }
 0x6c6   :  { %v3983_v57 = vmax.f32 %v3966_v9, %v3975_v6  ;;  %v4007_v23 = vld [vmem:[#allocation4 + $0xa] sm:$0x3f]  ;;  %v3967_v50 = vmax.f32 %v3951_v48, %v3959_v2  ;;  %v4024_v63 = vld [vmem:[#allocation4 + $0x10] sm:$0x3f]  ;;  %v3945_v4 = vld [vmem:[#allocation4 + $0x19] sm:$0x3f] }
 0x6c7   :  { %v3960_v53 = vld [vmem:[#allocation4 + $0x12] sm:$0x3f]  ;;  %v3977_v28 = vld [vmem:[#allocation4 + $0x18] sm:$0x3f]  ;;  %v3953_v1 = vmax.f32 %v3937_v52, %v3945_v4  ;;  %v3978_v43 = vld [vmem:[#allocation4 + $0x20] sm:$0x3f] }
 0x6c8   :  { %v3999_v49 = vmax.f32 %v3983_v57, %v3991_v44  ;;  %v3984_v17 = vmax.f32 %v3967_v50, %v3976_v35  ;;  %v3992_v55 = vld [vmem:[#allocation4 + $0x11] sm:$0x3f]  ;;  %v3968_v7 = vmax.f32 %v3952_v47, %v3960_v53  ;;  %v3961_v58 = vld [vmem:[#allocation4 + $0x1a] sm:$0x3f]  ;;  %v3994_v37 = vld [vmem:[#allocation4 + $0x21] sm:$0x3f] }
 0x6c9   :  { %v3941_v56 = vld [vmem:[#allocation4 + $0x48] sm:$0x3f]  ;;  %v4040_v22 = vld [vmem:[#allocation4 + $0x11] sm:$0x3f]  ;;  %v3993_v38 = vld [vmem:[#allocation4 + $0x19] sm:$0x3f]  ;;  %v3969_v54 = vmax.f32 %v3953_v1, %v3961_v58 }
 0x6ca   :  { %v3949_v8 = vld [vmem:[#allocation4 + $0x49] sm:$0x3f]  ;;  %v4015_v30 = vmax.f32 %v3999_v49, %v4007_v23  ;;  %v3982_v5 = vld [vmem:[#allocation4 + $0x50] sm:$0x3f]  ;;  %v4000_v60 = vmax.f32 %v3984_v17, %v3992_v55  ;;  %v3985_v10 = vmax.f32 %v3968_v7, %v3977_v28  ;;  %v4025_v25 = vld [vmem:[#allocation4 + $0x18] sm:$0x3f] }
 0x6cb   :  { %v3957_v59 = vmax.f32 %v3941_v56, %v3949_v8  ;;  %v3965_v36 = vld [vmem:[#allocation4 + $0x4a] sm:$0x3f]  ;;  %v4056_v27 = vld [vmem:[#allocation4 + $0x12] sm:$0x3f]  ;;  %v4041_v12 = vld [vmem:[#allocation4 + $0x19] sm:$0x3f]  ;;  %v3986_v26 = vmax.f32 %v3969_v54, %v3978_v43 }
 0x6cc   :  { %v4032_v0 = vmax.f32 %v4015_v30, %v4024_v63  ;;  %v4008_v13 = vld [vmem:[#allocation4 + $0x12] sm:$0x3f]  ;;  %v4001_v24 = vmax.f32 %v3985_v10, %v3993_v38  ;;  %v4009_v51 = vld [vmem:[#allocation4 + $0x1a] sm:$0x3f]  ;;  %v4026_v9 = vld [vmem:[#allocation4 + $0x20] sm:$0x3f] }
 0x6cd   :  { %v3973_v62 = vmax.f32 %v3957_v59, %v3965_v36  ;;  %v4016_v32 = vmax.f32 %v4000_v60, %v4008_v13  ;;  %v3938_v39 = vld [vmem:[#allocation4 + $0x30] sm:$0x3f]  ;;  %v3939_v42 = vld [vmem:[#allocation4 + $0x38] sm:$0x3f]  ;;  %v4002_v59 = vmax.f32 %v3986_v26, %v3994_v37  ;;  %v4042_v11 = vld [vmem:[#allocation4 + $0x21] sm:$0x3f] }
 0x6ce   :  { %v4048_v15 = vmax.f32 %v4032_v0, %v4040_v22  ;;  %v3946_v16 = vld [vmem:[#allocation4 + $0x31] sm:$0x3f]  ;;  %v4017_v33 = vmax.f32 %v4001_v24, %v4009_v51  ;;  %v3947_v56 = vld [vmem:[#allocation4 + $0x39] sm:$0x3f]  ;;  %v4010_v44 = vld [vmem:[#allocation4 + $0x22] sm:$0x3f] }
 0x6cf   :  { %v3990_v19 = vmax.f32 %v3973_v62, %v3982_v5  ;;  %v3998_v29 = vld [vmem:[#allocation4 + $0x51] sm:$0x3f]  ;;  %v3954_v31 = vmax.f32 %v3938_v39, %v3946_v16  ;;  %v4033_v61 = vmax.f32 %v4016_v32, %v4025_v25  ;;  %v4057_v41 = vld [vmem:[#allocation4 + $0x1a] sm:$0x3f]  ;;  %v3955_v57 = vmax.f32 %v3939_v42, %v3947_v56  ;;  %v3940_v50 = vld [vmem:[#allocation4 + $0x40] sm:$0x3f] }
 0x6d0   :  { %v4064_v45 = vmax.f32 %v4048_v15, %v4056_v27  ;;  %v3962_v3 = vld [vmem:[#allocation4 + $0x32] sm:$0x3f]  ;;  %v3979_v6 = vld [vmem:[#allocation4 + $0x38] sm:$0x3f]  ;;  %v4034_v14 = vmax.f32 %v4017_v33, %v4026_v9  ;;  %v4018_v2 = vmax.f32 %v4002_v59, %v4010_v44  ;;  %v3948_v20 = vld [vmem:[#allocation4 + $0x41] sm:$0x3f] }
 0x6d1   :  { %v4006_v34 = vmax.f32 %v3990_v19, %v3998_v29  ;;  %v4014_v46 = vld [vmem:[#allocation4 + $0x52] sm:$0x3f]  ;;  %v3970_v18 = vmax.f32 %v3954_v31, %v3962_v3  ;;  %v4049_v8 = vmax.f32 %v4033_v61, %v4041_v12  ;;  %v3963_v36 = vld [vmem:[#allocation4 + $0x3a] sm:$0x3f]  ;;  %v4027_v35 = vld [vmem:[#allocation4 + $0x28] sm:$0x3f]  ;;  %v3956_v63 = vmax.f32 %v3940_v50, %v3948_v20 }
 0x6d2   :  { %4073 = vst.msk [vmem:[#allocation5] sm:$0x3f] %vm4072_vm10, %v4064_v45  ;;  %v3995_v62 = vld [vmem:[#allocation4 + $0x39] sm:$0x3f]  ;;  %v3971_v23 = vmax.f32 %v3955_v57, %v3963_v36  ;;  %v4050_v30 = vmax.f32 %v4034_v14, %v4042_v11  ;;  %v3980_v5 = vld [vmem:[#allocation4 + $0x40] sm:$0x3f]  ;;  %v4035_v53 = vmax.f32 %v4018_v2, %v4027_v35 }
 0x6d3   :  { %v3987_v48 = vmax.f32 %v3970_v18, %v3979_v6  ;;  %v4065_v49 = vmax.f32 %v4049_v8, %v4057_v41  ;;  %v4022_v40 = vmax.f32 %v4006_v34, %v4014_v46  ;;  %v4058_v17 = vld [vmem:[#allocation4 + $0x22] sm:$0x3f]  ;;  %v4011_v0 = vld [vmem:[#allocation4 + $0x3a] sm:$0x3f]  ;;  %v4043_v4 = vld [vmem:[#allocation4 + $0x29] sm:$0x3f] }
 0x6d4   :  { %v3988_v55 = vmax.f32 %v3971_v23, %v3980_v5  ;;  %v3964_v7 = vld [vmem:[#allocation4 + $0x42] sm:$0x3f]  ;;  %v4066_v52 = vmax.f32 %v4050_v30, %v4058_v17  ;;  %v4031_v28 = vld [vmem:[#allocation4 + $0x58] sm:$0x3f]  ;;  %v4051_v15 = vmax.f32 %v4035_v53, %v4043_v4  ;;  %v3981_v10 = vld [vmem:[#allocation4 + $0x48] sm:$0x3f] }
 0x6d5   :  { %v4003_v47 = vmax.f32 %v3987_v48, %v3995_v62  ;;  %4074 = vst.msk [vmem:[#allocation5 + $0x8] sm:$0x3f] %vm4072_vm10, %v4065_v49  ;;  %v3996_v22 = vld [vmem:[#allocation4 + $0x41] sm:$0x3f]  ;;  %v3972_v60 = vmax.f32 %v3956_v63, %v3964_v7  ;;  %v4039_v58 = vmax.f32 %v4022_v40, %v4031_v28  ;;  %v4059_v32 = vld [vmem:[#allocation4 + $0x2a] sm:$0x3f] }
 0x6d6   :  { %v4028_v27 = vld [vmem:[#allocation4 + $0x40] sm:$0x3f]  ;;  %v4004_v13 = vmax.f32 %v3988_v55, %v3996_v22  ;;  %4075 = vst.msk [vmem:[#allocation5 + $0x10] sm:$0x3f] %vm4072_vm10, %v4066_v52  ;;  %v4047_v16 = vld [vmem:[#allocation4 + $0x59] sm:$0x3f]  ;;  %v4067_v29 = vmax.f32 %v4051_v15, %v4059_v32 }
 0x6d7   :  { %v4019_v19 = vmax.f32 %v4003_v47, %v4011_v0  ;;  %v4012_v54 = vld [vmem:[#allocation4 + $0x42] sm:$0x3f]  ;;  %v3989_v39 = vmax.f32 %v3972_v60, %v3981_v10  ;;  %v3997_v24 = vld [vmem:[#allocation4 + $0x49] sm:$0x3f]  ;;  %v4055_v43 = vmax.f32 %v4039_v58, %v4047_v16  ;;  %v4063_v12 = vld [vmem:[#allocation4 + $0x5a] sm:$0x3f] }
 0x6d8   :  { %v4044_v45 = vld [vmem:[#allocation4 + $0x41] sm:$0x3f]  ;;  %v4020_v25 = vmax.f32 %v4004_v13, %v4012_v54  ;;  %v4029_v34 = vld [vmem:[#allocation4 + $0x48] sm:$0x3f]  ;;  %4076 = vst.msk [vmem:[#allocation5 + $0x18] sm:$0x3f] %vm4072_vm10, %v4067_v29 }
 0x6d9   :  { %v4090_v1 = vld [vmem:[#allocation5] sm:$0xff]  ;;  %v4036_v38 = vmax.f32 %v4019_v19, %v4028_v27  ;;  %v4005_v61 = vmax.f32 %v3989_v39, %v3997_v24  ;;  %v4013_v3 = vld [vmem:[#allocation4 + $0x4a] sm:$0x3f]  ;;  %v4071_v46 = vmax.f32 %v4055_v43, %v4063_v12  ;;  %v4030_v8 = vld [vmem:[#allocation4 + $0x50] sm:$0x3f] }
 0x6da   :  { %5311 = vmatprep.mubr.msk.f32.mxu1 %vm9237_vm11, %v4090_v1  ;;  %v4060_v51 = vld [vmem:[#allocation4 + $0x42] sm:$0x3f]  ;;  %v4037_v26 = vmax.f32 %v4020_v25, %v4029_v34  ;;  %v4045_v18 = vld [vmem:[#allocation4 + $0x49] sm:$0x3f]  ;;  %v4046_v57 = vld [vmem:[#allocation4 + $0x51] sm:$0x3f] }
 0x6db   :  { %v4052_v31 = vmax.f32 %v4036_v38, %v4044_v45  ;;  %v4021_v42 = vmax.f32 %v4005_v61, %v4013_v3  ;;  %4080 = vst.msk [vmem:[#allocation5 + $0x38] sm:$0x3f] %vm4072_vm10, %v4071_v46  ;;  %v4061_v41 = vld [vmem:[#allocation4 + $0x4a] sm:$0x3f]  ;;  %v4062_v11 = vld [vmem:[#allocation4 + $0x52] sm:$0x3f] }
 0x6dc   :  { %v4091_v33 = vld [vmem:[#allocation5 + $0x8] sm:$0xff]  ;;  %v4053_v56 = vmax.f32 %v4037_v26, %v4045_v18  ;;  %v4374_v50 = vld [vmem:[%s9109_s1 + $0xa0] sm:$0xff] }
 0x6dd   :  { %v4068_v37 = vmax.f32 %v4052_v31, %v4060_v51  ;;  %5312 = vmatmul.mubr.msk.f32.vlgmr.msra.gmra.mxu1 %vm9196_vm0, %v4091_v33  ;;  %v4038_v9 = vmax.f32 %v4021_v42, %v4030_v8  ;;  %v4092_v59 = vld [vmem:[#allocation5 + $0x10] sm:$0xff]  ;;  %v4375_v23 = vld [vmem:[%s9109_s1 + $0xa8] sm:$0xf] }
 0x6de   :  { %v4069_v6 = vmax.f32 %v4053_v56, %v4061_v41  ;;  %5314 = vmatprep.mubr.msk.f32.mxu1 %vm9238_vm1, %v4092_v59  ;;  %5323 = vmatprep.subr.msk.mxu0 %vm9244_vm8, %v4375_v23 }
 0x6df   :  { %4077 = vst.msk [vmem:[#allocation5 + $0x20] sm:$0x3f] %vm4072_vm10, %v4068_v37  ;;  %v4054_v14 = vmax.f32 %v4038_v9, %v4046_v57  ;;  %v4093_v44 = vld [vmem:[#allocation5 + $0x18] sm:$0xff]  ;;  %5324 = vmatpush3.msk.msra.mxu0 %vm9245_vm4, %v4375_v23 }
 0x6e0   :  { %4078 = vst.msk [vmem:[#allocation5 + $0x28] sm:$0x3f] %vm4072_vm10, %v4069_v6  ;;  %5325 = vmatprep.subr.mxu0 %v4374_v50 }
 0x6e1   :  { %v4070_v48 = vmax.f32 %v4054_v14, %v4062_v11  ;;  %5315 = vmatmul.mubr.msk.f32.gmra.mxu1 %vm9239_vm2, %v4093_v44  ;;  %5326 = vmatpush3.msra.mxu0 %v4374_v50  ;;  %vm9255_vm2 = vcmask 31744  }
 0x6e2   :  { %v4097_v62 = vld [vmem:[#allocation5 + $0x38] sm:$0xff]  ;;  %vm9261_vm8 = vmmov %vm9255_vm2 }
 0x6e3   :  { %4079 = vst.msk [vmem:[#allocation5 + $0x30] sm:$0x3f] %vm4072_vm10, %v4070_v48  ;;  %vm9262_vm4 = vmmov %vm9255_vm2 }
 0x6e6   :  { %v4094_v36 = vld [vmem:[#allocation5 + $0x20] sm:$0xff] }
 0x6e7   :  { %5317 = vmatprep.mubr.msk.f32.mxu1 %vm9240_vm7, %v4094_v36  ;;  %v4095_v49 = vld [vmem:[#allocation5 + $0x28] sm:$0xff]  ;;  %vm9256_vm7 = vmmov %vm9255_vm2 }
 0x6e8   :  { %5318 = vmatmul.mubr.msk.f32.gmra.mxu1 %vm9241_vm15, %v4095_v49  ;;  %vm9257_vm15 = vmmov %vm9255_vm2 }
 0x6ea   :  { %v4096_v2 = vld [vmem:[#allocation5 + $0x30] sm:$0xff] }
 0x6eb   :  { %5320 = vmatprep.mubr.msk.f32.mxu1 %vm9242_vm3, %v4096_v2  ;;  %vm9258_vm3 = vmmov %vm9255_vm2 }
 0x6ec   :  { %5321 = vmatmul.mubr.msk.f32.gmra.mxu1 %vm9243_vm5, %v4097_v62  ;;  %vm9259_vm5 = vmmov %vm9255_vm2 }
 0x79d   :  { %v5313_v20 = vpop.f32.mrf.mxu1 }
 0x79e   :  { %v4233_v47 = vsel %vm1310_vm6, %v5313_v20, 0.0 }
 0x79f   :  { %v4191_v40 = vpop.f32.mrf.mxu1 }
 0x7a0   :  { %v4232_v30 = vsel %vm1310_vm6, %v4191_v40, 0.0 }
 0x7a1   :  { %v5316_v35 = vpop.f32.mrf.mxu1  ;;  %v4234_v5 = vadd.f32 %v4233_v47, %v4232_v30 }
 0x7a2   :  { %v4237_v0 = vsel %vm1310_vm6, %v5316_v35, 0.0 }
 0x7a3   :  { %v4201_v63 = vpop.f32.mrf.mxu1 }
 0x7a4   :  { %v4235_v17 = vsel %vm1310_vm6, %v4201_v63, 0.0 }
 0x7a5   :  { %v4236_v53 = vadd.f32 %v4235_v17, %v4234_v5 }
 0x7a7   :  { %v4238_v7 = vadd.f32 %v4237_v0, %v4236_v53  ;;  %v9247_v53 = vld [vmem:[#allocation9_spill] sm:$0xff] }
 0x7a8   :  { %v5319_v55 = vpop.f32.mrf.mxu1  ;;  %v4334_v0 = vand.u32 7, %v9247_v53 }
 0x7a9   :  { %v4241_v60 = vsel %vm1310_vm6, %v5319_v55, 0.0 }
 0x7aa   :  { %v4211_v52 = vpop.f32.mrf.mxu1  ;;  %vm8843_vm9 = vcmp.lt.s32.totalorder %v4334_v0, 6 }
 0x7ab   :  { %v4239_v4 = vsel %vm1310_vm6, %v4211_v52, 0.0 }
 0x7ac   :  { %v4240_v19 = vadd.f32 %v4239_v4, %v4238_v7  ;;  %v5322_v22 = vpop.f32.mrf.mxu1  ;;  %v5108_v7 = vld [vmem:[%s9110_s2 + $0x4] ss:$0 sm:$0xff] }
 0x7ad   :  { %v4245_v13 = vsel %vm1310_vm6, %v5322_v22, 0.0 }
 0x7ae   :  { %v4221_v28 = vpop.f32.mrf.mxu1  ;;  %v4242_v1 = vadd.f32 %v4241_v60, %v4240_v19 }
 0x7af   :  { %v4243_v15 = vsel %vm1310_vm6, %v4221_v28, 0.0 }
 0x7b0   :  { %v4244_v27 = vadd.f32 %v4243_v15, %v4242_v1  ;;  %v5109_v1 = vld [vmem:[%s9110_s2 + $0x5] ss:$0 sm:$0xff] }
 0x7b2   :  { %v4246_v10 = vadd.f32 %v4245_v13, %v4244_v27 }
 0x7b4   :  { %v4247_v58 = vrot.slane %v4246_v10, 4 }
 0x7b6   :  { %v4248_v32 = vadd.f32 %v4247_v58, %v4246_v10 }
 0x7b8   :  { %v4249_v38 = vrot.slane %v4248_v32, 2 }
 0x7ba   :  { %v4250_v54 = vadd.f32 %v4249_v38, %v4248_v32 }
 0x7bc   :  { %v4251_v39 = vrot.slane %v4250_v54, 1 }
 0x7be   :  { %v4252_v16 = vadd.f32 %v4251_v39, %v4250_v54 }
 0x7c0   :  { %v4253_v29 = vmul.f32 0.020833334, %v4252_v16  ;;  %v1699_v16 = vadd.s32 32, %v9247_v53 }
 0x7c2   :  { %v4254_v45 = vsub.f32 %v4191_v40, %v4253_v29  ;;  %v4255_v25 = vsub.f32 %v5313_v20, %v4253_v29  ;;  %v4256_v24 = vsub.f32 %v4201_v63, %v4253_v29  ;;  %v4257_v43 = vsub.f32 %v5316_v35, %v4253_v29 }
 0x7c3   :  { %v4258_v31 = vsub.f32 %v4211_v52, %v4253_v29  ;;  %v4259_v51 = vsub.f32 %v5319_v55, %v4253_v29  ;;  %v4260_v37 = vsub.f32 %v4221_v28, %v4253_v29  ;;  %v4261_v8 = vsub.f32 %v5322_v22, %v4253_v29 }
 0x7c4   :  { %v4262_v34 = vmul.f32 %v4254_v45, %v4191_v40  ;;  %v4263_v61 = vmul.f32 %v5313_v20, %v4255_v25  ;;  %v4264_v12 = vmul.f32 %v4256_v24, %v4201_v63  ;;  %v4265_v26 = vmul.f32 %v5316_v35, %v4257_v43  ;;  %v9246_v63 = vld [vmem:[#allocation10_spill] sm:$0xff] }
 0x7c5   :  { %v4266_v18 = vmul.f32 %v4258_v31, %v4211_v52  ;;  %v4267_v41 = vmul.f32 %v5319_v55, %v4259_v51  ;;  %v4268_v6 = vmul.f32 %v4260_v37, %v4221_v28  ;;  %v4269_v11 = vmul.f32 %v5322_v22, %v4261_v8 }
 0x7c6   :  { %v4270_v3 = vsel %vm1310_vm6, %v4262_v34, 0.0  ;;  %v4271_v46 = vsel %vm1310_vm6, %v4263_v61, 0.0  ;;  %v4273_v42 = vsel %vm1310_vm6, %v4264_v12, 0.0  ;;  %v4275_v9 = vsel %vm1310_vm6, %v4265_v26, 0.0  ;;  %v9252_v34 = vld [vmem:[#allocation11_spill] sm:$0xff] }
 0x7c7   :  { %v4272_v33 = vadd.f32 %v4271_v46, %v4270_v3  ;;  %v4277_v57 = vsel %vm1310_vm6, %v4266_v18, 0.0  ;;  %v4279_v44 = vsel %vm1310_vm6, %v4267_v41, 0.0  ;;  %v4281_v36 = vsel %vm1310_vm6, %v4268_v6, 0.0 }
 0x7c8   :  { %v4283_v2 = vsel %vm1310_vm6, %v4269_v11, 0.0  ;;  %v4335_v17 = vand.u32 7, %v9246_v63  ;;  %v1697_v52 = vadd.s32 16, %v9247_v53  ;;  %v4337_v61 = vand.u32 7, %v9252_v34 }
 0x7c9   :  { %v4274_v56 = vadd.f32 %v4273_v42, %v4272_v33  ;;  %v1701_v18 = vadd.s32 48, %v9247_v53 }
 0x7ca   :  { %vm8836_vm12 = vcmp.lt.s32.totalorder %v4335_v17, 6  ;;  %v4336_v54 = vand.u32 7, %v1697_v52  ;;  %vm4345_vm13 = vcmp.lt.s32.totalorder %v4337_v61, 6 }
 0x7cb   :  { %v4276_v59 = vadd.f32 %v4275_v9, %v4274_v56 }
 0x7cc   :  { %vm4344_vm14 = vcmp.lt.s32.totalorder %v4336_v54, 6 }
 0x7cd   :  { %v4278_v14 = vadd.f32 %v4277_v57, %v4276_v59  ;;  %v9253_v57 = vld [vmem:[#allocation12_spill] sm:$0xff] }
 0x7cf   :  { %v4280_v48 = vadd.f32 %v4279_v44, %v4278_v14  ;;  %v4339_v14 = vand.u32 7, %v9253_v57  ;;  %v4340_v44 = vand.u32 7, %v1701_v18 }
 0x7d1   :  { %v4282_v49 = vadd.f32 %v4281_v36, %v4280_v48  ;;  %vm4347_vm11 = vcmp.lt.s32.totalorder %v4339_v14, 6  ;;  %vm4348_vm0 = vcmp.lt.s32.totalorder %v4340_v44, 6 }
 0x7d3   :  { %v4284_v62 = vadd.f32 %v4283_v2, %v4282_v49 }
 0x7d5   :  { %v4285_v23 = vrot.slane %v4284_v62, 4 }
 0x7d7   :  { %v4286_v50 = vadd.f32 %v4285_v23, %v4284_v62  ;;  %v9254_v23 = vld [vmem:[#allocation13_spill] sm:$0xff] }
 0x7d9   :  { %v4287_v20 = vrot.slane %v4286_v50, 2 }
 0x7db   :  { %v4288_v40 = vadd.f32 %v4287_v20, %v4286_v50  ;;  %v4341_v50 = vand.u32 7, %v9254_v23 }
 0x7dd   :  { %v4289_v30 = vrot.slane %v4288_v40, 1  ;;  %vm4349_vm1 = vcmp.lt.s32.totalorder %v4341_v50, 6 }
 0x7df   :  { %v4290_v35 = vadd.f32 %v4289_v30, %v4288_v40 }
 0x7e1   :  { %v4291_v47 = vmul.f32 0.020833334, %v4290_v35 }
 0x7e3   :  { %v4292_v5 = vadd.f32 1e-05, %v4291_v47 }
 0x7e5   :  { %5406 = vrsqrt.f32 %v4292_v5 }
 0x7f2   :  { %v5407_v55 = vpop.eup %5406 }
 0x7f3   :  { %v4294_v19 = vmul.f32 %v5407_v55, %v4254_v45  ;;  %v4295_v22 = vmul.f32 %v5407_v55, %v4255_v25  ;;  %v4296_v60 = vmul.f32 %v5407_v55, %v4256_v24  ;;  %v4300_v28 = vmul.f32 %v5407_v55, %v4260_v37 }
 0x7f4   :  { %v4297_v15 = vmul.f32 %v5407_v55, %v4257_v43  ;;  %v4298_v27 = vmul.f32 %v5407_v55, %v4258_v31  ;;  %v4299_v13 = vmul.f32 %v5407_v55, %v4259_v51  ;;  %v4301_v51 = vmul.f32 %v5407_v55, %v4261_v8 }
 0x7f5   :  { %v4306_v10 = vmul.f32 %v5108_v7, %v4294_v19  ;;  %v4307_v32 = vmul.f32 %v5108_v7, %v4295_v22  ;;  %v4308_v38 = vmul.f32 %v5108_v7, %v4296_v60  ;;  %v4312_v43 = vmul.f32 %v5108_v7, %v4300_v28 }
 0x7f6   :  { %v4309_v39 = vmul.f32 %v5108_v7, %v4297_v15  ;;  %v4310_v29 = vmul.f32 %v5108_v7, %v4298_v27  ;;  %v4311_v12 = vmul.f32 %v5108_v7, %v4299_v13  ;;  %v4338_v37 = vand.u32 7, %v1699_v16 }
 0x7f7   :  { %v4318_v45 = vadd.f32 %v5109_v1, %v4306_v10  ;;  %v4319_v25 = vadd.f32 %v5109_v1, %v4307_v32  ;;  %v4320_v24 = vadd.f32 %v5109_v1, %v4308_v38  ;;  %v4313_v8 = vmul.f32 %v5108_v7, %v4301_v51 }
 0x7f8   :  { %v4321_v31 = vadd.f32 %v5109_v1, %v4309_v39  ;;  %v4322_v33 = vadd.f32 %v5109_v1, %v4310_v29  ;;  %v4323_v9 = vadd.f32 %v5109_v1, %v4311_v12  ;;  %v4324_v11 = vadd.f32 %v5109_v1, %v4312_v43 }
 0x7f9   :  { %v4326_v26 = vmax.f32 %v4318_v45, 0.0  ;;  %v4327_v3 = vmax.f32 %v4319_v25, 0.0  ;;  %v4328_v46 = vmax.f32 %v4320_v24, 0.0  ;;  %vm4346_vm10 = vcmp.lt.s32.totalorder %v4338_v37, 6 }
 0x7fa   :  { %v4329_v41 = vmax.f32 %v4321_v31, 0.0  ;;  %v4330_v6 = vmax.f32 %v4322_v33, 0.0  ;;  %v4331_v36 = vmax.f32 %v4323_v9, 0.0  ;;  %v4325_v49 = vadd.f32 %v5109_v1, %v4313_v8 }
 0x7fb   :  { %v4366_v42 = vsel %vm8843_vm9, %v4326_v26, 0.0  ;;  %v4367_v56 = vsel %vm8836_vm12, %v4327_v3, 0.0  ;;  %v4368_v59 = vsel %vm4344_vm14, %v4328_v46, 0.0  ;;  %v4332_v62 = vmax.f32 %v4324_v11, 0.0  ;;  %vm9263_vm12 = vmmov %vm9255_vm2 }
 0x7fc   :  { %5327 = vmatprep.mubr.msk.f32.mxu0 %vm1310_vm6, %v4366_v42  ;;  %v4369_v48 = vsel %vm4345_vm13, %v4329_v41, 0.0  ;;  %v4370_v2 = vsel %vm4346_vm10, %v4330_v6, 0.0  ;;  %v4371_v20 = vsel %vm4347_vm11, %v4331_v36, 0.0  ;;  %v4333_v40 = vmax.f32 %v4325_v49, 0.0  ;;  %vm9264_vm9 = vmmov %vm9255_vm2 }
 0x7fd   :  { %5328 = vmatmul.mubr.msk.f32.vlgmr.msra.gmra.mxu0 %vm1310_vm6, %v4367_v56  ;;  %v4372_v30 = vsel %vm4348_vm0, %v4332_v62, 0.0  ;;  %vm9265_vm14 = vmmov %vm9255_vm2 }
 0x7fe   :  { %5330 = vmatprep.mubr.msk.f32.mxu0 %vm1310_vm6, %v4368_v59  ;;  %v4373_v35 = vsel %vm4349_vm1, %v4333_v40, 0.0  ;;  %vm9266_vm13 = vmmov %vm9255_vm2 }
 0x7ff   :  { %vm9267_vm10 = vmmov %vm9255_vm2 }
 0x800   :  { %vm9268_vm11 = vmmov %vm9255_vm2 }
 0x801   :  { %5331 = vmatmul.mubr.msk.f32.gmra.mxu0 %vm1310_vm6, %v4369_v48  ;;  %vm9269_vm0 = vmmov %vm9255_vm2 }
 0x802   :  { %5333 = vmatprep.mubr.msk.f32.mxu0 %vm1310_vm6, %v4370_v2  ;;  %vm9270_vm1 = vmmov %vm9269_vm0 }
 0x805   :  { %5334 = vmatmul.mubr.msk.f32.gmra.mxu0 %vm1310_vm6, %v4371_v20 }
 0x806   :  { %5336 = vmatprep.mubr.msk.f32.mxu0 %vm1310_vm6, %v4372_v30 }
 0x809   :  { %5337 = vmatmul.mubr.msk.f32.gmra.mxu0 %vm1310_vm6, %v4373_v35  ;;  %vm9260_vm6 = vmmov %vm9255_vm2 }
 0x8bd   :  { %v5329_v47 = vpop.f32.mrf.mxu0 }
 0x8be   :  { %v4511_v0 = vsel %vm9256_vm7, %v5329_v47, 0.0  ;;  %vm9272_vm7 = vmmov %vm9269_vm0 }
 0x8bf   :  { %v4469_v5 = vpop.f32.mrf.mxu0 }
 0x8c0   :  { %v4510_v63 = vsel %vm9255_vm2, %v4469_v5, 0.0  ;;  %vm9271_vm2 = vmmov %vm9269_vm0 }
 0x8c1   :  { %v5332_v17 = vpop.f32.mrf.mxu0  ;;  %v4512_v55 = vadd.f32 %v4511_v0, %v4510_v63 }
 0x8c2   :  { %v4515_v22 = vsel %vm9258_vm3, %v5332_v17, 0.0  ;;  %vm9274_vm3 = vmmov %vm9269_vm0 }
 0x8c3   :  { %v4479_v7 = vpop.f32.mrf.mxu0 }
 0x8c4   :  { %v4513_v52 = vsel %vm9257_vm15, %v4479_v7, 0.0  ;;  %vm9273_vm15 = vmmov %vm9269_vm0 }
 0x8c5   :  { %v4514_v4 = vadd.f32 %v4513_v52, %v4512_v55  ;;  %v5335_v19 = vpop.f32.mrf.mxu0 }
 0x8c6   :  { %v4519_v13 = vsel %vm9260_vm6, %v5335_v19, 0.0  ;;  %vm9276_vm6 = vmmov %vm9269_vm0 }
 0x8c7   :  { %v4489_v60 = vpop.f32.mrf.mxu0  ;;  %v4516_v28 = vadd.f32 %v4515_v22, %v4514_v4  ;;  %v8894_v4 = vld [vmem:[%s9110_s2 + $0x6] ss:$0 sm:$0xff] }
 0x8c8   :  { %v4517_v1 = vsel %vm9259_vm5, %v4489_v60, 0.0  ;;  %vm9275_vm5 = vmmov %vm9269_vm0 }
 0x8c9   :  { %v4518_v15 = vadd.f32 %v4517_v1, %v4516_v28  ;;  %v5338_v27 = vpop.f32.mrf.mxu0 }
 0x8ca   :  { %v4523_v54 = vsel %vm9262_vm4, %v5338_v27, 0.0  ;;  %vm9278_vm4 = vmmov %vm9269_vm0 }
 0x8cb   :  { %v4499_v10 = vpop.f32.mrf.mxu0  ;;  %v4520_v58 = vadd.f32 %v4519_v13, %v4518_v15 }
 0x8cc   :  { %v4521_v32 = vsel %vm9261_vm8, %v4499_v10, 0.0  ;;  %vm9277_vm8 = vmmov %vm9269_vm0 }
 0x8cd   :  { %v4522_v38 = vadd.f32 %v4521_v32, %v4520_v58  ;;  %v8914_v58 = vld [vmem:[%s9109_s1 + $0xe8] sm:$0xff] }
 0x8ce   :  { %v8919_v32 = vld [vmem:[%s9109_s1 + $0xc8] sm:$0xff] }
 0x8cf   :  { %v4524_v39 = vadd.f32 %v4523_v54, %v4522_v38 }
 0x8d1   :  { %v4525_v16 = vrot.slane %v4524_v39, 4 }
 0x8d3   :  { %v4526_v29 = vadd.f32 %v4525_v16, %v4524_v39  ;;  %v8925_v16 = vld [vmem:[%s9109_s1 + $0x108] sm:$0xff] }
 0x8d5   :  { %v4527_v45 = vrot.slane %v4526_v29, 2 }
 0x8d7   :  { %v4528_v25 = vadd.f32 %v4527_v45, %v4526_v29  ;;  %v8930_v29 = vld [vmem:[%s9109_s1 + $0xe0] sm:$0xff] }
 0x8d9   :  { %v4529_v24 = vrot.slane %v4528_v25, 1 }
 0x8db   :  { %v4530_v34 = vadd.f32 %v4529_v24, %v4528_v25 }
 0x8dd   :  { %v4531_v61 = vmul.f32 0.020833334, %v4530_v34 }
 0x8df   :  { %v4532_v43 = vsub.f32 %v4469_v5, %v4531_v61  ;;  %v8872_v31 = vsub.f32 %v5329_v47, %v4531_v61  ;;  %v8874_v12 = vsub.f32 %v4479_v7, %v4531_v61  ;;  %v8876_v51 = vsub.f32 %v5332_v17, %v4531_v61 }
 0x8e0   :  { %v4536_v26 = vsub.f32 %v4489_v60, %v4531_v61  ;;  %v4537_v37 = vsub.f32 %v5335_v19, %v4531_v61  ;;  %v4538_v9 = vsub.f32 %v4499_v10, %v4531_v61  ;;  %v4539_v57 = vsub.f32 %v5338_v27, %v4531_v61 }
 0x8e1   :  { %v4540_v3 = vmul.f32 %v4532_v43, %v4469_v5  ;;  %v4541_v46 = vmul.f32 %v5329_v47, %v8872_v31  ;;  %v4542_v33 = vmul.f32 %v8874_v12, %v4479_v7  ;;  %v4543_v18 = vmul.f32 %v5332_v17, %v8876_v51 }
 0x8e2   :  { %v4544_v8 = vmul.f32 %v4536_v26, %v4489_v60  ;;  %v4545_v14 = vmul.f32 %v5335_v19, %v4537_v37  ;;  %v4546_v48 = vmul.f32 %v4538_v9, %v4499_v10  ;;  %v4547_v2 = vmul.f32 %v5338_v27, %v4539_v57  ;;  %v8901_v60 = vld [vmem:[%s9110_s2 + $0x7] ss:$0 sm:$0xff] }
 0x8e3   :  { %v4548_v42 = vsel %vm9263_vm12, %v4540_v3, 0.0  ;;  %v4549_v56 = vsel %vm9264_vm9, %v4541_v46, 0.0  ;;  %v4551_v59 = vsel %vm9265_vm14, %v4542_v33, 0.0  ;;  %v4553_v11 = vsel %vm9266_vm13, %v4543_v18, 0.0  ;;  %v8943_v33 = vld [vmem:[%s9109_s1 + $0x100] sm:$0xff]  ;;  %vm9279_vm12 = vmmov %vm9269_vm0 }
 0x8e4   :  { %v4550_v41 = vadd.f32 %v4549_v56, %v4548_v42  ;;  %v4555_v36 = vsel %vm9267_vm10, %v4544_v8, 0.0  ;;  %v4557_v62 = vsel %vm9268_vm11, %v4545_v14, 0.0  ;;  %v4559_v50 = vsel %vm9269_vm0, %v4546_v48, 0.0  ;;  %v8958_v8 = vld [vmem:[%s9109_s1 + $0x128] sm:$0xff]  ;;  %vm9280_vm9 = vmmov %vm9269_vm0 }
 0x8e5   :  { %v4561_v40 = vsel %vm9270_vm1, %v4547_v2, 0.0  ;;  %vm9281_vm14 = vmmov %vm9269_vm0 }
 0x8e6   :  { %v4552_v6 = vadd.f32 %v4551_v59, %v4550_v41  ;;  %v8963_v59 = vld [vmem:[%s9109_s1 + $0xd8] sm:$0xff]  ;;  %vm9282_vm13 = vmmov %vm9269_vm0 }
 0x8e7   :  { %vm9283_vm10 = vmmov %vm9269_vm0 }
 0x8e8   :  { %v4554_v44 = vadd.f32 %v4553_v11, %v4552_v6  ;;  %vm9284_vm11 = vmmov %vm9269_vm0 }
 0x8e9   :  { %vm9285_vm1 = vmmov %vm9269_vm0 }
 0x8ea   :  { %v4556_v49 = vadd.f32 %v4555_v36, %v4554_v44  ;;  %v8975_v36 = vld [vmem:[%s9109_s1 + $0xf8] sm:$0xff] }
 0x8ec   :  { %v4558_v23 = vadd.f32 %v4557_v62, %v4556_v49  ;;  %v8980_v49 = vld [vmem:[%s9109_s1 + $0xb8] sm:$0xff] }
 0x8ee   :  { %v4560_v20 = vadd.f32 %v4559_v50, %v4558_v23 }
 0x8f0   :  { %v4562_v30 = vadd.f32 %v4561_v40, %v4560_v20  ;;  %v8990_v40 = vld [vmem:[%s9109_s1 + $0x120] sm:$0xff] }
 0x8f2   :  { %v4563_v35 = vrot.slane %v4562_v30, 4 }
 0x8f4   :  { %v4564_v47 = vadd.f32 %v4563_v35, %v4562_v30  ;;  %v8995_v30 = vld [vmem:[%s9109_s1 + $0xd0] sm:$0xff] }
 0x8f6   :  { %v4565_v5 = vrot.slane %v4564_v47, 2 }
 0x8f8   :  { %v4566_v63 = vadd.f32 %v4565_v5, %v4564_v47 }
 0x8fa   :  { %v4567_v17 = vrot.slane %v4566_v63, 1 }
 0x8fc   :  { %v4568_v0 = vadd.f32 %v4567_v17, %v4566_v63 }
 0x8fe   :  { %v4569_v55 = vmul.f32 0.020833334, %v4568_v0 }
 0x900   :  { %v4570_v7 = vadd.f32 1e-05, %v4569_v55  ;;  %v9007_v55 = vld [vmem:[%s9109_s1 + $0xf0] sm:$0xff] }
 0x902   :  { %5408 = vrsqrt.f32 %v4570_v7  ;;  %v9012_v7 = vld [vmem:[%s9109_s1 + $0xb0] sm:$0xff] }
 0x90f   :  { %v8889_v52 = vpop.eup %5408 }
 0x910   :  { %v4578_v19 = vmul.f32 %v8889_v52, %v4538_v9  ;;  %v4579_v22 = vmul.f32 %v8889_v52, %v4539_v57  ;;  %v4577_v28 = vmul.f32 %v8889_v52, %v4537_v37  ;;  %v8905_v1 = vmul.f32 %v8889_v52, %v4532_v43 }
 0x911   :  { %v4576_v24 = vmul.f32 %v8889_v52, %v4536_v26  ;;  %v8948_v26 = vld [vmem:[%s9109_s1 + $0xc0] sm:$0xff]  ;;  %v4575_v57 = vmul.f32 %v8889_v52, %v8876_v51  ;;  %v4574_v47 = vmul.f32 %v8889_v52, %v8874_v12 }
 0x912   :  { %v4590_v15 = vmul.f32 %v8894_v4, %v4578_v19  ;;  %v4591_v27 = vmul.f32 %v8894_v4, %v4579_v22  ;;  %v4589_v38 = vmul.f32 %v8894_v4, %v4577_v28 }
 0x913   :  { %v4588_v18 = vmul.f32 %v8894_v4, %v4576_v24  ;;  %v4587_v2 = vmul.f32 %v8894_v4, %v4575_v57  ;;  %v4586_v19 = vmul.f32 %v8894_v4, %v4574_v47 }
 0x914   :  { %v4602_v13 = vadd.f32 %v8901_v60, %v4590_v15  ;;  %v4603_v10 = vadd.f32 %v8901_v60, %v4591_v27  ;;  %v4601_v34 = vadd.f32 %v8901_v60, %v4589_v38  ;;  %v4573_v38 = vmul.f32 %v8889_v52, %v8872_v31  ;;  %v4720_v52 = vld [vmem:[%s9109_s1 + $0x110] sm:$0xff] }
 0x915   :  { %v4600_v6 = vadd.f32 %v8901_v60, %v4588_v18  ;;  %v4599_v35 = vadd.f32 %v8901_v60, %v4587_v2 }
 0x916   :  { %v4610_v54 = vmax.f32 %v4602_v13, 0.0  ;;  %v4611_v39 = vmax.f32 %v4603_v10, 0.0  ;;  %v4609_v37 = vmax.f32 %v4601_v34, 0.0  ;;  %v4721_v13 = vld [vmem:[%s9109_s1 + $0x118] sm:$0xff]  ;;  %v4598_v10 = vadd.f32 %v8901_v60, %v4586_v19 }
 0x917   :  { %v4608_v51 = vmax.f32 %v4600_v6, 0.0  ;;  %v4607_v12 = vmax.f32 %v4599_v35, 0.0  ;;  %v4585_v34 = vmul.f32 %v8894_v4, %v4573_v38 }
 0x918   :  { %v4659_v45 = vmul.f32 %v8914_v58, %v4611_v39  ;;  %v4623_v25 = vmul.f32 %v8919_v32, %v4611_v39  ;;  %v4695_v3 = vmul.f32 %v8925_v16, %v4611_v39  ;;  %v4658_v46 = vmul.f32 %v8930_v29, %v4610_v54 }
 0x919   :  { %v4694_v41 = vmul.f32 %v8943_v33, %v4610_v54  ;;  %v4622_v9 = vmul.f32 %v8948_v26, %v4610_v54  ;;  %v4731_v44 = vmul.f32 %v8958_v8, %v4611_v39  ;;  %v4657_v48 = vmul.f32 %v8963_v59, %v4609_v37 }
 0x91a   :  { %v4681_v61 = vsel %vm9271_vm2, %v4659_v45, 0.0  ;;  %v4645_v43 = vsel %vm9272_vm7, %v4623_v25, 0.0  ;;  %v4717_v42 = vsel %vm9273_vm15, %v4695_v3, 0.0  ;;  %v4678_v56 = vsel %vm9274_vm3, %v4658_v46, 0.0  ;;  %vm9286_vm2 = vmmov %vm9269_vm0 }
 0x91b   :  { %4682 = vadd.xlane.f32.xlu1 %v4681_v61  ;;  %4646 = vadd.xlane.f32.xlu0 %v4645_v43  ;;  %v4714_v14 = vsel %vm9275_vm5, %v4694_v41, 0.0  ;;  %v4642_v11 = vsel %vm9276_vm6, %v4622_v9, 0.0  ;;  %v4753_v62 = vsel %vm9277_vm8, %v4731_v44, 0.0  ;;  %v4675_v23 = vsel %vm9278_vm4, %v4657_v48, 0.0  ;;  %vm9287_vm7 = vmmov %vm9269_vm0 }
 0x91c   :  { %v4693_v50 = vmul.f32 %v8975_v36, %v4609_v37  ;;  %v4621_v20 = vmul.f32 %v8980_v49, %v4609_v37  ;;  %v4730_v17 = vmul.f32 %v8990_v40, %v4610_v54  ;;  %v4656_v0 = vmul.f32 %v8995_v30, %v4608_v51  ;;  %vm9288_vm15 = vmmov %vm9269_vm0 }
 0x91d   :  { %v4692_v15 = vmul.f32 %v9007_v55, %v4608_v51  ;;  %v4620_v27 = vmul.f32 %v9012_v7, %v4608_v51  ;;  %v4729_v45 = vmul.f32 %v4721_v13, %v4609_v37  ;;  %v4655_v25 = vmul.f32 %v8914_v58, %v4607_v12  ;;  %vm9289_vm3 = vmmov %vm9269_vm0 }
 0x91e   :  { %v4711_v5 = vsel %vm9279_vm12, %v4693_v50, 0.0  ;;  %v4639_v63 = vsel %vm9280_vm9, %v4621_v20, 0.0  ;;  %v4750_v22 = vsel %vm9281_vm14, %v4730_v17, 0.0  ;;  %v4672_v28 = vsel %vm9282_vm13, %v4656_v0, 0.0  ;;  %vm9290_vm5 = vmmov %vm9269_vm0 }
 0x91f   :  { %4718 = vadd.xlane.f32.xlu0 %v4717_v42  ;;  %4679 = vadd.xlane.f32.xlu1 %v4678_v56  ;;  %v4708_v54 = vsel %vm9283_vm10, %v4692_v15, 0.0  ;;  %v4636_v39 = vsel %vm9284_vm11, %v4620_v27, 0.0  ;;  %v4606_v24 = vmax.f32 %v4598_v10, 0.0  ;;  %v4747_v61 = vsel %vm9269_vm0, %v4729_v45, 0.0  ;;  %vm9291_vm6 = vmmov %vm9269_vm0 }
 0x920   :  { %v4669_v43 = vsel %vm9285_vm1, %v4655_v25, 0.0  ;;  %v4691_v3 = vmul.f32 %v8925_v16, %v4607_v12  ;;  %v4619_v31 = vmul.f32 %v8919_v32, %v4607_v12  ;;  %v4597_v58 = vadd.f32 %v8901_v60, %v4585_v34  ;;  %vm9292_vm8 = vmmov %vm9269_vm0 }
 0x921   :  { %v4728_v18 = vmul.f32 %v4720_v52, %v4608_v51  ;;  %v4654_v42 = vmul.f32 %v8930_v29, %v4606_v24  ;;  %v4584_v32 = vmul.f32 %v8894_v4, %v8905_v1  ;;  %v4690_v9 = vmul.f32 %v8943_v33, %v4606_v24  ;;  %vm9293_vm4 = vmmov %vm9269_vm0 }
 0x922   :  { %v4705_v46 = vsel %vm9286_vm2, %v4691_v3, 0.0  ;;  %v4633_v37 = vsel %vm9287_vm7, %v4619_v31, 0.0  ;;  %v4605_v16 = vmax.f32 %v4597_v58, 0.0  ;;  %v4618_v6 = vmul.f32 %v8948_v26, %v4606_v24  ;;  %vm9294_vm12 = vmmov %vm9269_vm0 }
 0x923   :  { %4715 = vadd.xlane.f32.xlu1 %v4714_v14  ;;  %4643 = vadd.xlane.f32.xlu0 %v4642_v11  ;;  %v4744_v56 = vsel %vm9288_vm15, %v4728_v18, 0.0  ;;  %v4666_v41 = vsel %vm9289_vm3, %v4654_v42, 0.0  ;;  %v4596_v57 = vadd.f32 %v8901_v60, %v4584_v32  ;;  %v4702_v29 = vsel %vm9290_vm5, %v4690_v9, 0.0  ;;  %vm9295_vm9 = vmmov %vm9269_vm0 }
 0x924   :  { %v4630_v14 = vsel %vm9291_vm6, %v4618_v6, 0.0  ;;  %v4727_v11 = vmul.f32 %v8958_v8, %v4607_v12  ;;  %v4653_v4 = vmul.f32 %v8963_v59, %v4605_v16  ;;  %v4689_v26 = vmul.f32 %v8975_v36, %v4605_v16  ;;  %vm9296_vm14 = vmmov %vm9269_vm0 }
 0x925   :  { %v4604_v1 = vmax.f32 %v4596_v57, 0.0  ;;  %v4617_v48 = vmul.f32 %v8980_v49, %v4605_v16  ;;  %v4726_v8 = vmul.f32 %v8990_v40, %v4606_v24  ;;  %vm9297_vm13 = vmmov %vm9269_vm0  ;;  %v4725_v20 = vmul.f32 %v4721_v13, %v4605_v16 }
 0x926   :  { %v4741_v44 = vsel %vm9292_vm8, %v4727_v11, 0.0  ;;  %v4663_v33 = vsel %vm9293_vm4, %v4653_v4, 0.0  ;;  %v4699_v60 = vsel %vm9294_vm12, %v4689_v26, 0.0  ;;  %vm9298_vm10 = vmmov %vm9269_vm0  ;;  %vm5450_vm2 = vmmov 0  }
 0x927   :  { %4754 = vadd.xlane.f32.xlu0 %v4753_v62  ;;  %4676 = vadd.xlane.f32.xlu1 %v4675_v23  ;;  %v4627_v51 = vsel %vm9295_vm9, %v4617_v48, 0.0  ;;  %v4652_v59 = vmul.f32 %v8995_v30, %v4604_v1  ;;  %v4738_v2 = vsel %vm9296_vm14, %v4726_v8, 0.0  ;;  %v4688_v36 = vmul.f32 %v9007_v55, %v4604_v1  ;;  %vm9299_vm11 = vmmov %vm9269_vm0 }
 0x928   :  { %v4616_v49 = vmul.f32 %v9012_v7, %v4604_v1  ;;  %v4735_v40 = vsel %vm9269_vm0, %v4725_v20, 0.0  ;;  %v4724_v30 = vmul.f32 %v4720_v52, %v4604_v1  ;;  %vm9300_vm1 = vmmov %vm9269_vm0  ;;  %5355 = vmatprep.mubr.msk.f32.mxu1 %vm5450_vm2, %v9207_v21  ;;  %vm4756_vm7 = vcmask 7168  }
 0x929   :  { %v4660_v62 = vsel %vm9297_vm13, %v4652_v59, 0.0  ;;  %v4696_v23 = vsel %vm9298_vm10, %v4688_v36, 0.0  ;;  %vm4773_vm15 = vcmask 23552   ;;  %vm9301_vm3 = vcmask 15360  }
 0x92a   :  { %v4624_v50 = vsel %vm9299_vm11, %v4616_v49, 0.0  ;;  %v4732_v35 = vsel %vm9300_vm1, %v4724_v30, 0.0  ;;  %vm9302_vm5 = vmmov %vm9301_vm3  ;;  %v4784_v4 = vmul.u32 32, %v9247_v53  ;;  %v9307_v26 = vlaneseq  ;;  %v5122_v30 = vld [vmem:[%s9110_s2 + $0x8] ss:$0 sm:$0xff] }
 0x92b   :  { %4712 = vadd.xlane.f32.xlu1 %v4711_v5  ;;  %4640 = vadd.xlane.f32.xlu0 %v4639_v63  ;;  %vm9303_vm6 = vmmov %vm9301_vm3  ;;  %vm4796_vm0 = vcmask 523264   ;;  %vm4870_vm1 = vcmask 25600  }
 0x92c   :  { %vm9304_vm8 = vmmov %vm9301_vm3  ;;  %v4783_v48 = vand.u32 127, %v9307_v26 }
 0x92d   :  { %vm9305_vm4 = vmmov %vm9301_vm3 }
 0x92e   :  { %vm9306_vm12 = vmmov %vm9301_vm3  ;;  %vm4785_vm9 = vcmp.ge.s32.totalorder %v4783_v48, %v4784_v4 }
 0x92f   :  { %4751 = vadd.xlane.f32.xlu0 %v4750_v22  ;;  %4673 = vadd.xlane.f32.xlu1 %v4672_v28  ;;  %vm9308_vm13 = vmmov %vm9301_vm3 }
 0x930   :  { %vm9309_vm11 = vmmov %vm9301_vm3 }
 0x933   :  { %4709 = vadd.xlane.f32.xlu1 %v4708_v54  ;;  %4637 = vadd.xlane.f32.xlu0 %v4636_v39 }
 0x937   :  { %4748 = vadd.xlane.f32.xlu0 %v4747_v61  ;;  %4670 = vadd.xlane.f32.xlu1 %v4669_v43 }
 0x93b   :  { %4706 = vadd.xlane.f32.xlu1 %v4705_v46  ;;  %4634 = vadd.xlane.f32.xlu0 %v4633_v37 }
 0x93f   :  { %4745 = vadd.xlane.f32.xlu0 %v4744_v56  ;;  %4667 = vadd.xlane.f32.xlu1 %v4666_v41 }
 0x943   :  { %4703 = vadd.xlane.f32.xlu1 %v4702_v29  ;;  %4631 = vadd.xlane.f32.xlu0 %v4630_v14 }
 0x947   :  { %4742 = vadd.xlane.f32.xlu0 %v4741_v44  ;;  %4664 = vadd.xlane.f32.xlu1 %v4663_v33 }
 0x94b   :  { %4700 = vadd.xlane.f32.xlu1 %v4699_v60  ;;  %4628 = vadd.xlane.f32.xlu0 %v4627_v51  ;;  %v4786_v60 = vadd.s32 32, %v4784_v4 }
 0x94d   :  { %vm4787_vm14 = vcmp.lt.s32.totalorder %v4783_v48, %v4786_v60 }
 0x94e   :  { %vm4788_vm10 = vmand %vm4785_vm9, %vm4787_vm14 }
 0x94f   :  { %4739 = vadd.xlane.f32.xlu0 %v4738_v2  ;;  %4661 = vadd.xlane.f32.xlu1 %v4660_v62  ;;  %v5121_v20 = vsel %vm4788_vm10, 1.0, %v9207_v21 }
 0x953   :  { %4697 = vadd.xlane.f32.xlu1 %v4696_v23  ;;  %4625 = vadd.xlane.f32.xlu0 %v4624_v50 }
 0x957   :  { %4736 = vadd.xlane.f32.xlu0 %v4735_v40 }
 0x95b   :  { %4733 = vadd.xlane.f32.xlu0 %v4732_v35 }
 0x9a4   :  { %v4683_v47 = vpop.xlane.xlu1 %4682  ;;  %v4647_v5 = vpop.xlane.xlu0 %4646 }
 0x9a5   :  { %v4764_v7 = vsel %vm4756_vm7, %v4647_v5, %v4683_v47 }
 0x9a8   :  { %v4719_v63 = vpop.xlane.xlu0 %4718  ;;  %v4680_v17 = vpop.xlane.xlu1 %4679 }
 0x9a9   :  { %v4772_v12 = vsel %vm9301_vm3, %v4764_v7, %v4719_v63 }
 0x9ac   :  { %v4716_v0 = vpop.xlane.xlu1 %4715  ;;  %v4644_v55 = vpop.xlane.xlu0 %4643 }
 0x9ad   :  { %v4763_v13 = vsel %vm4756_vm7, %v4644_v55, %v4680_v17 }
 0x9ae   :  { %v4771_v10 = vsel %vm9302_vm5, %v4763_v13, %v4716_v0 }
 0x9b0   :  { %v4755_v19 = vpop.xlane.xlu0 %4754  ;;  %v4677_v22 = vpop.xlane.xlu1 %4676 }
 0x9b1   :  { %v4781_v28 = vsel %vm4773_vm15, %v4772_v12, %v4755_v19 }
 0x9b2   :  { %5340 = vmatpush3.msra.mxu1 %v4781_v28 }
 0x9b3   :  { %5341 = vmatprep.subr.mxu1 %v9207_v21 }
 0x9b4   :  { %v4713_v15 = vpop.xlane.xlu1 %4712  ;;  %v4641_v27 = vpop.xlane.xlu0 %4640 }
 0x9b5   :  { %v4762_v24 = vsel %vm4756_vm7, %v4641_v27, %v4677_v22 }
 0x9b6   :  { %v4770_v34 = vsel %vm9303_vm6, %v4762_v24, %v4713_v15 }
 0x9b8   :  { %v4752_v38 = vpop.xlane.xlu0 %4751  ;;  %v4674_v54 = vpop.xlane.xlu1 %4673 }
 0x9b9   :  { %v4780_v39 = vsel %vm4773_vm15, %v4771_v10, %v4752_v38 }
 0x9ba   :  { %5342 = vmatpush3.msra.mxu1 %v4780_v39 }
 0x9bb   :  { %5343 = vmatprep.subr.mxu1 %v9207_v21 }
 0x9bc   :  { %v4710_v45 = vpop.xlane.xlu1 %4709  ;;  %v4638_v25 = vpop.xlane.xlu0 %4637 }
 0x9bd   :  { %v4761_v58 = vsel %vm4756_vm7, %v4638_v25, %v4674_v54 }
 0x9be   :  { %v4769_v46 = vsel %vm9304_vm8, %v4761_v58, %v4710_v45 }
 0x9c0   :  { %v4749_v61 = vpop.xlane.xlu0 %4748  ;;  %v4671_v43 = vpop.xlane.xlu1 %4670 }
 0x9c1   :  { %v4779_v3 = vsel %vm4773_vm15, %v4770_v34, %v4749_v61 }
 0x9c2   :  { %5344 = vmatpush3.msra.mxu1 %v4779_v3 }
 0x9c3   :  { %5345 = vmatprep.subr.mxu1 %v9207_v21 }
 0x9c4   :  { %v4707_v31 = vpop.xlane.xlu1 %4706  ;;  %v4635_v52 = vpop.xlane.xlu0 %4634 }
 0x9c5   :  { %v4760_v56 = vsel %vm4756_vm7, %v4635_v52, %v4671_v43 }
 0x9c6   :  { %v4768_v41 = vsel %vm9305_vm4, %v4760_v56, %v4707_v31 }
 0x9c8   :  { %v4746_v37 = vpop.xlane.xlu0 %4745  ;;  %v4668_v18 = vpop.xlane.xlu1 %4667 }
 0x9c9   :  { %v4778_v42 = vsel %vm4773_vm15, %v4769_v46, %v4746_v37 }
 0x9ca   :  { %5346 = vmatpush3.msra.mxu1 %v4778_v42 }
 0x9cb   :  { %5347 = vmatprep.subr.mxu1 %v9207_v21 }
 0x9cc   :  { %v4704_v16 = vpop.xlane.xlu1 %4703  ;;  %v4632_v32 = vpop.xlane.xlu0 %4631 }
 0x9cd   :  { %v4759_v14 = vsel %vm4756_vm7, %v4632_v32, %v4668_v18 }
 0x9ce   :  { %v4767_v1 = vsel %vm9306_vm12, %v4759_v14, %v4704_v16 }
 0x9d0   :  { %v4743_v9 = vpop.xlane.xlu0 %4742  ;;  %v4665_v6 = vpop.xlane.xlu1 %4664 }
 0x9d1   :  { %v4777_v57 = vsel %vm4773_vm15, %v4768_v41, %v4743_v9 }
 0x9d2   :  { %5348 = vmatpush3.msra.mxu1 %v4777_v57 }
 0x9d3   :  { %5349 = vmatprep.subr.mxu1 %v9207_v21 }
 0x9d4   :  { %v4629_v29 = vpop.xlane.xlu0 %4628  ;;  %v4701_v11 = vpop.xlane.xlu1 %4700 }
 0x9d5   :  { %v4758_v59 = vsel %vm4756_vm7, %v4629_v29, %v4665_v6 }
 0x9d6   :  { %v4766_v2 = vsel %vm9308_vm13, %v4758_v59, %v4701_v11 }
 0x9d8   :  { %v4740_v44 = vpop.xlane.xlu0 %4739  ;;  %v4662_v51 = vpop.xlane.xlu1 %4661 }
 0x9d9   :  { %v4776_v33 = vsel %vm4773_vm15, %v4767_v1, %v4740_v44 }
 0x9da   :  { %5350 = vmatpush3.msra.mxu1 %v4776_v33 }
 0x9db   :  { %5351 = vmatprep.subr.mxu1 %v9207_v21 }
 0x9dc   :  { %v4626_v8 = vpop.xlane.xlu0 %4625  ;;  %v4698_v62 = vpop.xlane.xlu1 %4697 }
 0x9dd   :  { %v4757_v36 = vsel %vm4756_vm7, %v4626_v8, %v4662_v51 }
 0x9de   :  { %v4765_v23 = vsel %vm9309_vm11, %v4757_v36, %v4698_v62 }
 0x9e0   :  { %v4737_v53 = vpop.xlane.xlu0 %4736 }
 0x9e1   :  { %v4775_v49 = vsel %vm4773_vm15, %v4766_v2, %v4737_v53 }
 0x9e2   :  { %5352 = vmatpush3.msra.mxu1 %v4775_v49 }
 0x9e3   :  { %5353 = vmatprep.subr.mxu1 %v9207_v21 }
 0x9e4   :  { %v4734_v50 = vpop.xlane.xlu0 %4733 }
 0x9e5   :  { %v4774_v40 = vsel %vm4773_vm15, %v4765_v23, %v4734_v50 }
 0x9e6   :  { %5354 = vmatpush3.msra.mxu1 %v4774_v40 }
 0x9e7   :  { %5356 = vmatmul.mubr.msk.f32.vlgmr.msra.gmra.mxu1 %vm4796_vm0, %v5121_v20 }
 0xaa7   :  { %v4866_v35 = vpop.f32.mrf.mxu1 }
 0xaa8   :  { %v4867_v47 = vadd.f32 %v5122_v30, %v4866_v35 }
 0xaa9   :  { %v5357_v5 = vpop.f32.mrf.mxu1 }
 0xaaa   :  { %4871 = vst.msk [vmem:[#allocation6] sm:$0x3] %vm4870_vm1, %v4867_v47 }
 0xaab   :  { %5421 = shalt.err (!%p5418_p4)
}
 0xaac   :  { %4881 = dma.vmem_to_hbm [thread:$0]  %s4879_s12, 32, %s9111_s3, [#allocation7]  }
 0xaad   :  { %5430 = dma.done.wait [#allocation7], 32  }
 0xaae   :  { %5431 = vsyncadd [#allocation7], 4294967264 }
 0xaaf   :  { %4885 = vsyncpa [#allocation7], 1 }

</bundles_post_ra>
